<compile_context>
chip_gen: v6e
topology: v6e:2x2x1
jax: 0.10.0
libtpu: 0.0.40
codegen_flags: <defaults>
</compile_context>

<pallas_src>
import functools

import jax
import jax.numpy as jnp
from jax.experimental import pallas as pl
from jax.experimental.pallas import tpu as pltpu


_VMEM_LIMIT = 32 * 1024 * 1024   # explicit scoped-VMEM cap (safe on v5e/v6e/v7x)


def _round_up(x, m):
    return ((x + m - 1) // m) * m


# ----------------------------------------------------------------------------
# In-kernel helpers
# ----------------------------------------------------------------------------
def _shift_lanes(a, d):
    """out[:, p] = a[:, p + d] (wrap-around; wrapped lanes are masked by caller)."""
    if d == 0:
        return a
    n = a.shape[-1]
    s = d % n
    return jnp.concatenate([a[:, s:], a[:, :s]], axis=1)


def _tap_masks(cp, h, w):
    """Validity mask per 3x3 tap (index k = 3*kh + kw) for a (cp, h*w) activation."""
    hw = h * w
    p = jax.lax.broadcasted_iota(jnp.int32, (cp, hw), 1)
    col = p % w
    vmask = [p >= w, None, p < (h - 1) * w]           # kh = 0, 1, 2
    hmask = [col != 0, None, col != (w - 1)]          # kw = 0, 1, 2
    masks = []
    for kh in range(3):
        for kw in range(3):
            m = vmask[kh]
            if hmask[kw] is not None:
                m = hmask[kw] if m is None else jnp.logical_and(m, hmask[kw])
            masks.append(m)
    return masks


def _conv3x3_bn_relu(act, w_ref, s_ref, h, w, masks):
    """3x3/pad=1 conv + folded-BN shift + ReLU on a (cp, h*w) activation.

    The 9 shifted taps are stacked along sublanes into a (9*cp, h*w) slab and
    contracted against the (cp, 9*cp) weight matrix in a single MXU matmul.
    """
    taps = []
    for kh in range(3):
        for kw in range(3):
            d = (kh - 1) * w + (kw - 1)
            t = _shift_lanes(act, d)
            m = masks[3 * kh + kw]
            if m is not None:
                t = jnp.where(m, t, 0.0)
            taps.append(t)
    patches = jnp.concatenate(taps, axis=0)                       # (9*cp, h*w)
    out = jnp.dot(w_ref[...], patches, preferred_element_type=jnp.float32)
    return jnp.maximum(out + s_ref[...], 0.0)


# ----------------------------------------------------------------------------
# The fused FCNHead kernel (one image per grid step)
# ----------------------------------------------------------------------------
def _fcn_head_kernel(x_ref,
                     w31_ref, s31_ref, w32_ref, s32_ref,
                     w21_ref, s21_ref, w22_ref, s22_ref,
                     kt_ref,
                     w11_ref, s11_ref, w12_ref, s12_ref,
                     wc_ref, bc_ref,
                     l3_ref, l2_ref, l1_ref, cls_ref,
                     *, h, w, cp):
    hb, wb = 2 * h, 2 * w
    masks_s = _tap_masks(cp, h, w)          # masks for the (h, w) stages
    masks_b = _tap_masks(cp, hb, wb)        # masks for the upsampled stage

    act = x_ref[0]                                                # (cp, h*w)

    # L3u: DoubleConv(in_channels -> in_channels // 2)
    t = _conv3x3_bn_relu(act, w31_ref, s31_ref, h, w, masks_s)
    l3 = _conv3x3_bn_relu(t, w32_ref, s32_ref, h, w, masks_s)
    l3_ref[0] = l3

    # L2u: DoubleConv(-> in_channels // 4)
    t = _conv3x3_bn_relu(l3, w21_ref, s21_ref, h, w, masks_s)
    l2 = _conv3x3_bn_relu(t, w22_ref, s22_ref, h, w, masks_s)
    l2_ref[0] = l2

    # L1u: bilinear x2 (align_corners=True) as one matmul, then DoubleConv.
    up = jnp.dot(l2, kt_ref[...], preferred_element_type=jnp.float32)  # (cp, 4hw)
    t = _conv3x3_bn_relu(up, w11_ref, s11_ref, hb, wb, masks_b)
    l1 = _conv3x3_bn_relu(t, w12_ref, s12_ref, hb, wb, masks_b)
    l1_ref[0] = l1

    # cls: Dropout(0.1) is identity at inference, then 1x1 conv + bias.
    # TODO(synk): training-mode dropout (stateful RNG mask) not implemented.
    cls = jnp.dot(wc_ref[...], l1, preferred_element_type=jnp.float32) + bc_ref[...]
    cls_ref[0] = cls


# ----------------------------------------------------------------------------
# Bilinear x2 interpolation matrix (align_corners=True)
# ----------------------------------------------------------------------------
def _upsample_matrix(n_in):
    n_out = 2 * n_in
    if n_in == 1:                      # degenerate: replicate the single row
        return jnp.ones((n_out, 1), jnp.float32)
    src = jnp.arange(n_out, dtype=jnp.float32) * (n_in - 1) / (n_out - 1)
    lo = jnp.clip(jnp.floor(src).astype(jnp.int32), 0, n_in - 2)
    frac = src - lo.astype(jnp.float32)
    idx = jnp.arange(n_out)
    u = jnp.zeros((n_out, n_in), jnp.float32)
    u = u.at[idx, lo].add(1.0 - frac)
    u = u.at[idx, lo + 1].add(frac)
    return u


def _bilinear_kron_t(h, w):
    """(h*w, 4*h*w) matrix Kt such that up(C, 4hw) = act(C, hw) @ Kt."""
    return jnp.kron(_upsample_matrix(h), _upsample_matrix(w)).T


# ----------------------------------------------------------------------------
# Parameter prep: fold BN scale into weights, pad channels to the sublane tile
# ----------------------------------------------------------------------------
def _prep_conv(w, scale, shift, cp):
    co, ci, _, _ = w.shape
    wf = w * scale[:, None, None, None]                     # fold BN scale
    wt = jnp.transpose(wf, (0, 2, 3, 1))                    # (co, kh, kw, ci)
    wt = jnp.pad(wt, ((0, cp - co), (0, 0), (0, 0), (0, cp - ci)))
    wmat = wt.reshape(cp, 9 * cp).astype(jnp.float32)       # [co, k*cp + ci]
    sh = jnp.pad(shift, (0, cp - co)).reshape(cp, 1).astype(jnp.float32)
    return wmat, sh


def _prep_double_conv(p, cp):
    w1, s1 = _prep_conv(p["w1"], p["scale1"], p["shift1"], cp)
    w2, s2 = _prep_conv(p["w2"], p["scale2"], p["shift2"], cp)
    return w1, s1, w2, s2


def _prep_cls(p, cp):
    wc = p["w"][:, :, 0, 0]                                 # (ncls, c1)
    ncls, c1 = wc.shape
    wm = jnp.pad(wc, ((0, cp - ncls), (0, cp - c1))).astype(jnp.float32)
    b = jnp.pad(p["b"], (0, cp - ncls)).reshape(cp, 1).astype(jnp.float32)
    return wm, b


# ----------------------------------------------------------------------------
# Parameter construction (deterministic, synthetic) — matches the reference
# ----------------------------------------------------------------------------
def _fold_bn(gamma, beta, mean, var, eps=1e-5):
    scale = gamma / jnp.sqrt(var + eps)
    return scale, beta - mean * scale


def _init_double_conv(key, cin, cout):
    k1, k2, k3, k4 = jax.random.split(key, 4)
    mid = cout                       # DoubleConv with mid_channels=None

    def bn(key, c):
        a, b, c_, d = jax.random.split(key, 4)
        gamma = 1.0 + 0.1 * jax.random.normal(a, (c,), jnp.float32)
        beta = 0.1 * jax.random.normal(b, (c,), jnp.float32)
        mean = 0.1 * jax.random.normal(c_, (c,), jnp.float32)
        var = 1.0 + 0.1 * jnp.abs(jax.random.normal(d, (c,), jnp.float32))
        return _fold_bn(gamma, beta, mean, var)

    s1, sh1 = bn(k2, mid)
    s2, sh2 = bn(k4, cout)
    return {
        "w1": 0.1 * jax.random.normal(k1, (mid, cin, 3, 3), jnp.float32),
        "scale1": s1, "shift1": sh1,
        "w2": 0.1 * jax.random.normal(k3, (cout, mid, 3, 3), jnp.float32),
        "scale2": s2, "shift2": sh2,
    }


def init_fcn_head(key, in_channels, channels):
    l3, l2, l1 = in_channels // 2, in_channels // 4, in_channels // 8
    k1, k2, k3, k4, k5 = jax.random.split(key, 5)
    return {
        "L3u": _init_double_conv(k1, in_channels, l3),
        "L2u": _init_double_conv(k2, l3, l2),
        "L1u": _init_double_conv(k3, l2, l1),
        "cls": {
            "w": 0.1 * jax.random.normal(k4, (channels, l1, 1, 1), jnp.float32),
            "b": 0.1 * jax.random.normal(k5, (channels,), jnp.float32),
        },
    }


# ----------------------------------------------------------------------------
# FCNHead forward (NCHW in / NCHW out to match the PyTorch reference)
# ----------------------------------------------------------------------------
def fcn_head_forward(params, x_nchw):
    n, cin, h, w = x_nchw.shape
    c3, c2, c1 = cin // 2, cin // 4, cin // 8
    ncls = params["cls"]["w"].shape[0]
    cp = _round_up(max(cin, c3, c2, c1, ncls), 8)
    hw, hw4 = h * w, 4 * h * w

    # (N, C, H, W) -> (N, C_pad, H*W): pure reshape + channel zero-pad.
    x = x_nchw.reshape(n, cin, hw).astype(jnp.float32)
    x = jnp.pad(x, ((0, 0), (0, cp - cin), (0, 0)))

    w31, s31, w32, s32 = _prep_double_conv(params["L3u"], cp)
    w21, s21, w22, s22 = _prep_double_conv(params["L2u"], cp)
    w11, s11, w12, s12 = _prep_double_conv(params["L1u"], cp)
    wc, bc = _prep_cls(params["cls"], cp)
    kt = _bilinear_kron_t(h, w)                                  # (hw, 4hw)

    kernel = functools.partial(_fcn_head_kernel, h=h, w=w, cp=cp)
    wspec = pl.BlockSpec((cp, 9 * cp), lambda i: (0, 0))
    sspec = pl.BlockSpec((cp, 1), lambda i: (0, 0))

    l3_o, l2_o, l1_o, cls_o = pl.pallas_call(
        kernel,
        out_shape=(jax.ShapeDtypeStruct((n, cp, hw), jnp.float32),
                   jax.ShapeDtypeStruct((n, cp, hw), jnp.float32),
                   jax.ShapeDtypeStruct((n, cp, hw4), jnp.float32),
                   jax.ShapeDtypeStruct((n, cp, hw4), jnp.float32)),
        grid=(n,),
        in_specs=[
            pl.BlockSpec((1, cp, hw), lambda i: (i, 0, 0)),      # x
            wspec, sspec, wspec, sspec,                          # L3u
            wspec, sspec, wspec, sspec,                          # L2u
            pl.BlockSpec((hw, hw4), lambda i: (0, 0)),           # upsample mat
            wspec, sspec, wspec, sspec,                          # L1u
            pl.BlockSpec((cp, cp), lambda i: (0, 0)),            # cls weight
            sspec,                                               # cls bias
        ],
        out_specs=(pl.BlockSpec((1, cp, hw), lambda i: (i, 0, 0)),
                   pl.BlockSpec((1, cp, hw), lambda i: (i, 0, 0)),
                   pl.BlockSpec((1, cp, hw4), lambda i: (i, 0, 0)),
                   pl.BlockSpec((1, cp, hw4), lambda i: (i, 0, 0))),
        compiler_params=pltpu.CompilerParams(
            dimension_semantics=("parallel",),
            vmem_limit_bytes=_VMEM_LIMIT),
    )(x, w31, s31, w32, s32, w21, s21, w22, s22, kt,
      w11, s11, w12, s12, wc, bc)

    def to_nchw(t, c, hh, ww):   # boundary: slice real channels, un-flatten
        return t[:, :c, :].reshape(n, c, hh, ww)

    return {"L3u": to_nchw(l3_o, c3, h, w),
            "L2u": to_nchw(l2_o, c2, h, w),
            "L1u": to_nchw(l1_o, c1, 2 * h, 2 * w),
            "cls": to_nchw(cls_o, ncls, 2 * h, 2 * w)}


# ----------------------------------------------------------------------------
# Pure-JAX f32 reference for the correctness check
# ----------------------------------------------------------------------------
def _ref_forward(params, x_nchw):
    x = jnp.transpose(x_nchw, (0, 2, 3, 1))

    def conv_bn_relu(t, w, scale, shift):
        y = jax.lax.conv_general_dilated(
            t, jnp.transpose(w, (2, 3, 1, 0)), (1, 1), ((1, 1), (1, 1)),
            dimension_numbers=("NHWC", "HWIO", "NHWC"))
        return jnp.maximum(y * scale + shift, 0.0)

    def dc(p, t):
        t = conv_bn_relu(t, p["w1"], p["scale1"], p["shift1"])
        return conv_bn_relu(t, p["w2"], p["scale2"], p["shift2"])

    l3 = dc(params["L3u"], x)
    l2 = dc(params["L2u"], l3)
    _, h, w, _ = l2.shape
    up = jnp.einsum("Ih,nhwc->nIwc", _upsample_matrix(h), l2)
    up = jnp.einsum("Jw,nIwc->nIJc", _upsample_matrix(w), up)
    l1 = dc(params["L1u"], up)
    cls_ = jnp.einsum("nhwc,oc->nhwo", l1, params["cls"]["w"][:, :, 0, 0]) \
        + params["cls"]["b"]
    to_nchw = lambda t: jnp.transpose(t, (0, 3, 1, 2))
    return {"L3u": to_nchw(l3), "L2u": to_nchw(l2),
            "L1u": to_nchw(l1), "cls": to_nchw(cls_)}


if __name__ == "__main__":
    in_channels, num_classes = 16, 3
    n, h, w = 2, 16, 16

    root = jax.random.PRNGKey(0)
    k_params, k_x = jax.random.split(root)
    params = init_fcn_head(k_params, in_channels, num_classes)
    x = jax.random.normal(k_x, (n, in_channels, h, w), jnp.float32)   # NCHW

    out = jax.jit(fcn_head_forward)(params, x)
    jax.block_until_ready(out)

    assert out["L3u"].shape == (n, in_channels // 2, h, w)
    assert out["L2u"].shape == (n, in_channels // 4, h, w)
    assert out["L1u"].shape == (n, in_channels // 8, 2 * h, 2 * w)
    assert out["cls"].shape == (n, num_classes, 2 * h, 2 * w)
    assert all(bool(jnp.isfinite(v).all()) for v in out.values())

    ref = _ref_forward(params, x)
    for key in ("L3u", "L2u", "L1u", "cls"):
        assert jnp.allclose(out[key], ref[key], rtol=5e-2, atol=5e-2), key

    print("KERNEL_OK")
</pallas_src>

<mosaic_0001>
module attributes {stable_mosaic.version = 11 : i64} {
  func.func private @main(%arg0: i32) attributes {dimension_semantics = [#tpu.dimension_semantics<core_parallel>], iteration_bounds = array<i64: 2>, tpu.core_type = #tpu.core_type<sc_scalar_subcore>, window_params = []} {
    return
  }
}

module attributes {stable_mosaic.version = 11 : i64} {
  func.func private @main(%arg0: i32) attributes {dimension_semantics = [#tpu.dimension_semantics<core_parallel>], iteration_bounds = array<i64: 2>, tpu.core_type = #tpu.core_type<sc_scalar_subcore>, window_params = []} {
    return
  }
}

module attributes {stable_mosaic.version = 11 : i64} {
  func.func @_fcn_head_kernel(%arg0: i32, %arg1: memref<1x16x256xf32, #tpu.memory_space<vmem>>, %arg2: memref<16x144xf32, #tpu.memory_space<vmem>>, %arg3: memref<16x1xf32, #tpu.memory_space<vmem>>, %arg4: memref<16x144xf32, #tpu.memory_space<vmem>>, %arg5: memref<16x1xf32, #tpu.memory_space<vmem>>, %arg6: memref<16x144xf32, #tpu.memory_space<vmem>>, %arg7: memref<16x1xf32, #tpu.memory_space<vmem>>, %arg8: memref<16x144xf32, #tpu.memory_space<vmem>>, %arg9: memref<16x1xf32, #tpu.memory_space<vmem>>, %arg10: memref<256x1024xf32, #tpu.memory_space<vmem>>, %arg11: memref<16x144xf32, #tpu.memory_space<vmem>>, %arg12: memref<16x1xf32, #tpu.memory_space<vmem>>, %arg13: memref<16x144xf32, #tpu.memory_space<vmem>>, %arg14: memref<16x1xf32, #tpu.memory_space<vmem>>, %arg15: memref<16x16xf32, #tpu.memory_space<vmem>>, %arg16: memref<16x1xf32, #tpu.memory_space<vmem>>, %arg17: memref<1x16x256xf32, #tpu.memory_space<vmem>>, %arg18: memref<1x16x256xf32, #tpu.memory_space<vmem>>, %arg19: memref<1x16x1024xf32, #tpu.memory_space<vmem>>, %arg20: memref<1x16x1024xf32, #tpu.memory_space<vmem>>) attributes {dimension_semantics = [#tpu.dimension_semantics<parallel>], iteration_bounds = array<i64: 2>, scalar_prefetch = 0 : i64, scratch_operands = 0 : i64, tpu.core_type = #tpu.core_type<tc>, window_params = [{transform_indices = @transform_0, window_bounds = array<i64: 1, 16, 256>}, {pipeline_mode = #tpu.pipeline_mode<synchronous>, transform_indices = @transform_1, window_bounds = array<i64: 16, 144>}, {pipeline_mode = #tpu.pipeline_mode<synchronous>, transform_indices = @transform_2, window_bounds = array<i64: 16, 1>}, {pipeline_mode = #tpu.pipeline_mode<synchronous>, transform_indices = @transform_3, window_bounds = array<i64: 16, 144>}, {pipeline_mode = #tpu.pipeline_mode<synchronous>, transform_indices = @transform_4, window_bounds = array<i64: 16, 1>}, {pipeline_mode = #tpu.pipeline_mode<synchronous>, transform_indices = @transform_5, window_bounds = array<i64: 16, 144>}, {pipeline_mode = #tpu.pipeline_mode<synchronous>, transform_indices = @transform_6, window_bounds = array<i64: 16, 1>}, {pipeline_mode = #tpu.pipeline_mode<synchronous>, transform_indices = @transform_7, window_bounds = array<i64: 16, 144>}, {pipeline_mode = #tpu.pipeline_mode<synchronous>, transform_indices = @transform_8, window_bounds = array<i64: 16, 1>}, {pipeline_mode = #tpu.pipeline_mode<synchronous>, transform_indices = @transform_9, window_bounds = array<i64: 256, 1024>}, {pipeline_mode = #tpu.pipeline_mode<synchronous>, transform_indices = @transform_10, window_bounds = array<i64: 16, 144>}, {pipeline_mode = #tpu.pipeline_mode<synchronous>, transform_indices = @transform_11, window_bounds = array<i64: 16, 1>}, {pipeline_mode = #tpu.pipeline_mode<synchronous>, transform_indices = @transform_12, window_bounds = array<i64: 16, 144>}, {pipeline_mode = #tpu.pipeline_mode<synchronous>, transform_indices = @transform_13, window_bounds = array<i64: 16, 1>}, {pipeline_mode = #tpu.pipeline_mode<synchronous>, transform_indices = @transform_14, window_bounds = array<i64: 16, 16>}, {pipeline_mode = #tpu.pipeline_mode<synchronous>, transform_indices = @transform_15, window_bounds = array<i64: 16, 1>}, {transform_indices = @transform_16, window_bounds = array<i64: 1, 16, 256>}, {transform_indices = @transform_17, window_bounds = array<i64: 1, 16, 256>}, {transform_indices = @transform_18, window_bounds = array<i64: 1, 16, 1024>}, {transform_indices = @transform_19, window_bounds = array<i64: 1, 16, 1024>}]} {
    %0 = tpu.iota {dimensions = array<i32: 1>} : vector<16x256xi32>
    %c16_i32 = arith.constant 16 : i32
    %c0_i32 = arith.constant 0 : i32
    %1 = arith.cmpi eq, %c16_i32, %c0_i32 : i32
    %c1_i32 = arith.constant 1 : i32
    %2 = arith.select %1, %c1_i32, %c16_i32 : i32
    %3 = vector.broadcast %2 : i32 to vector<16x256xi32>
    %4 = arith.remsi %0, %3 : vector<16x256xi32>
    %c0_i32_0 = arith.constant 0 : i32
    %5 = vector.broadcast %c0_i32_0 : i32 to vector<16x256xi32>
    %6 = arith.cmpi ne, %4, %5 : vector<16x256xi32>
    %c0_i32_1 = arith.constant 0 : i32
    %7 = vector.broadcast %c0_i32_1 : i32 to vector<16x256xi32>
    %8 = arith.cmpi slt, %4, %7 : vector<16x256xi32>
    %c0_i32_2 = arith.constant 0 : i32
    %9 = arith.cmpi slt, %2, %c0_i32_2 : i32
    %10 = vector.broadcast %9 : i1 to vector<16x256xi1>
    %11 = vector.broadcast %10 : vector<16x256xi1> to vector<16x256xi1>
    %12 = arith.xori %8, %11 : vector<16x256xi1>
    %13 = arith.andi %12, %6 : vector<16x256xi1>
    %14 = vector.broadcast %2 : i32 to vector<16x256xi32>
    %15 = arith.addi %4, %14 : vector<16x256xi32>
    %16 = arith.select %13, %15, %4 : vector<16x256xi1>, vector<16x256xi32>
    %c16_i32_3 = arith.constant 16 : i32
    %17 = vector.broadcast %c16_i32_3 : i32 to vector<16x256xi32>
    %18 = arith.cmpi sge, %0, %17 : vector<16x256xi32>
    %c240_i32 = arith.constant 240 : i32
    %19 = vector.broadcast %c240_i32 : i32 to vector<16x256xi32>
    %20 = arith.cmpi slt, %0, %19 : vector<16x256xi32>
    %c0_i32_4 = arith.constant 0 : i32
    %21 = vector.broadcast %c0_i32_4 : i32 to vector<16x256xi32>
    %22 = arith.cmpi ne, %16, %21 : vector<16x256xi32>
    %c15_i32 = arith.constant 15 : i32
    %23 = vector.broadcast %c15_i32 : i32 to vector<16x256xi32>
    %24 = arith.cmpi ne, %16, %23 : vector<16x256xi32>
    %25 = arith.andi %18, %22 : vector<16x256xi1>
    %26 = arith.andi %18, %24 : vector<16x256xi1>
    %27 = arith.andi %20, %22 : vector<16x256xi1>
    %28 = arith.andi %20, %24 : vector<16x256xi1>
    %29 = tpu.iota {dimensions = array<i32: 1>} : vector<16x1024xi32>
    %c32_i32 = arith.constant 32 : i32
    %c0_i32_5 = arith.constant 0 : i32
    %30 = arith.cmpi eq, %c32_i32, %c0_i32_5 : i32
    %c1_i32_6 = arith.constant 1 : i32
    %31 = arith.select %30, %c1_i32_6, %c32_i32 : i32
    %32 = vector.broadcast %31 : i32 to vector<16x1024xi32>
    %33 = arith.remsi %29, %32 : vector<16x1024xi32>
    %c0_i32_7 = arith.constant 0 : i32
    %34 = vector.broadcast %c0_i32_7 : i32 to vector<16x1024xi32>
    %35 = arith.cmpi ne, %33, %34 : vector<16x1024xi32>
    %c0_i32_8 = arith.constant 0 : i32
    %36 = vector.broadcast %c0_i32_8 : i32 to vector<16x1024xi32>
    %37 = arith.cmpi slt, %33, %36 : vector<16x1024xi32>
    %c0_i32_9 = arith.constant 0 : i32
    %38 = arith.cmpi slt, %31, %c0_i32_9 : i32
    %39 = vector.broadcast %38 : i1 to vector<16x1024xi1>
    %40 = vector.broadcast %39 : vector<16x1024xi1> to vector<16x1024xi1>
    %41 = arith.xori %37, %40 : vector<16x1024xi1>
    %42 = arith.andi %41, %35 : vector<16x1024xi1>
    %43 = vector.broadcast %31 : i32 to vector<16x1024xi32>
    %44 = arith.addi %33, %43 : vector<16x1024xi32>
    %45 = arith.select %42, %44, %33 : vector<16x1024xi1>, vector<16x1024xi32>
    %c32_i32_10 = arith.constant 32 : i32
    %46 = vector.broadcast %c32_i32_10 : i32 to vector<16x1024xi32>
    %47 = arith.cmpi sge, %29, %46 : vector<16x1024xi32>
    %c992_i32 = arith.constant 992 : i32
    %48 = vector.broadcast %c992_i32 : i32 to vector<16x1024xi32>
    %49 = arith.cmpi slt, %29, %48 : vector<16x1024xi32>
    %c0_i32_11 = arith.constant 0 : i32
    %50 = vector.broadcast %c0_i32_11 : i32 to vector<16x1024xi32>
    %51 = arith.cmpi ne, %45, %50 : vector<16x1024xi32>
    %c31_i32 = arith.constant 31 : i32
    %52 = vector.broadcast %c31_i32 : i32 to vector<16x1024xi32>
    %53 = arith.cmpi ne, %45, %52 : vector<16x1024xi32>
    %54 = arith.andi %47, %51 : vector<16x1024xi1>
    %55 = arith.andi %47, %53 : vector<16x1024xi1>
    %56 = arith.andi %49, %51 : vector<16x1024xi1>
    %57 = arith.andi %49, %53 : vector<16x1024xi1>
    %c0 = arith.constant 0 : index
    %c0_12 = arith.constant 0 : index
    %c0_13 = arith.constant 0 : index
    %58 = vector.load %arg1[%c0, %c0_12, %c0_13] : memref<1x16x256xf32, #tpu.memory_space<vmem>>, vector<1x16x256xf32>
    %59 = vector.shape_cast %58 : vector<1x16x256xf32> to vector<16x256xf32>
    %60 = vector.extract_strided_slice %59 {offsets = [0, 239], sizes = [16, 17], strides = [1, 1]} : vector<16x256xf32> to vector<16x17xf32>
    %61 = vector.extract_strided_slice %59 {offsets = [0, 0], sizes = [16, 239], strides = [1, 1]} : vector<16x256xf32> to vector<16x239xf32>
    %62 = tpu.concatenate %60, %61 in 1 : vector<16x17xf32>, vector<16x239xf32> -> vector<16x256xf32>
    %cst = arith.constant 0.000000e+00 : f32
    %63 = vector.broadcast %cst : f32 to vector<16x256xf32>
    %64 = arith.select %25, %62, %63 : vector<16x256xi1>, vector<16x256xf32>
    %65 = vector.extract_strided_slice %59 {offsets = [0, 240], sizes = [16, 16], strides = [1, 1]} : vector<16x256xf32> to vector<16x16xf32>
    %66 = vector.extract_strided_slice %59 {offsets = [0, 0], sizes = [16, 240], strides = [1, 1]} : vector<16x256xf32> to vector<16x240xf32>
    %67 = tpu.concatenate %65, %66 in 1 : vector<16x16xf32>, vector<16x240xf32> -> vector<16x256xf32>
    %cst_14 = arith.constant 0.000000e+00 : f32
    %68 = vector.broadcast %cst_14 : f32 to vector<16x256xf32>
    %69 = arith.select %18, %67, %68 : vector<16x256xi1>, vector<16x256xf32>
    %70 = vector.extract_strided_slice %59 {offsets = [0, 241], sizes = [16, 15], strides = [1, 1]} : vector<16x256xf32> to vector<16x15xf32>
    %71 = vector.extract_strided_slice %59 {offsets = [0, 0], sizes = [16, 241], strides = [1, 1]} : vector<16x256xf32> to vector<16x241xf32>
    %72 = tpu.concatenate %70, %71 in 1 : vector<16x15xf32>, vector<16x241xf32> -> vector<16x256xf32>
    %cst_15 = arith.constant 0.000000e+00 : f32
    %73 = vector.broadcast %cst_15 : f32 to vector<16x256xf32>
    %74 = arith.select %26, %72, %73 : vector<16x256xi1>, vector<16x256xf32>
    %75 = vector.extract_strided_slice %59 {offsets = [0, 255], sizes = [16, 1], strides = [1, 1]} : vector<16x256xf32> to vector<16x1xf32>
    %76 = vector.extract_strided_slice %59 {offsets = [0, 0], sizes = [16, 255], strides = [1, 1]} : vector<16x256xf32> to vector<16x255xf32>
    %77 = tpu.concatenate %75, %76 in 1 : vector<16x1xf32>, vector<16x255xf32> -> vector<16x256xf32>
    %cst_16 = arith.constant 0.000000e+00 : f32
    %78 = vector.broadcast %cst_16 : f32 to vector<16x256xf32>
    %79 = arith.select %22, %77, %78 : vector<16x256xi1>, vector<16x256xf32>
    %80 = vector.extract_strided_slice %59 {offsets = [0, 1], sizes = [16, 255], strides = [1, 1]} : vector<16x256xf32> to vector<16x255xf32>
    %81 = vector.extract_strided_slice %59 {offsets = [0, 0], sizes = [16, 1], strides = [1, 1]} : vector<16x256xf32> to vector<16x1xf32>
    %82 = tpu.concatenate %80, %81 in 1 : vector<16x255xf32>, vector<16x1xf32> -> vector<16x256xf32>
    %cst_17 = arith.constant 0.000000e+00 : f32
    %83 = vector.broadcast %cst_17 : f32 to vector<16x256xf32>
    %84 = arith.select %24, %82, %83 : vector<16x256xi1>, vector<16x256xf32>
    %85 = vector.extract_strided_slice %59 {offsets = [0, 15], sizes = [16, 241], strides = [1, 1]} : vector<16x256xf32> to vector<16x241xf32>
    %86 = vector.extract_strided_slice %59 {offsets = [0, 0], sizes = [16, 15], strides = [1, 1]} : vector<16x256xf32> to vector<16x15xf32>
    %87 = tpu.concatenate %85, %86 in 1 : vector<16x241xf32>, vector<16x15xf32> -> vector<16x256xf32>
    %cst_18 = arith.constant 0.000000e+00 : f32
    %88 = vector.broadcast %cst_18 : f32 to vector<16x256xf32>
    %89 = arith.select %27, %87, %88 : vector<16x256xi1>, vector<16x256xf32>
    %90 = vector.extract_strided_slice %59 {offsets = [0, 16], sizes = [16, 240], strides = [1, 1]} : vector<16x256xf32> to vector<16x240xf32>
    %91 = vector.extract_strided_slice %59 {offsets = [0, 0], sizes = [16, 16], strides = [1, 1]} : vector<16x256xf32> to vector<16x16xf32>
    %92 = tpu.concatenate %90, %91 in 1 : vector<16x240xf32>, vector<16x16xf32> -> vector<16x256xf32>
    %cst_19 = arith.constant 0.000000e+00 : f32
    %93 = vector.broadcast %cst_19 : f32 to vector<16x256xf32>
    %94 = arith.select %20, %92, %93 : vector<16x256xi1>, vector<16x256xf32>
    %95 = vector.extract_strided_slice %59 {offsets = [0, 17], sizes = [16, 239], strides = [1, 1]} : vector<16x256xf32> to vector<16x239xf32>
    %96 = vector.extract_strided_slice %59 {offsets = [0, 0], sizes = [16, 17], strides = [1, 1]} : vector<16x256xf32> to vector<16x17xf32>
    %97 = tpu.concatenate %95, %96 in 1 : vector<16x239xf32>, vector<16x17xf32> -> vector<16x256xf32>
    %cst_20 = arith.constant 0.000000e+00 : f32
    %98 = vector.broadcast %cst_20 : f32 to vector<16x256xf32>
    %99 = arith.select %28, %97, %98 : vector<16x256xi1>, vector<16x256xf32>
    %100 = tpu.concatenate %64, %69, %74, %79, %59, %84, %89, %94, %99 in 0 : vector<16x256xf32>, vector<16x256xf32>, vector<16x256xf32>, vector<16x256xf32>, vector<16x256xf32>, vector<16x256xf32>, vector<16x256xf32>, vector<16x256xf32>, vector<16x256xf32> -> vector<144x256xf32>
    %c0_21 = arith.constant 0 : index
    %c0_22 = arith.constant 0 : index
    %101 = vector.load %arg2[%c0_21, %c0_22] : memref<16x144xf32, #tpu.memory_space<vmem>>, vector<16x144xf32>
    %cst_23 = arith.constant dense<0.000000e+00> : vector<16x256xf32>
    %102 = tpu.matmul %101, %100, %cst_23 {dimension_numbers = #tpu.dot_dimension_numbers<[1], [0], [0], [1], [0, 0, 1, 1], [], []>} : vector<16x144xf32>, vector<144x256xf32>, vector<16x256xf32> -> vector<16x256xf32>
    %c0_24 = arith.constant 0 : index
    %c0_25 = arith.constant 0 : index
    %103 = vector.load %arg3[%c0_24, %c0_25] : memref<16x1xf32, #tpu.memory_space<vmem>>, vector<16x1xf32>
    %104 = vector.broadcast %103 : vector<16x1xf32> to vector<16x256xf32>
    %105 = arith.addf %102, %104 : vector<16x256xf32>
    %cst_26 = arith.constant 0.000000e+00 : f32
    %106 = vector.broadcast %cst_26 : f32 to vector<16x256xf32>
    %107 = arith.maximumf %105, %106 : vector<16x256xf32>
    %108 = vector.extract_strided_slice %107 {offsets = [0, 239], sizes = [16, 17], strides = [1, 1]} : vector<16x256xf32> to vector<16x17xf32>
    %109 = vector.extract_strided_slice %107 {offsets = [0, 0], sizes = [16, 239], strides = [1, 1]} : vector<16x256xf32> to vector<16x239xf32>
    %110 = tpu.concatenate %108, %109 in 1 : vector<16x17xf32>, vector<16x239xf32> -> vector<16x256xf32>
    %cst_27 = arith.constant 0.000000e+00 : f32
    %111 = vector.broadcast %cst_27 : f32 to vector<16x256xf32>
    %112 = arith.select %25, %110, %111 : vector<16x256xi1>, vector<16x256xf32>
    %113 = vector.extract_strided_slice %107 {offsets = [0, 240], sizes = [16, 16], strides = [1, 1]} : vector<16x256xf32> to vector<16x16xf32>
    %114 = vector.extract_strided_slice %107 {offsets = [0, 0], sizes = [16, 240], strides = [1, 1]} : vector<16x256xf32> to vector<16x240xf32>
    %115 = tpu.concatenate %113, %114 in 1 : vector<16x16xf32>, vector<16x240xf32> -> vector<16x256xf32>
    %cst_28 = arith.constant 0.000000e+00 : f32
    %116 = vector.broadcast %cst_28 : f32 to vector<16x256xf32>
    %117 = arith.select %18, %115, %116 : vector<16x256xi1>, vector<16x256xf32>
    %118 = vector.extract_strided_slice %107 {offsets = [0, 241], sizes = [16, 15], strides = [1, 1]} : vector<16x256xf32> to vector<16x15xf32>
    %119 = vector.extract_strided_slice %107 {offsets = [0, 0], sizes = [16, 241], strides = [1, 1]} : vector<16x256xf32> to vector<16x241xf32>
    %120 = tpu.concatenate %118, %119 in 1 : vector<16x15xf32>, vector<16x241xf32> -> vector<16x256xf32>
    %cst_29 = arith.constant 0.000000e+00 : f32
    %121 = vector.broadcast %cst_29 : f32 to vector<16x256xf32>
    %122 = arith.select %26, %120, %121 : vector<16x256xi1>, vector<16x256xf32>
    %123 = vector.extract_strided_slice %107 {offsets = [0, 255], sizes = [16, 1], strides = [1, 1]} : vector<16x256xf32> to vector<16x1xf32>
    %124 = vector.extract_strided_slice %107 {offsets = [0, 0], sizes = [16, 255], strides = [1, 1]} : vector<16x256xf32> to vector<16x255xf32>
    %125 = tpu.concatenate %123, %124 in 1 : vector<16x1xf32>, vector<16x255xf32> -> vector<16x256xf32>
    %cst_30 = arith.constant 0.000000e+00 : f32
    %126 = vector.broadcast %cst_30 : f32 to vector<16x256xf32>
    %127 = arith.select %22, %125, %126 : vector<16x256xi1>, vector<16x256xf32>
    %128 = vector.extract_strided_slice %107 {offsets = [0, 1], sizes = [16, 255], strides = [1, 1]} : vector<16x256xf32> to vector<16x255xf32>
    %129 = vector.extract_strided_slice %107 {offsets = [0, 0], sizes = [16, 1], strides = [1, 1]} : vector<16x256xf32> to vector<16x1xf32>
    %130 = tpu.concatenate %128, %129 in 1 : vector<16x255xf32>, vector<16x1xf32> -> vector<16x256xf32>
    %cst_31 = arith.constant 0.000000e+00 : f32
    %131 = vector.broadcast %cst_31 : f32 to vector<16x256xf32>
    %132 = arith.select %24, %130, %131 : vector<16x256xi1>, vector<16x256xf32>
    %133 = vector.extract_strided_slice %107 {offsets = [0, 15], sizes = [16, 241], strides = [1, 1]} : vector<16x256xf32> to vector<16x241xf32>
    %134 = vector.extract_strided_slice %107 {offsets = [0, 0], sizes = [16, 15], strides = [1, 1]} : vector<16x256xf32> to vector<16x15xf32>
    %135 = tpu.concatenate %133, %134 in 1 : vector<16x241xf32>, vector<16x15xf32> -> vector<16x256xf32>
    %cst_32 = arith.constant 0.000000e+00 : f32
    %136 = vector.broadcast %cst_32 : f32 to vector<16x256xf32>
    %137 = arith.select %27, %135, %136 : vector<16x256xi1>, vector<16x256xf32>
    %138 = vector.extract_strided_slice %107 {offsets = [0, 16], sizes = [16, 240], strides = [1, 1]} : vector<16x256xf32> to vector<16x240xf32>
    %139 = vector.extract_strided_slice %107 {offsets = [0, 0], sizes = [16, 16], strides = [1, 1]} : vector<16x256xf32> to vector<16x16xf32>
    %140 = tpu.concatenate %138, %139 in 1 : vector<16x240xf32>, vector<16x16xf32> -> vector<16x256xf32>
    %cst_33 = arith.constant 0.000000e+00 : f32
    %141 = vector.broadcast %cst_33 : f32 to vector<16x256xf32>
    %142 = arith.select %20, %140, %141 : vector<16x256xi1>, vector<16x256xf32>
    %143 = vector.extract_strided_slice %107 {offsets = [0, 17], sizes = [16, 239], strides = [1, 1]} : vector<16x256xf32> to vector<16x239xf32>
    %144 = vector.extract_strided_slice %107 {offsets = [0, 0], sizes = [16, 17], strides = [1, 1]} : vector<16x256xf32> to vector<16x17xf32>
    %145 = tpu.concatenate %143, %144 in 1 : vector<16x239xf32>, vector<16x17xf32> -> vector<16x256xf32>
    %cst_34 = arith.constant 0.000000e+00 : f32
    %146 = vector.broadcast %cst_34 : f32 to vector<16x256xf32>
    %147 = arith.select %28, %145, %146 : vector<16x256xi1>, vector<16x256xf32>
    %148 = tpu.concatenate %112, %117, %122, %127, %107, %132, %137, %142, %147 in 0 : vector<16x256xf32>, vector<16x256xf32>, vector<16x256xf32>, vector<16x256xf32>, vector<16x256xf32>, vector<16x256xf32>, vector<16x256xf32>, vector<16x256xf32>, vector<16x256xf32> -> vector<144x256xf32>
    %c0_35 = arith.constant 0 : index
    %c0_36 = arith.constant 0 : index
    %149 = vector.load %arg4[%c0_35, %c0_36] : memref<16x144xf32, #tpu.memory_space<vmem>>, vector<16x144xf32>
    %cst_37 = arith.constant dense<0.000000e+00> : vector<16x256xf32>
    %150 = tpu.matmul %149, %148, %cst_37 {dimension_numbers = #tpu.dot_dimension_numbers<[1], [0], [0], [1], [0, 0, 1, 1], [], []>} : vector<16x144xf32>, vector<144x256xf32>, vector<16x256xf32> -> vector<16x256xf32>
    %c0_38 = arith.constant 0 : index
    %c0_39 = arith.constant 0 : index
    %151 = vector.load %arg5[%c0_38, %c0_39] : memref<16x1xf32, #tpu.memory_space<vmem>>, vector<16x1xf32>
    %152 = vector.broadcast %151 : vector<16x1xf32> to vector<16x256xf32>
    %153 = arith.addf %150, %152 : vector<16x256xf32>
    %cst_40 = arith.constant 0.000000e+00 : f32
    %154 = vector.broadcast %cst_40 : f32 to vector<16x256xf32>
    %155 = arith.maximumf %153, %154 : vector<16x256xf32>
    %c0_41 = arith.constant 0 : index
    %c0_42 = arith.constant 0 : index
    %c0_43 = arith.constant 0 : index
    %156 = vector.load %arg17[%c0_41, %c0_42, %c0_43] : memref<1x16x256xf32, #tpu.memory_space<vmem>>, vector<1x16x256xf32>
    %157 = vector.shape_cast %156 : vector<1x16x256xf32> to vector<16x256xf32>
    %158 = vector.shape_cast %155 : vector<16x256xf32> to vector<1x16x256xf32>
    tpu.vector_store %arg17[%c0_41, %c0_42, %c0_43], %158 {strides = array<i32>} : memref<1x16x256xf32, #tpu.memory_space<vmem>>, vector<1x16x256xf32>,
    %159 = vector.extract_strided_slice %155 {offsets = [0, 239], sizes = [16, 17], strides = [1, 1]} : vector<16x256xf32> to vector<16x17xf32>
    %160 = vector.extract_strided_slice %155 {offsets = [0, 0], sizes = [16, 239], strides = [1, 1]} : vector<16x256xf32> to vector<16x239xf32>
    %161 = tpu.concatenate %159, %160 in 1 : vector<16x17xf32>, vector<16x239xf32> -> vector<16x256xf32>
    %cst_44 = arith.constant 0.000000e+00 : f32
    %162 = vector.broadcast %cst_44 : f32 to vector<16x256xf32>
    %163 = arith.select %25, %161, %162 : vector<16x256xi1>, vector<16x256xf32>
    %164 = vector.extract_strided_slice %155 {offsets = [0, 240], sizes = [16, 16], strides = [1, 1]} : vector<16x256xf32> to vector<16x16xf32>
    %165 = vector.extract_strided_slice %155 {offsets = [0, 0], sizes = [16, 240], strides = [1, 1]} : vector<16x256xf32> to vector<16x240xf32>
    %166 = tpu.concatenate %164, %165 in 1 : vector<16x16xf32>, vector<16x240xf32> -> vector<16x256xf32>
    %cst_45 = arith.constant 0.000000e+00 : f32
    %167 = vector.broadcast %cst_45 : f32 to vector<16x256xf32>
    %168 = arith.select %18, %166, %167 : vector<16x256xi1>, vector<16x256xf32>
    %169 = vector.extract_strided_slice %155 {offsets = [0, 241], sizes = [16, 15], strides = [1, 1]} : vector<16x256xf32> to vector<16x15xf32>
    %170 = vector.extract_strided_slice %155 {offsets = [0, 0], sizes = [16, 241], strides = [1, 1]} : vector<16x256xf32> to vector<16x241xf32>
    %171 = tpu.concatenate %169, %170 in 1 : vector<16x15xf32>, vector<16x241xf32> -> vector<16x256xf32>
    %cst_46 = arith.constant 0.000000e+00 : f32
    %172 = vector.broadcast %cst_46 : f32 to vector<16x256xf32>
    %173 = arith.select %26, %171, %172 : vector<16x256xi1>, vector<16x256xf32>
    %174 = vector.extract_strided_slice %155 {offsets = [0, 255], sizes = [16, 1], strides = [1, 1]} : vector<16x256xf32> to vector<16x1xf32>
    %175 = vector.extract_strided_slice %155 {offsets = [0, 0], sizes = [16, 255], strides = [1, 1]} : vector<16x256xf32> to vector<16x255xf32>
    %176 = tpu.concatenate %174, %175 in 1 : vector<16x1xf32>, vector<16x255xf32> -> vector<16x256xf32>
    %cst_47 = arith.constant 0.000000e+00 : f32
    %177 = vector.broadcast %cst_47 : f32 to vector<16x256xf32>
    %178 = arith.select %22, %176, %177 : vector<16x256xi1>, vector<16x256xf32>
    %179 = vector.extract_strided_slice %155 {offsets = [0, 1], sizes = [16, 255], strides = [1, 1]} : vector<16x256xf32> to vector<16x255xf32>
    %180 = vector.extract_strided_slice %155 {offsets = [0, 0], sizes = [16, 1], strides = [1, 1]} : vector<16x256xf32> to vector<16x1xf32>
    %181 = tpu.concatenate %179, %180 in 1 : vector<16x255xf32>, vector<16x1xf32> -> vector<16x256xf32>
    %cst_48 = arith.constant 0.000000e+00 : f32
    %182 = vector.broadcast %cst_48 : f32 to vector<16x256xf32>
    %183 = arith.select %24, %181, %182 : vector<16x256xi1>, vector<16x256xf32>
    %184 = vector.extract_strided_slice %155 {offsets = [0, 15], sizes = [16, 241], strides = [1, 1]} : vector<16x256xf32> to vector<16x241xf32>
    %185 = vector.extract_strided_slice %155 {offsets = [0, 0], sizes = [16, 15], strides = [1, 1]} : vector<16x256xf32> to vector<16x15xf32>
    %186 = tpu.concatenate %184, %185 in 1 : vector<16x241xf32>, vector<16x15xf32> -> vector<16x256xf32>
    %cst_49 = arith.constant 0.000000e+00 : f32
    %187 = vector.broadcast %cst_49 : f32 to vector<16x256xf32>
    %188 = arith.select %27, %186, %187 : vector<16x256xi1>, vector<16x256xf32>
    %189 = vector.extract_strided_slice %155 {offsets = [0, 16], sizes = [16, 240], strides = [1, 1]} : vector<16x256xf32> to vector<16x240xf32>
    %190 = vector.extract_strided_slice %155 {offsets = [0, 0], sizes = [16, 16], strides = [1, 1]} : vector<16x256xf32> to vector<16x16xf32>
    %191 = tpu.concatenate %189, %190 in 1 : vector<16x240xf32>, vector<16x16xf32> -> vector<16x256xf32>
    %cst_50 = arith.constant 0.000000e+00 : f32
    %192 = vector.broadcast %cst_50 : f32 to vector<16x256xf32>
    %193 = arith.select %20, %191, %192 : vector<16x256xi1>, vector<16x256xf32>
    %194 = vector.extract_strided_slice %155 {offsets = [0, 17], sizes = [16, 239], strides = [1, 1]} : vector<16x256xf32> to vector<16x239xf32>
    %195 = vector.extract_strided_slice %155 {offsets = [0, 0], sizes = [16, 17], strides = [1, 1]} : vector<16x256xf32> to vector<16x17xf32>
    %196 = tpu.concatenate %194, %195 in 1 : vector<16x239xf32>, vector<16x17xf32> -> vector<16x256xf32>
    %cst_51 = arith.constant 0.000000e+00 : f32
    %197 = vector.broadcast %cst_51 : f32 to vector<16x256xf32>
    %198 = arith.select %28, %196, %197 : vector<16x256xi1>, vector<16x256xf32>
    %199 = tpu.concatenate %163, %168, %173, %178, %155, %183, %188, %193, %198 in 0 : vector<16x256xf32>, vector<16x256xf32>, vector<16x256xf32>, vector<16x256xf32>, vector<16x256xf32>, vector<16x256xf32>, vector<16x256xf32>, vector<16x256xf32>, vector<16x256xf32> -> vector<144x256xf32>
    %c0_52 = arith.constant 0 : index
    %c0_53 = arith.constant 0 : index
    %200 = vector.load %arg6[%c0_52, %c0_53] : memref<16x144xf32, #tpu.memory_space<vmem>>, vector<16x144xf32>
    %cst_54 = arith.constant dense<0.000000e+00> : vector<16x256xf32>
    %201 = tpu.matmul %200, %199, %cst_54 {dimension_numbers = #tpu.dot_dimension_numbers<[1], [0], [0], [1], [0, 0, 1, 1], [], []>} : vector<16x144xf32>, vector<144x256xf32>, vector<16x256xf32> -> vector<16x256xf32>
    %c0_55 = arith.constant 0 : index
    %c0_56 = arith.constant 0 : index
    %202 = vector.load %arg7[%c0_55, %c0_56] : memref<16x1xf32, #tpu.memory_space<vmem>>, vector<16x1xf32>
    %203 = vector.broadcast %202 : vector<16x1xf32> to vector<16x256xf32>
    %204 = arith.addf %201, %203 : vector<16x256xf32>
    %cst_57 = arith.constant 0.000000e+00 : f32
    %205 = vector.broadcast %cst_57 : f32 to vector<16x256xf32>
    %206 = arith.maximumf %204, %205 : vector<16x256xf32>
    %207 = vector.extract_strided_slice %206 {offsets = [0, 239], sizes = [16, 17], strides = [1, 1]} : vector<16x256xf32> to vector<16x17xf32>
    %208 = vector.extract_strided_slice %206 {offsets = [0, 0], sizes = [16, 239], strides = [1, 1]} : vector<16x256xf32> to vector<16x239xf32>
    %209 = tpu.concatenate %207, %208 in 1 : vector<16x17xf32>, vector<16x239xf32> -> vector<16x256xf32>
    %cst_58 = arith.constant 0.000000e+00 : f32
    %210 = vector.broadcast %cst_58 : f32 to vector<16x256xf32>
    %211 = arith.select %25, %209, %210 : vector<16x256xi1>, vector<16x256xf32>
    %212 = vector.extract_strided_slice %206 {offsets = [0, 240], sizes = [16, 16], strides = [1, 1]} : vector<16x256xf32> to vector<16x16xf32>
    %213 = vector.extract_strided_slice %206 {offsets = [0, 0], sizes = [16, 240], strides = [1, 1]} : vector<16x256xf32> to vector<16x240xf32>
    %214 = tpu.concatenate %212, %213 in 1 : vector<16x16xf32>, vector<16x240xf32> -> vector<16x256xf32>
    %cst_59 = arith.constant 0.000000e+00 : f32
    %215 = vector.broadcast %cst_59 : f32 to vector<16x256xf32>
    %216 = arith.select %18, %214, %215 : vector<16x256xi1>, vector<16x256xf32>
    %217 = vector.extract_strided_slice %206 {offsets = [0, 241], sizes = [16, 15], strides = [1, 1]} : vector<16x256xf32> to vector<16x15xf32>
    %218 = vector.extract_strided_slice %206 {offsets = [0, 0], sizes = [16, 241], strides = [1, 1]} : vector<16x256xf32> to vector<16x241xf32>
    %219 = tpu.concatenate %217, %218 in 1 : vector<16x15xf32>, vector<16x241xf32> -> vector<16x256xf32>
    %cst_60 = arith.constant 0.000000e+00 : f32
    %220 = vector.broadcast %cst_60 : f32 to vector<16x256xf32>
    %221 = arith.select %26, %219, %220 : vector<16x256xi1>, vector<16x256xf32>
    %222 = vector.extract_strided_slice %206 {offsets = [0, 255], sizes = [16, 1], strides = [1, 1]} : vector<16x256xf32> to vector<16x1xf32>
    %223 = vector.extract_strided_slice %206 {offsets = [0, 0], sizes = [16, 255], strides = [1, 1]} : vector<16x256xf32> to vector<16x255xf32>
    %224 = tpu.concatenate %222, %223 in 1 : vector<16x1xf32>, vector<16x255xf32> -> vector<16x256xf32>
    %cst_61 = arith.constant 0.000000e+00 : f32
    %225 = vector.broadcast %cst_61 : f32 to vector<16x256xf32>
    %226 = arith.select %22, %224, %225 : vector<16x256xi1>, vector<16x256xf32>
    %227 = vector.extract_strided_slice %206 {offsets = [0, 1], sizes = [16, 255], strides = [1, 1]} : vector<16x256xf32> to vector<16x255xf32>
    %228 = vector.extract_strided_slice %206 {offsets = [0, 0], sizes = [16, 1], strides = [1, 1]} : vector<16x256xf32> to vector<16x1xf32>
    %229 = tpu.concatenate %227, %228 in 1 : vector<16x255xf32>, vector<16x1xf32> -> vector<16x256xf32>
    %cst_62 = arith.constant 0.000000e+00 : f32
    %230 = vector.broadcast %cst_62 : f32 to vector<16x256xf32>
    %231 = arith.select %24, %229, %230 : vector<16x256xi1>, vector<16x256xf32>
    %232 = vector.extract_strided_slice %206 {offsets = [0, 15], sizes = [16, 241], strides = [1, 1]} : vector<16x256xf32> to vector<16x241xf32>
    %233 = vector.extract_strided_slice %206 {offsets = [0, 0], sizes = [16, 15], strides = [1, 1]} : vector<16x256xf32> to vector<16x15xf32>
    %234 = tpu.concatenate %232, %233 in 1 : vector<16x241xf32>, vector<16x15xf32> -> vector<16x256xf32>
    %cst_63 = arith.constant 0.000000e+00 : f32
    %235 = vector.broadcast %cst_63 : f32 to vector<16x256xf32>
    %236 = arith.select %27, %234, %235 : vector<16x256xi1>, vector<16x256xf32>
    %237 = vector.extract_strided_slice %206 {offsets = [0, 16], sizes = [16, 240], strides = [1, 1]} : vector<16x256xf32> to vector<16x240xf32>
    %238 = vector.extract_strided_slice %206 {offsets = [0, 0], sizes = [16, 16], strides = [1, 1]} : vector<16x256xf32> to vector<16x16xf32>
    %239 = tpu.concatenate %237, %238 in 1 : vector<16x240xf32>, vector<16x16xf32> -> vector<16x256xf32>
    %cst_64 = arith.constant 0.000000e+00 : f32
    %240 = vector.broadcast %cst_64 : f32 to vector<16x256xf32>
    %241 = arith.select %20, %239, %240 : vector<16x256xi1>, vector<16x256xf32>
    %242 = vector.extract_strided_slice %206 {offsets = [0, 17], sizes = [16, 239], strides = [1, 1]} : vector<16x256xf32> to vector<16x239xf32>
    %243 = vector.extract_strided_slice %206 {offsets = [0, 0], sizes = [16, 17], strides = [1, 1]} : vector<16x256xf32> to vector<16x17xf32>
    %244 = tpu.concatenate %242, %243 in 1 : vector<16x239xf32>, vector<16x17xf32> -> vector<16x256xf32>
    %cst_65 = arith.constant 0.000000e+00 : f32
    %245 = vector.broadcast %cst_65 : f32 to vector<16x256xf32>
    %246 = arith.select %28, %244, %245 : vector<16x256xi1>, vector<16x256xf32>
    %247 = tpu.concatenate %211, %216, %221, %226, %206, %231, %236, %241, %246 in 0 : vector<16x256xf32>, vector<16x256xf32>, vector<16x256xf32>, vector<16x256xf32>, vector<16x256xf32>, vector<16x256xf32>, vector<16x256xf32>, vector<16x256xf32>, vector<16x256xf32> -> vector<144x256xf32>
    %c0_66 = arith.constant 0 : index
    %c0_67 = arith.constant 0 : index
    %248 = vector.load %arg8[%c0_66, %c0_67] : memref<16x144xf32, #tpu.memory_space<vmem>>, vector<16x144xf32>
    %cst_68 = arith.constant dense<0.000000e+00> : vector<16x256xf32>
    %249 = tpu.matmul %248, %247, %cst_68 {dimension_numbers = #tpu.dot_dimension_numbers<[1], [0], [0], [1], [0, 0, 1, 1], [], []>} : vector<16x144xf32>, vector<144x256xf32>, vector<16x256xf32> -> vector<16x256xf32>
    %c0_69 = arith.constant 0 : index
    %c0_70 = arith.constant 0 : index
    %250 = vector.load %arg9[%c0_69, %c0_70] : memref<16x1xf32, #tpu.memory_space<vmem>>, vector<16x1xf32>
    %251 = vector.broadcast %250 : vector<16x1xf32> to vector<16x256xf32>
    %252 = arith.addf %249, %251 : vector<16x256xf32>
    %cst_71 = arith.constant 0.000000e+00 : f32
    %253 = vector.broadcast %cst_71 : f32 to vector<16x256xf32>
    %254 = arith.maximumf %252, %253 : vector<16x256xf32>
    %c0_72 = arith.constant 0 : index
    %c0_73 = arith.constant 0 : index
    %c0_74 = arith.constant 0 : index
    %255 = vector.load %arg18[%c0_72, %c0_73, %c0_74] : memref<1x16x256xf32, #tpu.memory_space<vmem>>, vector<1x16x256xf32>
    %256 = vector.shape_cast %255 : vector<1x16x256xf32> to vector<16x256xf32>
    %257 = vector.shape_cast %254 : vector<16x256xf32> to vector<1x16x256xf32>
    tpu.vector_store %arg18[%c0_72, %c0_73, %c0_74], %257 {strides = array<i32>} : memref<1x16x256xf32, #tpu.memory_space<vmem>>, vector<1x16x256xf32>,
    %c0_75 = arith.constant 0 : index
    %c0_76 = arith.constant 0 : index
    %258 = vector.load %arg10[%c0_75, %c0_76] : memref<256x1024xf32, #tpu.memory_space<vmem>>, vector<256x1024xf32>
    %cst_77 = arith.constant dense<0.000000e+00> : vector<16x1024xf32>
    %259 = tpu.matmul %254, %258, %cst_77 {dimension_numbers = #tpu.dot_dimension_numbers<[1], [0], [0], [1], [0, 0, 1, 1], [], []>} : vector<16x256xf32>, vector<256x1024xf32>, vector<16x1024xf32> -> vector<16x1024xf32>
    %260 = vector.extract_strided_slice %259 {offsets = [0, 991], sizes = [16, 33], strides = [1, 1]} : vector<16x1024xf32> to vector<16x33xf32>
    %261 = vector.extract_strided_slice %259 {offsets = [0, 0], sizes = [16, 991], strides = [1, 1]} : vector<16x1024xf32> to vector<16x991xf32>
    %262 = tpu.concatenate %260, %261 in 1 : vector<16x33xf32>, vector<16x991xf32> -> vector<16x1024xf32>
    %cst_78 = arith.constant 0.000000e+00 : f32
    %263 = vector.broadcast %cst_78 : f32 to vector<16x1024xf32>
    %264 = arith.select %54, %262, %263 : vector<16x1024xi1>, vector<16x1024xf32>
    %265 = vector.extract_strided_slice %259 {offsets = [0, 992], sizes = [16, 32], strides = [1, 1]} : vector<16x1024xf32> to vector<16x32xf32>
    %266 = vector.extract_strided_slice %259 {offsets = [0, 0], sizes = [16, 992], strides = [1, 1]} : vector<16x1024xf32> to vector<16x992xf32>
    %267 = tpu.concatenate %265, %266 in 1 : vector<16x32xf32>, vector<16x992xf32> -> vector<16x1024xf32>
    %cst_79 = arith.constant 0.000000e+00 : f32
    %268 = vector.broadcast %cst_79 : f32 to vector<16x1024xf32>
    %269 = arith.select %47, %267, %268 : vector<16x1024xi1>, vector<16x1024xf32>
    %270 = vector.extract_strided_slice %259 {offsets = [0, 993], sizes = [16, 31], strides = [1, 1]} : vector<16x1024xf32> to vector<16x31xf32>
    %271 = vector.extract_strided_slice %259 {offsets = [0, 0], sizes = [16, 993], strides = [1, 1]} : vector<16x1024xf32> to vector<16x993xf32>
    %272 = tpu.concatenate %270, %271 in 1 : vector<16x31xf32>, vector<16x993xf32> -> vector<16x1024xf32>
    %cst_80 = arith.constant 0.000000e+00 : f32
    %273 = vector.broadcast %cst_80 : f32 to vector<16x1024xf32>
    %274 = arith.select %55, %272, %273 : vector<16x1024xi1>, vector<16x1024xf32>
    %275 = vector.extract_strided_slice %259 {offsets = [0, 1023], sizes = [16, 1], strides = [1, 1]} : vector<16x1024xf32> to vector<16x1xf32>
    %276 = vector.extract_strided_slice %259 {offsets = [0, 0], sizes = [16, 1023], strides = [1, 1]} : vector<16x1024xf32> to vector<16x1023xf32>
    %277 = tpu.concatenate %275, %276 in 1 : vector<16x1xf32>, vector<16x1023xf32> -> vector<16x1024xf32>
    %cst_81 = arith.constant 0.000000e+00 : f32
    %278 = vector.broadcast %cst_81 : f32 to vector<16x1024xf32>
    %279 = arith.select %51, %277, %278 : vector<16x1024xi1>, vector<16x1024xf32>
    %280 = vector.extract_strided_slice %259 {offsets = [0, 1], sizes = [16, 1023], strides = [1, 1]} : vector<16x1024xf32> to vector<16x1023xf32>
    %281 = vector.extract_strided_slice %259 {offsets = [0, 0], sizes = [16, 1], strides = [1, 1]} : vector<16x1024xf32> to vector<16x1xf32>
    %282 = tpu.concatenate %280, %281 in 1 : vector<16x1023xf32>, vector<16x1xf32> -> vector<16x1024xf32>
    %cst_82 = arith.constant 0.000000e+00 : f32
    %283 = vector.broadcast %cst_82 : f32 to vector<16x1024xf32>
    %284 = arith.select %53, %282, %283 : vector<16x1024xi1>, vector<16x1024xf32>
    %285 = vector.extract_strided_slice %259 {offsets = [0, 31], sizes = [16, 993], strides = [1, 1]} : vector<16x1024xf32> to vector<16x993xf32>
    %286 = vector.extract_strided_slice %259 {offsets = [0, 0], sizes = [16, 31], strides = [1, 1]} : vector<16x1024xf32> to vector<16x31xf32>
    %287 = tpu.concatenate %285, %286 in 1 : vector<16x993xf32>, vector<16x31xf32> -> vector<16x1024xf32>
    %cst_83 = arith.constant 0.000000e+00 : f32
    %288 = vector.broadcast %cst_83 : f32 to vector<16x1024xf32>
    %289 = arith.select %56, %287, %288 : vector<16x1024xi1>, vector<16x1024xf32>
    %290 = vector.extract_strided_slice %259 {offsets = [0, 32], sizes = [16, 992], strides = [1, 1]} : vector<16x1024xf32> to vector<16x992xf32>
    %291 = vector.extract_strided_slice %259 {offsets = [0, 0], sizes = [16, 32], strides = [1, 1]} : vector<16x1024xf32> to vector<16x32xf32>
    %292 = tpu.concatenate %290, %291 in 1 : vector<16x992xf32>, vector<16x32xf32> -> vector<16x1024xf32>
    %cst_84 = arith.constant 0.000000e+00 : f32
    %293 = vector.broadcast %cst_84 : f32 to vector<16x1024xf32>
    %294 = arith.select %49, %292, %293 : vector<16x1024xi1>, vector<16x1024xf32>
    %295 = vector.extract_strided_slice %259 {offsets = [0, 33], sizes = [16, 991], strides = [1, 1]} : vector<16x1024xf32> to vector<16x991xf32>
    %296 = vector.extract_strided_slice %259 {offsets = [0, 0], sizes = [16, 33], strides = [1, 1]} : vector<16x1024xf32> to vector<16x33xf32>
    %297 = tpu.concatenate %295, %296 in 1 : vector<16x991xf32>, vector<16x33xf32> -> vector<16x1024xf32>
    %cst_85 = arith.constant 0.000000e+00 : f32
    %298 = vector.broadcast %cst_85 : f32 to vector<16x1024xf32>
    %299 = arith.select %57, %297, %298 : vector<16x1024xi1>, vector<16x1024xf32>
    %300 = tpu.concatenate %264, %269, %274, %279, %259, %284, %289, %294, %299 in 0 : vector<16x1024xf32>, vector<16x1024xf32>, vector<16x1024xf32>, vector<16x1024xf32>, vector<16x1024xf32>, vector<16x1024xf32>, vector<16x1024xf32>, vector<16x1024xf32>, vector<16x1024xf32> -> vector<144x1024xf32>
    %c0_86 = arith.constant 0 : index
    %c0_87 = arith.constant 0 : index
    %301 = vector.load %arg11[%c0_86, %c0_87] : memref<16x144xf32, #tpu.memory_space<vmem>>, vector<16x144xf32>
    %cst_88 = arith.constant dense<0.000000e+00> : vector<16x1024xf32>
    %302 = tpu.matmul %301, %300, %cst_88 {dimension_numbers = #tpu.dot_dimension_numbers<[1], [0], [0], [1], [0, 0, 1, 1], [], []>} : vector<16x144xf32>, vector<144x1024xf32>, vector<16x1024xf32> -> vector<16x1024xf32>
    %c0_89 = arith.constant 0 : index
    %c0_90 = arith.constant 0 : index
    %303 = vector.load %arg12[%c0_89, %c0_90] : memref<16x1xf32, #tpu.memory_space<vmem>>, vector<16x1xf32>
    %304 = vector.broadcast %303 : vector<16x1xf32> to vector<16x1024xf32>
    %305 = arith.addf %302, %304 : vector<16x1024xf32>
    %cst_91 = arith.constant 0.000000e+00 : f32
    %306 = vector.broadcast %cst_91 : f32 to vector<16x1024xf32>
    %307 = arith.maximumf %305, %306 : vector<16x1024xf32>
    %308 = vector.extract_strided_slice %307 {offsets = [0, 991], sizes = [16, 33], strides = [1, 1]} : vector<16x1024xf32> to vector<16x33xf32>
    %309 = vector.extract_strided_slice %307 {offsets = [0, 0], sizes = [16, 991], strides = [1, 1]} : vector<16x1024xf32> to vector<16x991xf32>
    %310 = tpu.concatenate %308, %309 in 1 : vector<16x33xf32>, vector<16x991xf32> -> vector<16x1024xf32>
    %cst_92 = arith.constant 0.000000e+00 : f32
    %311 = vector.broadcast %cst_92 : f32 to vector<16x1024xf32>
    %312 = arith.select %54, %310, %311 : vector<16x1024xi1>, vector<16x1024xf32>
    %313 = vector.extract_strided_slice %307 {offsets = [0, 992], sizes = [16, 32], strides = [1, 1]} : vector<16x1024xf32> to vector<16x32xf32>
    %314 = vector.extract_strided_slice %307 {offsets = [0, 0], sizes = [16, 992], strides = [1, 1]} : vector<16x1024xf32> to vector<16x992xf32>
    %315 = tpu.concatenate %313, %314 in 1 : vector<16x32xf32>, vector<16x992xf32> -> vector<16x1024xf32>
    %cst_93 = arith.constant 0.000000e+00 : f32
    %316 = vector.broadcast %cst_93 : f32 to vector<16x1024xf32>
    %317 = arith.select %47, %315, %316 : vector<16x1024xi1>, vector<16x1024xf32>
    %318 = vector.extract_strided_slice %307 {offsets = [0, 993], sizes = [16, 31], strides = [1, 1]} : vector<16x1024xf32> to vector<16x31xf32>
    %319 = vector.extract_strided_slice %307 {offsets = [0, 0], sizes = [16, 993], strides = [1, 1]} : vector<16x1024xf32> to vector<16x993xf32>
    %320 = tpu.concatenate %318, %319 in 1 : vector<16x31xf32>, vector<16x993xf32> -> vector<16x1024xf32>
    %cst_94 = arith.constant 0.000000e+00 : f32
    %321 = vector.broadcast %cst_94 : f32 to vector<16x1024xf32>
    %322 = arith.select %55, %320, %321 : vector<16x1024xi1>, vector<16x1024xf32>
    %323 = vector.extract_strided_slice %307 {offsets = [0, 1023], sizes = [16, 1], strides = [1, 1]} : vector<16x1024xf32> to vector<16x1xf32>
    %324 = vector.extract_strided_slice %307 {offsets = [0, 0], sizes = [16, 1023], strides = [1, 1]} : vector<16x1024xf32> to vector<16x1023xf32>
    %325 = tpu.concatenate %323, %324 in 1 : vector<16x1xf32>, vector<16x1023xf32> -> vector<16x1024xf32>
    %cst_95 = arith.constant 0.000000e+00 : f32
    %326 = vector.broadcast %cst_95 : f32 to vector<16x1024xf32>
    %327 = arith.select %51, %325, %326 : vector<16x1024xi1>, vector<16x1024xf32>
    %328 = vector.extract_strided_slice %307 {offsets = [0, 1], sizes = [16, 1023], strides = [1, 1]} : vector<16x1024xf32> to vector<16x1023xf32>
    %329 = vector.extract_strided_slice %307 {offsets = [0, 0], sizes = [16, 1], strides = [1, 1]} : vector<16x1024xf32> to vector<16x1xf32>
    %330 = tpu.concatenate %328, %329 in 1 : vector<16x1023xf32>, vector<16x1xf32> -> vector<16x1024xf32>
    %cst_96 = arith.constant 0.000000e+00 : f32
    %331 = vector.broadcast %cst_96 : f32 to vector<16x1024xf32>
    %332 = arith.select %53, %330, %331 : vector<16x1024xi1>, vector<16x1024xf32>
    %333 = vector.extract_strided_slice %307 {offsets = [0, 31], sizes = [16, 993], strides = [1, 1]} : vector<16x1024xf32> to vector<16x993xf32>
    %334 = vector.extract_strided_slice %307 {offsets = [0, 0], sizes = [16, 31], strides = [1, 1]} : vector<16x1024xf32> to vector<16x31xf32>
    %335 = tpu.concatenate %333, %334 in 1 : vector<16x993xf32>, vector<16x31xf32> -> vector<16x1024xf32>
    %cst_97 = arith.constant 0.000000e+00 : f32
    %336 = vector.broadcast %cst_97 : f32 to vector<16x1024xf32>
    %337 = arith.select %56, %335, %336 : vector<16x1024xi1>, vector<16x1024xf32>
    %338 = vector.extract_strided_slice %307 {offsets = [0, 32], sizes = [16, 992], strides = [1, 1]} : vector<16x1024xf32> to vector<16x992xf32>
    %339 = vector.extract_strided_slice %307 {offsets = [0, 0], sizes = [16, 32], strides = [1, 1]} : vector<16x1024xf32> to vector<16x32xf32>
    %340 = tpu.concatenate %338, %339 in 1 : vector<16x992xf32>, vector<16x32xf32> -> vector<16x1024xf32>
    %cst_98 = arith.constant 0.000000e+00 : f32
    %341 = vector.broadcast %cst_98 : f32 to vector<16x1024xf32>
    %342 = arith.select %49, %340, %341 : vector<16x1024xi1>, vector<16x1024xf32>
    %343 = vector.extract_strided_slice %307 {offsets = [0, 33], sizes = [16, 991], strides = [1, 1]} : vector<16x1024xf32> to vector<16x991xf32>
    %344 = vector.extract_strided_slice %307 {offsets = [0, 0], sizes = [16, 33], strides = [1, 1]} : vector<16x1024xf32> to vector<16x33xf32>
    %345 = tpu.concatenate %343, %344 in 1 : vector<16x991xf32>, vector<16x33xf32> -> vector<16x1024xf32>
    %cst_99 = arith.constant 0.000000e+00 : f32
    %346 = vector.broadcast %cst_99 : f32 to vector<16x1024xf32>
    %347 = arith.select %57, %345, %346 : vector<16x1024xi1>, vector<16x1024xf32>
    %348 = tpu.concatenate %312, %317, %322, %327, %307, %332, %337, %342, %347 in 0 : vector<16x1024xf32>, vector<16x1024xf32>, vector<16x1024xf32>, vector<16x1024xf32>, vector<16x1024xf32>, vector<16x1024xf32>, vector<16x1024xf32>, vector<16x1024xf32>, vector<16x1024xf32> -> vector<144x1024xf32>
    %c0_100 = arith.constant 0 : index
    %c0_101 = arith.constant 0 : index
    %349 = vector.load %arg13[%c0_100, %c0_101] : memref<16x144xf32, #tpu.memory_space<vmem>>, vector<16x144xf32>
    %cst_102 = arith.constant dense<0.000000e+00> : vector<16x1024xf32>
    %350 = tpu.matmul %349, %348, %cst_102 {dimension_numbers = #tpu.dot_dimension_numbers<[1], [0], [0], [1], [0, 0, 1, 1], [], []>} : vector<16x144xf32>, vector<144x1024xf32>, vector<16x1024xf32> -> vector<16x1024xf32>
    %c0_103 = arith.constant 0 : index
    %c0_104 = arith.constant 0 : index
    %351 = vector.load %arg14[%c0_103, %c0_104] : memref<16x1xf32, #tpu.memory_space<vmem>>, vector<16x1xf32>
    %352 = vector.broadcast %351 : vector<16x1xf32> to vector<16x1024xf32>
    %353 = arith.addf %350, %352 : vector<16x1024xf32>
    %cst_105 = arith.constant 0.000000e+00 : f32
    %354 = vector.broadcast %cst_105 : f32 to vector<16x1024xf32>
    %355 = arith.maximumf %353, %354 : vector<16x1024xf32>
    %c0_106 = arith.constant 0 : index
    %c0_107 = arith.constant 0 : index
    %c0_108 = arith.constant 0 : index
    %356 = vector.load %arg19[%c0_106, %c0_107, %c0_108] : memref<1x16x1024xf32, #tpu.memory_space<vmem>>, vector<1x16x1024xf32>
    %357 = vector.shape_cast %356 : vector<1x16x1024xf32> to vector<16x1024xf32>
    %358 = vector.shape_cast %355 : vector<16x1024xf32> to vector<1x16x1024xf32>
    tpu.vector_store %arg19[%c0_106, %c0_107, %c0_108], %358 {strides = array<i32>} : memref<1x16x1024xf32, #tpu.memory_space<vmem>>, vector<1x16x1024xf32>,
    %c0_109 = arith.constant 0 : index
    %c0_110 = arith.constant 0 : index
    %359 = vector.load %arg15[%c0_109, %c0_110] : memref<16x16xf32, #tpu.memory_space<vmem>>, vector<16x16xf32>
    %cst_111 = arith.constant dense<0.000000e+00> : vector<16x1024xf32>
    %360 = tpu.matmul %359, %355, %cst_111 {dimension_numbers = #tpu.dot_dimension_numbers<[1], [0], [0], [1], [0, 0, 1, 1], [], []>} : vector<16x16xf32>, vector<16x1024xf32>, vector<16x1024xf32> -> vector<16x1024xf32>
    %c0_112 = arith.constant 0 : index
    %c0_113 = arith.constant 0 : index
    %361 = vector.load %arg16[%c0_112, %c0_113] : memref<16x1xf32, #tpu.memory_space<vmem>>, vector<16x1xf32>
    %362 = vector.broadcast %361 : vector<16x1xf32> to vector<16x1024xf32>
    %363 = arith.addf %360, %362 : vector<16x1024xf32>
    %c0_114 = arith.constant 0 : index
    %c0_115 = arith.constant 0 : index
    %c0_116 = arith.constant 0 : index
    %364 = vector.load %arg20[%c0_114, %c0_115, %c0_116] : memref<1x16x1024xf32, #tpu.memory_space<vmem>>, vector<1x16x1024xf32>
    %365 = vector.shape_cast %364 : vector<1x16x1024xf32> to vector<16x1024xf32>
    %366 = vector.shape_cast %363 : vector<16x1024xf32> to vector<1x16x1024xf32>
    tpu.vector_store %arg20[%c0_114, %c0_115, %c0_116], %366 {strides = array<i32>} : memref<1x16x1024xf32, #tpu.memory_space<vmem>>, vector<1x16x1024xf32>,
    return
  }
  func.func @transform_0(%arg0: i32) -> (i32, i32, i32) {
    %c0_i32 = arith.constant 0 : i32
    %c0_i32_0 = arith.constant 0 : i32
    %c0_i32_1 = arith.constant 0 : i32
    return %arg0, %c0_i32, %c0_i32_0 : i32, i32, i32
  }
  func.func @transform_1(%arg0: i32) -> (i32, i32) {
    %c0_i32 = arith.constant 0 : i32
    %c0_i32_0 = arith.constant 0 : i32
    %c0_i32_1 = arith.constant 0 : i32
    return %c0_i32, %c0_i32_0 : i32, i32
  }
  func.func @transform_2(%arg0: i32) -> (i32, i32) {
    %c0_i32 = arith.constant 0 : i32
    %c0_i32_0 = arith.constant 0 : i32
    %c0_i32_1 = arith.constant 0 : i32
    return %c0_i32, %c0_i32_0 : i32, i32
  }
  func.func @transform_3(%arg0: i32) -> (i32, i32) {
    %c0_i32 = arith.constant 0 : i32
    %c0_i32_0 = arith.constant 0 : i32
    %c0_i32_1 = arith.constant 0 : i32
    return %c0_i32, %c0_i32_0 : i32, i32
  }
  func.func @transform_4(%arg0: i32) -> (i32, i32) {
    %c0_i32 = arith.constant 0 : i32
    %c0_i32_0 = arith.constant 0 : i32
    %c0_i32_1 = arith.constant 0 : i32
    return %c0_i32, %c0_i32_0 : i32, i32
  }
  func.func @transform_5(%arg0: i32) -> (i32, i32) {
    %c0_i32 = arith.constant 0 : i32
    %c0_i32_0 = arith.constant 0 : i32
    %c0_i32_1 = arith.constant 0 : i32
    return %c0_i32, %c0_i32_0 : i32, i32
  }
  func.func @transform_6(%arg0: i32) -> (i32, i32) {
    %c0_i32 = arith.constant 0 : i32
    %c0_i32_0 = arith.constant 0 : i32
    %c0_i32_1 = arith.constant 0 : i32
    return %c0_i32, %c0_i32_0 : i32, i32
  }
  func.func @transform_7(%arg0: i32) -> (i32, i32) {
    %c0_i32 = arith.constant 0 : i32
    %c0_i32_0 = arith.constant 0 : i32
    %c0_i32_1 = arith.constant 0 : i32
    return %c0_i32, %c0_i32_0 : i32, i32
  }
  func.func @transform_8(%arg0: i32) -> (i32, i32) {
    %c0_i32 = arith.constant 0 : i32
    %c0_i32_0 = arith.constant 0 : i32
    %c0_i32_1 = arith.constant 0 : i32
    return %c0_i32, %c0_i32_0 : i32, i32
  }
  func.func @transform_9(%arg0: i32) -> (i32, i32) {
    %c0_i32 = arith.constant 0 : i32
    %c0_i32_0 = arith.constant 0 : i32
    %c0_i32_1 = arith.constant 0 : i32
    return %c0_i32, %c0_i32_0 : i32, i32
  }
  func.func @transform_10(%arg0: i32) -> (i32, i32) {
    %c0_i32 = arith.constant 0 : i32
    %c0_i32_0 = arith.constant 0 : i32
    %c0_i32_1 = arith.constant 0 : i32
    return %c0_i32, %c0_i32_0 : i32, i32
  }
  func.func @transform_11(%arg0: i32) -> (i32, i32) {
    %c0_i32 = arith.constant 0 : i32
    %c0_i32_0 = arith.constant 0 : i32
    %c0_i32_1 = arith.constant 0 : i32
    return %c0_i32, %c0_i32_0 : i32, i32
  }
  func.func @transform_12(%arg0: i32) -> (i32, i32) {
    %c0_i32 = arith.constant 0 : i32
    %c0_i32_0 = arith.constant 0 : i32
    %c0_i32_1 = arith.constant 0 : i32
    return %c0_i32, %c0_i32_0 : i32, i32
  }
  func.func @transform_13(%arg0: i32) -> (i32, i32) {
    %c0_i32 = arith.constant 0 : i32
    %c0_i32_0 = arith.constant 0 : i32
    %c0_i32_1 = arith.constant 0 : i32
    return %c0_i32, %c0_i32_0 : i32, i32
  }
  func.func @transform_14(%arg0: i32) -> (i32, i32) {
    %c0_i32 = arith.constant 0 : i32
    %c0_i32_0 = arith.constant 0 : i32
    %c0_i32_1 = arith.constant 0 : i32
    return %c0_i32, %c0_i32_0 : i32, i32
  }
  func.func @transform_15(%arg0: i32) -> (i32, i32) {
    %c0_i32 = arith.constant 0 : i32
    %c0_i32_0 = arith.constant 0 : i32
    %c0_i32_1 = arith.constant 0 : i32
    return %c0_i32, %c0_i32_0 : i32, i32
  }
  func.func @transform_16(%arg0: i32) -> (i32, i32, i32) {
    %c0_i32 = arith.constant 0 : i32
    %c0_i32_0 = arith.constant 0 : i32
    %c0_i32_1 = arith.constant 0 : i32
    return %arg0, %c0_i32, %c0_i32_0 : i32, i32, i32
  }
  func.func @transform_17(%arg0: i32) -> (i32, i32, i32) {
    %c0_i32 = arith.constant 0 : i32
    %c0_i32_0 = arith.constant 0 : i32
    %c0_i32_1 = arith.constant 0 : i32
    return %arg0, %c0_i32, %c0_i32_0 : i32, i32, i32
  }
  func.func @transform_18(%arg0: i32) -> (i32, i32, i32) {
    %c0_i32 = arith.constant 0 : i32
    %c0_i32_0 = arith.constant 0 : i32
    %c0_i32_1 = arith.constant 0 : i32
    return %arg0, %c0_i32, %c0_i32_0 : i32, i32, i32
  }
  func.func @transform_19(%arg0: i32) -> (i32, i32, i32) {
    %c0_i32 = arith.constant 0 : i32
    %c0_i32_0 = arith.constant 0 : i32
    %c0_i32_1 = arith.constant 0 : i32
    return %arg0, %c0_i32, %c0_i32_0 : i32, i32, i32
  }
}

</mosaic_0001>

<bundles_post_ra>
// kernel: fcn_head_forward.1
= control target key start
LH: loop header
LB: loop body
LE: loop exit
PB: predicated region body
PF: predicated region fallthrough
CT: control target
= control target key end

     0   :  { %s9702_s0 = inlined_call_operand.vmem [shape: f32[2,16,256], index: 0, kind: input, shape index: {}]   ;;  %s9703_s1 = inlined_call_operand.vmem [shape: f32[16,144], index: 1, kind: input, shape index: {}]   ;;  %s9704_s2 = inlined_call_operand.vmem [shape: f32[16,1], index: 2, kind: input, shape index: {}]   ;;  %s9705_s3 = inlined_call_operand.vmem [shape: f32[16,144], index: 3, kind: input, shape index: {}]   ;;  %s9706_s4 = inlined_call_operand.vmem [shape: f32[16,1], index: 4, kind: input, shape index: {}]   ;;  %s9707_s5 = inlined_call_operand.vmem [shape: f32[16,144], index: 5, kind: input, shape index: {}]   ;;  %s9708_s6 = inlined_call_operand.vmem [shape: f32[16,1], index: 6, kind: input, shape index: {}]   ;;  %s9709_s7 = inlined_call_operand.vmem [shape: f32[16,144], index: 7, kind: input, shape index: {}]   ;;  %s9710_s8 = inlined_call_operand.vmem [shape: f32[16,1], index: 8, kind: input, shape index: {}]   ;;  %s9711_s9 = inlined_call_operand.vmem [shape: f32[256,1024], index: 9, kind: input, shape index: {}]   ;;  %s9712_s10 = inlined_call_operand.vmem [shape: f32[16,144], index: 10, kind: input, shape index: {}]   ;;  %s9713_s11 = inlined_call_operand.vmem [shape: f32[16,1], index: 11, kind: input, shape index: {}]   ;;  %s9714_s12 = inlined_call_operand.vmem [shape: f32[16,144], index: 12, kind: input, shape index: {}]   ;;  %s9715_s13 = inlined_call_operand.vmem [shape: f32[16,1], index: 13, kind: input, shape index: {}]   ;;  %s9716_s14 = inlined_call_operand.vmem [shape: f32[16,16], index: 14, kind: input, shape index: {}]   ;;  %s9717_s15 = inlined_call_operand.vmem [shape: f32[16,1], index: 15, kind: input, shape index: {}]   ;;  %s9718_s16 = inlined_call_operand.vmem [shape: f32[2,16,256], index: 16, kind: output, shape index: {0}]   ;;  %s9719_s17 = inlined_call_operand.vmem [shape: f32[2,16,256], index: 17, kind: output, shape index: {1}]   ;;  %s9720_s18 = inlined_call_operand.vmem [shape: f32[2,16,1024], index: 18, kind: output, shape index: {2}]   ;;  %s9721_s19 = inlined_call_operand.vmem [shape: f32[2,16,1024], index: 19, kind: output, shape index: {3}]  }
   0x1   :  { %9896 = sst [smem:[#allocation55_spill]] %s9702_s0  ;;  %s5637_s0 = smov 0  }
   0x2   :  { %9897 = sst [smem:[#allocation56_spill]] %s9703_s1 }
   0x3   :  { %9898 = sst [smem:[#allocation57_spill]] %s9704_s2 }
   0x4   :  { %9899 = sst [smem:[#allocation58_spill]] %s9705_s3 }
   0x5   :  { %9900 = sst [smem:[#allocation59_spill]] %s9706_s4 }
   0x6   :  { %9901 = sst [smem:[#allocation60_spill]] %s9708_s6 }
   0x7   :  { %9902 = sst [smem:[#allocation61_spill]] %s9718_s16 }
   0x8 LB: > { %s5121_s30 = sadd.s32 4294967295, %s5519_s0   ;;  %p5125_p0 = scmp.ge.s32.totalorder %s5519_s0, 1  ;;  %s5519_s0 = sphi %s5637_s0, %s30_s0  }
   0x9   : > { %p544_p1 = scmp.lt.s32.totalorder %s5519_s0, 3 }
   0xb   : > { %p545_p2 = pnand %p5125_p0, %p544_p1 }
   0xd   : > { %548 = sbr.rel (%p545_p2) target bundleno = 3015 (0xbc7), region = 84 }
  0x12   : > { %p615_p3 = scmp.lt.s32.totalorder %s5121_s30, 1  ;;  %s9903_s22 = sld [smem:[#allocation55_spill]]  ;;  %vm9799_vm0 = vcmask 130048   ;;  %v5528_v5 = vmov 0   ;;  %v640_v8 = vlaneseq  ;;  %vm1003_vm1 = vcmask 916480   ;;  %v2108_v35 = vld [vmem:[%s9711_s9 + $0x358] sm:$0xff] }
  0x13   : > { %s9739_s23 = smov 112   ;;  %s9737_s24 = smov 113   ;;  %5512 = vset.pattern.permute.xlu1 %v5528_v5  ;;  %5511 = vset.pattern.permute.xlu0 %v5528_v5  ;;  %vm9742_vm4 = vcmask 924672   ;;  %vm9741_vm7 = vcmask 1039360   ;;  %vm9744_vm10 = vcmask 7168   ;;  %vm9730_vm12 = vcmask 121856  }
  0x14   : > { %s10483_s30 = smov (!%p615_p3, %s5121_s30), 1  ;;  %s9735_s25 = smov 127   ;;  %v5736_v9 = vand.u32 127, %v640_v8  ;;  %vm867_vm14 = vcmask 138240   ;;  %v2124_v5 = vld [vmem:[%s9711_s9 + $0x3d8] sm:$0xff] }
  0x15   : > { %s5648_s20 = sshll.u32 %s10483_s30, 5  ;;  %s9745_s3 = smov 1  }
  0x16   : > { %s9733_s26 = smov 15   ;;  %s9727_s27 = smov 16   ;;  %9906 = vst [vmem:[#allocation2_spill] sm:$0xff] %v5736_v9  ;;  %v5739_v10 = vadd.s32 128, %v5736_v9  ;;  %v647_v17 = vand.u32 15, %v5736_v9  ;;  %vm9729_vm11 = vcmp.ge.s32.totalorder %v5736_v9, 16 }
  0x17   : > { %s9725_s28 = smov 17   ;;  %s9904_s1 = sld [smem:[#allocation56_spill]] }
  0x18   : > { %s619_s2 = scalar_lea.vmem %s9903_s22, %s5648_s20  ;;  %s9731_s22 = smov 111   ;;  %v654_v13 = vand.u32 15, %v5739_v10  ;;  %vm9743_vm2 = vcmp.lt.s32.totalorder %v5739_v10, 240  ;;  %vm5764_vm6 = vcmp.ne.s32.totalorder %v647_v17, 0  ;;  %vm5784_vm9 = vcmp.ne.s32.totalorder %v647_v17, 15 }
  0x19   : > { %v5654_v0 = vld [vmem:[%s619_s2 + $0x10] sm:$0xff]  ;;  %v5656_v1 = vld [vmem:[%s619_s2] sm:$0xff]  ;;  %v5662_v2 = vld [vmem:[%s619_s2 + $0x18] sm:$0xff]  ;;  %s9905_s21 = sld [smem:[#allocation57_spill]] }
  0x1a   : > { %999 = vrot.lane.b32.xlu0 %v5654_v0, %s9739_s23  ;;  %995 = vrot.lane.b32.xlu1 %v5656_v1, %s9739_s23  ;;  %v5664_v3 = vld [vmem:[%s619_s2 + $0x8] sm:$0xff]  ;;  %vm5743_vm3 = vcmp.ne.s32.totalorder %v654_v13, 0  ;;  %vm5778_vm8 = vcmp.ne.s32.totalorder %v654_v13, 15  ;;  %vm5821_vm13 = vmand %vm9729_vm11, %vm5784_vm9  ;;  %s9926_s29 = sld [smem:[#allocation58_spill]]  ;;  %s9939_s2 = smov 127  }
  0x1b   : > { %vm5757_vm5 = vmand %vm9743_vm2, %vm5743_vm3  ;;  %s9928_s4 = sld [smem:[#allocation59_spill]] }
  0x1c   : > { %vm5849_vm15 = vmand %vm9729_vm11, %vm5764_vm6  ;;  %s9935_s16 = sld [smem:[#allocation61_spill]] }
  0x1d   : > { %v1042_v4 = vld [vmem:[%s9904_s1 + $0x8] sm:$0xff]  ;;  %s9940_s6 = sld [smem:[#allocation60_spill]] }
  0x1e   : > { %1001 = vrot.lane.b32.xlu0 %v5662_v2, %s9739_s23  ;;  %997 = vrot.lane.b32.xlu1 %v5664_v3, %s9739_s23 }
  0x1f   : > { %5164 = vmatprep.mubr.msk.f32.mxu0 %vm9799_vm0, %v1042_v4  ;;  %v1045_v6 = vld [vmem:[%s9905_s21] sm:$0xff]  ;;  %v1046_v7 = vld [vmem:[%s9905_s21 + $0x8] sm:$0xff] }
  0x22   : > { %976 = vrot.lane.b32.xlu0 %v5654_v0, %s9737_s24  ;;  %978 = vrot.lane.b32.xlu1 %v5662_v2, %s9737_s24 }
  0x26   : > { %972 = vrot.lane.b32.xlu0 %v5656_v1, %s9737_s24  ;;  %974 = vrot.lane.b32.xlu1 %v5664_v3, %s9737_s24 }
  0x2a   : > { %953 = vrot.lane.b32.xlu0 %v5654_v0, %s9735_s25  ;;  %955 = vrot.lane.b32.xlu1 %v5662_v2, %s9735_s25 }
  0x2e   : > { %949 = vrot.lane.b32.xlu0 %v5656_v1, %s9735_s25  ;;  %951 = vrot.lane.b32.xlu1 %v5664_v3, %s9735_s25 }
  0x32   : > { %928 = vrot.lane.b32.xlu0 %v5662_v2, %s9745_s3  ;;  %934 = vrot.lane.b32.xlu1 %v5654_v0, %s9745_s3 }
  0x36   : > { %926 = vrot.lane.b32.xlu0 %v5664_v3, %s9745_s3  ;;  %932 = vrot.lane.b32.xlu1 %v5656_v1, %s9745_s3 }
  0x3a   : > { %905 = vrot.lane.b32.xlu0 %v5662_v2, %s9733_s26  ;;  %911 = vrot.lane.b32.xlu1 %v5654_v0, %s9733_s26 }
  0x3e   : > { %903 = vrot.lane.b32.xlu0 %v5664_v3, %s9733_s26  ;;  %909 = vrot.lane.b32.xlu1 %v5656_v1, %s9733_s26  ;;  %s9923_s26 = smov 15  }
  0x42   : > { %882 = vrot.lane.b32.xlu0 %v5662_v2, %s9727_s27  ;;  %888 = vrot.lane.b32.xlu1 %v5654_v0, %s9727_s27 }
  0x46   : > { %880 = vrot.lane.b32.xlu0 %v5664_v3, %s9727_s27  ;;  %886 = vrot.lane.b32.xlu1 %v5656_v1, %s9727_s27  ;;  %s9925_s27 = smov 17  }
  0x4a   : > { %857 = vrot.lane.b32.xlu0 %v5662_v2, %s9725_s28  ;;  %865 = vrot.lane.b32.xlu1 %v5654_v0, %s9725_s28 }
  0x4e   : > { %855 = vrot.lane.b32.xlu0 %v5664_v3, %s9725_s28  ;;  %863 = vrot.lane.b32.xlu1 %v5656_v1, %s9725_s28  ;;  %s9938_s28 = smov 113  }
  0x52   : > { %1022 = vrot.lane.b32.xlu0 %v5654_v0, %s9731_s22  ;;  %1024 = vrot.lane.b32.xlu1 %v5662_v2, %s9731_s22 }
  0x56   : > { %1018 = vrot.lane.b32.xlu0 %v5656_v1, %s9731_s22  ;;  %1020 = vrot.lane.b32.xlu1 %v5664_v3, %s9731_s22  ;;  %s9924_s22 = smov 16  }
  0x5a   : > { %1049 = vperm.xlu1 %5512, %v1045_v6   ;;  %1054 = vperm.xlu0 %5511, %v1046_v7  }
  0x8c   : > { %v1000_v11 = vpop.permute.xlu0 %999  ;;  %v996_v12 = vpop.permute.xlu1 %995 }
  0x90   : > { %v1002_v14 = vpop.permute.xlu0 %1001  ;;  %v998_v15 = vpop.permute.xlu1 %997 }
  0x91   : > { %v1013_v18 = vsel %vm1003_vm1, %v1002_v14, %v1000_v11  ;;  %v1005_v19 = vsel %vm1003_vm1, %v1000_v11, %v1002_v14  ;;  %v1012_v20 = vsel %vm1003_vm1, %v998_v15, %v996_v12  ;;  %v1004_v24 = vsel %vm1003_vm1, %v996_v12, %v998_v15  ;;  %v2115_v14 = vld [vmem:[%s9711_s9 + $0x390] sm:$0xff] }
  0x92   : > { %5136 = vmatprep.subr.msk.mxu0 %vm9743_vm2, %v1013_v18 }
  0x93   : > { %1064 = vmatpush1.msra.mxu0 %v1005_v19 }
  0x94   : > { %v977_v22 = vpop.permute.xlu0 %976  ;;  %5137 = vmatprep.subr.msk.mxu0 %vm9743_vm2, %v1012_v20  ;;  %v979_v23 = vpop.permute.xlu1 %978 }
  0x95   : > { %1066 = vmatpush1.msra.mxu0 %v1004_v24  ;;  %v990_v26 = vsel %vm9742_vm4, %v979_v23, %v977_v22  ;;  %v982_v27 = vsel %vm9742_vm4, %v977_v22, %v979_v23 }
  0x96   : > { %5138 = vmatprep.subr.msk.mxu0 %vm5757_vm5, %v990_v26  ;;  %v1041_v26 = vld [vmem:[%s9904_s1] sm:$0xff] }
  0x97   : > { %5139 = vmatpush1.msk.msra.mxu0 %vm5764_vm6, %v982_v27  ;;  %v1044_v27 = vld [vmem:[%s9904_s1 + $0x18] sm:$0xff] }
  0x98   : > { %v973_v28 = vpop.permute.xlu0 %972  ;;  %v975_v29 = vpop.permute.xlu1 %974 }
  0x99   : > { %v989_v30 = vsel %vm9742_vm4, %v975_v29, %v973_v28  ;;  %v981_v31 = vsel %vm9742_vm4, %v973_v28, %v975_v29  ;;  %v1043_v28 = vld [vmem:[%s9904_s1 + $0x10] sm:$0xff]  ;;  %s9937_s1 = smov 112  }
  0x9a   : > { %5140 = vmatprep.subr.msk.mxu0 %vm5757_vm5, %v989_v30 }
  0x9b   : > { %5141 = vmatpush1.msk.msra.mxu0 %vm5764_vm6, %v981_v31 }
  0x9c   : > { %v954_v33 = vpop.permute.xlu0 %953  ;;  %v956_v34 = vpop.permute.xlu1 %955 }
  0x9d   : > { %v967_v36 = vsel %vm9741_vm7, %v956_v34, %v954_v33  ;;  %v959_v37 = vsel %vm9741_vm7, %v954_v33, %v956_v34 }
  0x9e   : > { %5142 = vmatprep.subr.msk.mxu0 %vm5778_vm8, %v967_v36 }
  0x9f   : > { %5143 = vmatpush1.msk.msra.mxu0 %vm5784_vm9, %v959_v37 }
  0xa0   : > { %v950_v38 = vpop.permute.xlu0 %949  ;;  %v952_v39 = vpop.permute.xlu1 %951 }
  0xa1   : > { %v966_v40 = vsel %vm9741_vm7, %v952_v39, %v950_v38  ;;  %v958_v41 = vsel %vm9741_vm7, %v950_v38, %v952_v39 }
  0xa2   : > { %5144 = vmatprep.subr.msk.mxu0 %vm5778_vm8, %v966_v40 }
  0xa3   : > { %5145 = vmatpush1.msk.msra.mxu0 %vm5784_vm9, %v958_v41 }
  0xa4   : > { %v929_v42 = vpop.permute.xlu0 %928  ;;  %1075 = vmatprep.subr.mxu0 %v5662_v2  ;;  %v935_v43 = vpop.permute.xlu1 %934 }
  0xa5   : > { %1076 = vmatpush1.msra.mxu0 %v5654_v0  ;;  %v938_v44 = vsel %vm9744_vm10, %v935_v43, %v929_v42  ;;  %v944_v47 = vsel %vm9744_vm10, %v929_v42, %v935_v43 }
  0xa6   : > { %1077 = vmatprep.subr.mxu0 %v5664_v3 }
  0xa7   : > { %1078 = vmatpush1.msra.mxu0 %v5656_v1 }
  0xa8   : > { %v927_v45 = vpop.permute.xlu0 %926  ;;  %5146 = vmatprep.subr.msk.mxu0 %vm5743_vm3, %v938_v44  ;;  %v933_v46 = vpop.permute.xlu1 %932 }
  0xa9   : > { %5147 = vmatpush1.msk.msra.mxu0 %vm5764_vm6, %v944_v47  ;;  %v937_v48 = vsel %vm9744_vm10, %v933_v46, %v927_v45  ;;  %v943_v49 = vsel %vm9744_vm10, %v927_v45, %v933_v46  ;;  %v1325_v45 = vld [vmem:[%s9926_s29 + $0x8] sm:$0xff]  ;;  %v1328_v46 = vld [vmem:[%s9928_s4] sm:$0xff] }
  0xaa   : > { %5148 = vmatprep.subr.msk.mxu0 %vm5743_vm3, %v937_v48  ;;  %5194 = vmatprep.mubr.msk.f32.mxu1 %vm9799_vm0, %v1325_v45  ;;  %v1329_v47 = vld [vmem:[%s9928_s4 + $0x8] sm:$0xff]  ;;  %s624_s4 = scalar_lea.vmem %s9935_s16, %s5648_s20  ;;  %s5533_s16 = smov 31  }
  0xab   : > { %5149 = vmatpush1.msk.msra.mxu0 %vm5764_vm6, %v943_v49 }
  0xac   : > { %v906_v50 = vpop.permute.xlu0 %905  ;;  %v912_v51 = vpop.permute.xlu1 %911 }
  0xad   : > { %v915_v53 = vsel %vm9730_vm12, %v912_v51, %v906_v50  ;;  %v921_v54 = vsel %vm9730_vm12, %v906_v50, %v912_v51 }
  0xae   : > { %5150 = vmatprep.subr.msk.mxu0 %vm5778_vm8, %v915_v53 }
  0xaf   : > { %5151 = vmatpush1.msk.msra.mxu0 %vm5821_vm13, %v921_v54 }
  0xb0   : > { %v904_v55 = vpop.permute.xlu0 %903  ;;  %v910_v56 = vpop.permute.xlu1 %909 }
  0xb1   : > { %v914_v57 = vsel %vm9730_vm12, %v910_v56, %v904_v55  ;;  %v920_v58 = vsel %vm9730_vm12, %v904_v55, %v910_v56  ;;  %vm5869_vm12 = vmand %vm9743_vm2, %vm5778_vm8 }
  0xb2   : > { %5152 = vmatprep.subr.msk.mxu0 %vm5778_vm8, %v914_v57 }
  0xb3   : > { %5153 = vmatpush1.msk.msra.mxu0 %vm5821_vm13, %v920_v58 }
  0xb4   : > { %v883_v59 = vpop.permute.xlu0 %882  ;;  %v889_v60 = vpop.permute.xlu1 %888 }
  0xb5   : > { %v892_v61 = vsel %vm9799_vm0, %v889_v60, %v883_v59  ;;  %v898_v62 = vsel %vm9799_vm0, %v883_v59, %v889_v60 }
  0xb6   : > { %1087 = vmatprep.subr.mxu0 %v892_v61 }
  0xb7   : > { %5154 = vmatpush1.msk.msra.mxu0 %vm9729_vm11, %v898_v62 }
  0xb8   : > { %v881_v63 = vpop.permute.xlu0 %880  ;;  %v887_v0 = vpop.permute.xlu1 %886 }
  0xb9   : > { %v891_v1 = vsel %vm9799_vm0, %v887_v0, %v881_v63  ;;  %v897_v2 = vsel %vm9799_vm0, %v881_v63, %v887_v0 }
  0xba   : > { %1089 = vmatprep.subr.mxu0 %v891_v1 }
  0xbb   : > { %5155 = vmatpush1.msk.msra.mxu0 %vm9729_vm11, %v897_v2  ;;  %vm9748_vm11 = vcmask 908288  }
  0xbc   : > { %v858_v3 = vpop.permute.xlu0 %857  ;;  %v866_v4 = vpop.permute.xlu1 %865 }
  0xbd   : > { %v869_v6 = vsel %vm867_vm14, %v866_v4, %v858_v3  ;;  %v875_v7 = vsel %vm867_vm14, %v858_v3, %v866_v4 }
  0xbe   : > { %5156 = vmatprep.subr.msk.mxu0 %vm5743_vm3, %v869_v6 }
  0xbf   : > { %5157 = vmatpush1.msk.msra.mxu0 %vm5849_vm15, %v875_v7 }
  0xc0   : > { %v856_v8 = vpop.permute.xlu0 %855  ;;  %v864_v11 = vpop.permute.xlu1 %863 }
  0xc1   : > { %v868_v12 = vsel %vm867_vm14, %v864_v11, %v856_v8  ;;  %v874_v13 = vsel %vm867_vm14, %v856_v8, %v864_v11 }
  0xc2   : > { %5158 = vmatprep.subr.msk.mxu0 %vm5743_vm3, %v868_v12 }
  0xc3   : > { %5159 = vmatpush1.msk.msra.mxu0 %vm5849_vm15, %v874_v13 }
  0xc4   : > { %v1023_v15 = vpop.permute.xlu0 %1022  ;;  %v1025_v17 = vpop.permute.xlu1 %1024 }
  0xc5   : > { %v1036_v18 = vsel %vm9748_vm11, %v1025_v17, %v1023_v15  ;;  %v1028_v19 = vsel %vm9748_vm11, %v1023_v15, %v1025_v17 }
  0xc6   : > { %5160 = vmatprep.subr.msk.mxu0 %vm5869_vm12, %v1036_v18 }
  0xc7   : > { %5161 = vmatpush2.msk.msra.mxu0 %vm5784_vm9, %v1028_v19 }
  0xc8   : > { %v1019_v20 = vpop.permute.xlu0 %1018  ;;  %v1021_v22 = vpop.permute.xlu1 %1020 }
  0xc9   : > { %v1035_v23 = vsel %vm9748_vm11, %v1021_v22, %v1019_v20  ;;  %v1027_v24 = vsel %vm9748_vm11, %v1019_v20, %v1021_v22 }
  0xca   : > { %5162 = vmatprep.subr.msk.mxu0 %vm5869_vm12, %v1035_v23 }
  0xcb   : > { %5163 = vmatpush2.msk.msra.mxu0 %vm5784_vm9, %v1027_v24 }
  0xcc   : > { %1128 = vmatmul.mubr.f32.vlgmr.msra.gmra.mxu0 %v1041_v26 }
  0xcd   : > { %5165 = vmatprep.mubr.msk.f32.mxu0 %vm9799_vm0, %v1044_v27 }
  0xd0   : > { %1134 = vmatmul.mubr.f32.gmra.mxu0 %v1043_v28 }
  0xd5   : > { %v1050_v29 = vpop.permute.xlu1 %1049  ;;  %v1055_v38 = vpop.permute.xlu0 %1054 }
 0x18c   : > { %v1129_v30 = vpop.f32.mrf.mxu0 }
 0x18d   : > { %v1130_v31 = vadd.f32 %v1129_v30, %v1050_v29 }
 0x18e   : > { %v1131_v33 = vpop.f32.mrf.mxu0 }
 0x18f   : > { %v5895_v34 = vmax.f32 %v1130_v31, 0.0  ;;  %v1132_v36 = vadd.f32 %v1131_v33, %v1050_v29 }
 0x190   : > { %v1135_v39 = vpop.f32.mrf.mxu0 }
 0x191   : > { %1220 = vrot.lane.b32.xlu0 %v5895_v34, %s9745_s3  ;;  %1280 = vrot.lane.b32.xlu1 %v5895_v34, %s9739_s23  ;;  %v5901_v37 = vmax.f32 %v1132_v36, 0.0  ;;  %v1136_v40 = vadd.f32 %v1135_v39, %v1055_v38 }
 0x192   : > { %v1137_v42 = vpop.f32.mrf.mxu0 }
 0x193   : > { %v5911_v41 = vmax.f32 %v1136_v40, 0.0  ;;  %v1138_v43 = vadd.f32 %v1137_v42, %v1055_v38 }
 0x195   : > { %1282 = vrot.lane.b32.xlu0 %v5901_v37, %s9739_s23  ;;  %1258 = vrot.lane.b32.xlu1 %v5895_v34, %s9737_s24  ;;  %v5925_v44 = vmax.f32 %v1138_v43, 0.0 }
 0x199   : > { %1260 = vrot.lane.b32.xlu0 %v5901_v37, %s9737_s24  ;;  %1236 = vrot.lane.b32.xlu1 %v5895_v34, %s9735_s25 }
 0x19d   : > { %1238 = vrot.lane.b32.xlu0 %v5901_v37, %s9735_s25  ;;  %1214 = vrot.lane.b32.xlu1 %v5901_v37, %s9745_s3 }
 0x1a1   : > { %1222 = vrot.lane.b32.xlu0 %v5911_v41, %s9745_s3  ;;  %1192 = vrot.lane.b32.xlu1 %v5901_v37, %s9923_s26 }
 0x1a5   : > { %1200 = vrot.lane.b32.xlu0 %v5911_v41, %s9923_s26  ;;  %1284 = vrot.lane.b32.xlu1 %v5911_v41, %s9739_s23 }
 0x1a9   : > { %1286 = vrot.lane.b32.xlu0 %v5925_v44, %s9739_s23  ;;  %1262 = vrot.lane.b32.xlu1 %v5911_v41, %s9737_s24  ;;  %s6853_s23 = scalar_lea.vmem %s9719_s17, %s5648_s20 }
 0x1ad   : > { %1264 = vrot.lane.b32.xlu0 %v5925_v44, %s9737_s24  ;;  %1240 = vrot.lane.b32.xlu1 %v5911_v41, %s9735_s25  ;;  %s5535_s24 = smov 33  }
 0x1b1   : > { %1242 = vrot.lane.b32.xlu0 %v5925_v44, %s9735_s25  ;;  %1170 = vrot.lane.b32.xlu1 %v5901_v37, %s9924_s22  ;;  %s9927_s25 = smov 111  }
 0x1b5   : > { %1198 = vrot.lane.b32.xlu0 %v5895_v34, %s9923_s26  ;;  %1146 = vrot.lane.b32.xlu1 %v5901_v37, %s9925_s27 }
 0x1b9   : > { %1178 = vrot.lane.b32.xlu0 %v5911_v41, %s9924_s22  ;;  %1216 = vrot.lane.b32.xlu1 %v5925_v44, %s9745_s3  ;;  %s9936_s3 = smov 1  }
 0x1bd   : > { %1176 = vrot.lane.b32.xlu0 %v5895_v34, %s9924_s22  ;;  %1194 = vrot.lane.b32.xlu1 %v5925_v44, %s9923_s26 }
 0x1c1   : > { %1156 = vrot.lane.b32.xlu0 %v5911_v41, %s9925_s27  ;;  %1172 = vrot.lane.b32.xlu1 %v5925_v44, %s9924_s22 }
 0x1c5   : > { %1154 = vrot.lane.b32.xlu0 %v5895_v34, %s9925_s27  ;;  %1148 = vrot.lane.b32.xlu1 %v5925_v44, %s9925_s27 }
 0x1c9   : > { %1308 = vrot.lane.b32.xlu0 %v5925_v44, %s9927_s25  ;;  %1306 = vrot.lane.b32.xlu1 %v5911_v41, %s9927_s25 }
 0x1cd   : > { %1304 = vrot.lane.b32.xlu0 %v5901_v37, %s9927_s25  ;;  %1302 = vrot.lane.b32.xlu1 %v5895_v34, %s9927_s25 }
 0x1d1   : > { %1332 = vperm.xlu0 %5511, %v1328_v46   ;;  %1337 = vperm.xlu1 %5512, %v1329_v47  }
 0x203   : > { %v1221_v48 = vpop.permute.xlu0 %1220  ;;  %v1281_v49 = vpop.permute.xlu1 %1280 }
 0x207   : > { %v1283_v50 = vpop.permute.xlu0 %1282  ;;  %v1259_v51 = vpop.permute.xlu1 %1258 }
 0x208   : > { %v1296_v1 = vsel %vm1003_vm1, %v1283_v50, %v1281_v49  ;;  %v1288_v4 = vsel %vm1003_vm1, %v1281_v49, %v1283_v50 }
 0x20b   : > { %v1261_v53 = vpop.permute.xlu0 %1260  ;;  %v1237_v54 = vpop.permute.xlu1 %1236 }
 0x20c   : > { %v1274_v8 = vsel %vm9742_vm4, %v1261_v53, %v1259_v51  ;;  %v1266_v13 = vsel %vm9742_vm4, %v1259_v51, %v1261_v53 }
 0x20f   : > { %v1239_v55 = vpop.permute.xlu0 %1238  ;;  %v1215_v56 = vpop.permute.xlu1 %1214 }
 0x210   : > { %v1252_v18 = vsel %vm9741_vm7, %v1239_v55, %v1237_v54  ;;  %v1244_v22 = vsel %vm9741_vm7, %v1237_v54, %v1239_v55  ;;  %v1224_v28 = vsel %vm9744_vm10, %v1221_v48, %v1215_v56  ;;  %v1230_v31 = vsel %vm9744_vm10, %v1215_v56, %v1221_v48 }
 0x213   : > { %v1223_v57 = vpop.permute.xlu0 %1222  ;;  %v1193_v58 = vpop.permute.xlu1 %1192 }
 0x217   : > { %v1201_v59 = vpop.permute.xlu0 %1200  ;;  %v1285_v60 = vpop.permute.xlu1 %1284 }
 0x21b   : > { %v1287_v61 = vpop.permute.xlu0 %1286  ;;  %v1263_v62 = vpop.permute.xlu1 %1262 }
 0x21c   : > { %v1297_v63 = vsel %vm1003_vm1, %v1287_v61, %v1285_v60  ;;  %v1289_v0 = vsel %vm1003_vm1, %v1285_v60, %v1287_v61  ;;  %v1327_v60 = vld [vmem:[%s9926_s29 + $0x18] sm:$0xff]  ;;  %v1326_v61 = vld [vmem:[%s9926_s29 + $0x10] sm:$0xff] }
 0x21d   : > { %5166 = vmatprep.subr.msk.mxu1 %vm9743_vm2, %v1297_v63 }
 0x21e   : > { %1347 = vmatpush1.msra.mxu1 %v1289_v0 }
 0x21f   : > { %v1265_v2 = vpop.permute.xlu0 %1264  ;;  %5167 = vmatprep.subr.msk.mxu1 %vm9743_vm2, %v1296_v1  ;;  %v1241_v3 = vpop.permute.xlu1 %1240 }
 0x220   : > { %1349 = vmatpush1.msra.mxu1 %v1288_v4  ;;  %v1275_v6 = vsel %vm9742_vm4, %v1265_v2, %v1263_v62  ;;  %v1267_v7 = vsel %vm9742_vm4, %v1263_v62, %v1265_v2 }
 0x221   : > { %5168 = vmatprep.subr.msk.mxu1 %vm5757_vm5, %v1275_v6 }
 0x222   : > { %5169 = vmatpush1.msk.msra.mxu1 %vm5764_vm6, %v1267_v7 }
 0x223   : > { %v1243_v11 = vpop.permute.xlu0 %1242  ;;  %5170 = vmatprep.subr.msk.mxu1 %vm5757_vm5, %v1274_v8  ;;  %v1171_v12 = vpop.permute.xlu1 %1170 }
 0x224   : > { %5171 = vmatpush1.msk.msra.mxu1 %vm5764_vm6, %v1266_v13  ;;  %v1253_v15 = vsel %vm9741_vm7, %v1243_v11, %v1241_v3  ;;  %v1245_v17 = vsel %vm9741_vm7, %v1241_v3, %v1243_v11  ;;  %vm9929_vm7 = vcmask 121856  }
 0x225   : > { %5172 = vmatprep.subr.msk.mxu1 %vm5778_vm8, %v1253_v15  ;;  %vm9930_vm4 = vmmov %vm9929_vm7 }
 0x226   : > { %5173 = vmatpush1.msk.msra.mxu1 %vm5784_vm9, %v1245_v17  ;;  %vm9931_vm2 = vmmov %vm9930_vm4  ;;  %v1612_v17 = vld [vmem:[%s9707_s5 + $0x8] sm:$0xff] }
 0x227   : > { %v1199_v19 = vpop.permute.xlu0 %1198  ;;  %5174 = vmatprep.subr.msk.mxu1 %vm5778_vm8, %v1252_v18  ;;  %v1147_v20 = vpop.permute.xlu1 %1146  ;;  %5224 = vmatprep.mubr.msk.f32.mxu0 %vm9799_vm0, %v1612_v17  ;;  %v1615_v18 = vld [vmem:[%s9940_s6] sm:$0xff] }
 0x228   : > { %5175 = vmatpush1.msk.msra.mxu1 %vm5784_vm9, %v1244_v22  ;;  %v1202_v36 = vsel %vm9931_vm2, %v1199_v19, %v1193_v58 }
 0x229   : > { %1358 = vmatprep.subr.mxu1 %v5925_v44 }
 0x22a   : > { %1359 = vmatpush1.msra.mxu1 %v5911_v41 }
 0x22b   : > { %v1179_v23 = vpop.permute.xlu0 %1178  ;;  %1360 = vmatprep.subr.mxu1 %v5901_v37  ;;  %v1217_v24 = vpop.permute.xlu1 %1216 }
 0x22c   : > { %1361 = vmatpush1.msra.mxu1 %v5895_v34  ;;  %v1225_v26 = vsel %vm9744_vm10, %v1223_v57, %v1217_v24  ;;  %v1231_v27 = vsel %vm9744_vm10, %v1217_v24, %v1223_v57  ;;  %vm9932_vm10 = vmmov %vm9931_vm2 }
 0x22d   : > { %5176 = vmatprep.subr.msk.mxu1 %vm5743_vm3, %v1225_v26  ;;  %v1208_v39 = vsel %vm9932_vm10, %v1193_v58, %v1199_v19  ;;  %v1616_v19 = vld [vmem:[%s9940_s6 + $0x8] sm:$0xff] }
 0x22e   : > { %5177 = vmatpush1.msk.msra.mxu1 %vm5764_vm6, %v1231_v27 }
 0x22f   : > { %v1177_v29 = vpop.permute.xlu0 %1176  ;;  %5178 = vmatprep.subr.msk.mxu1 %vm5743_vm3, %v1224_v28  ;;  %v1195_v30 = vpop.permute.xlu1 %1194 }
 0x230   : > { %5179 = vmatpush1.msk.msra.mxu1 %vm5764_vm6, %v1230_v31  ;;  %v1203_v33 = vsel %vm9929_vm7, %v1201_v59, %v1195_v30  ;;  %v1209_v34 = vsel %vm9930_vm4, %v1195_v30, %v1201_v59  ;;  %vm9933_vm4 = vcmp.ge.s32.totalorder %v5736_v9, 16  ;;  %v1180_v42 = vsel %vm9799_vm0, %v1177_v29, %v1171_v12  ;;  %v1324_v59 = vld [vmem:[%s9926_s29] sm:$0xff] }
 0x231   : > { %5180 = vmatprep.subr.msk.mxu1 %vm5778_vm8, %v1203_v33  ;;  %v1186_v45 = vsel %vm9799_vm0, %v1171_v12, %v1177_v29  ;;  %vm9934_vm2 = vmmov %vm9933_vm4  ;;  %vm9941_vm7 = vcmp.lt.s32.totalorder %v5739_v10, 240 }
 0x232   : > { %5181 = vmatpush1.msk.msra.mxu1 %vm5821_vm13, %v1209_v34  ;;  %vm9942_vm10 = vmmov %vm9941_vm7 }
 0x233   : > { %v1157_v37 = vpop.permute.xlu0 %1156  ;;  %5182 = vmatprep.subr.msk.mxu1 %vm5778_vm8, %v1202_v36  ;;  %v1173_v38 = vpop.permute.xlu1 %1172 }
 0x234   : > { %5183 = vmatpush1.msk.msra.mxu1 %vm5821_vm13, %v1208_v39  ;;  %v1181_v40 = vsel %vm9799_vm0, %v1179_v23, %v1173_v38  ;;  %v1187_v41 = vsel %vm9799_vm0, %v1173_v38, %v1179_v23 }
 0x235   : > { %1370 = vmatprep.subr.mxu1 %v1181_v40 }
 0x236   : > { %5184 = vmatpush1.msk.msra.mxu1 %vm9933_vm4, %v1187_v41  ;;  %vm9943_vm4 = vcmask 924672  }
 0x237   : > { %v1155_v43 = vpop.permute.xlu0 %1154  ;;  %1372 = vmatprep.subr.mxu1 %v1180_v42  ;;  %v1149_v44 = vpop.permute.xlu1 %1148 }
 0x238   : > { %5185 = vmatpush1.msk.msra.mxu1 %vm9934_vm2, %v1186_v45  ;;  %v1159_v46 = vsel %vm867_vm14, %v1157_v37, %v1149_v44  ;;  %v1165_v47 = vsel %vm867_vm14, %v1149_v44, %v1157_v37  ;;  %v1158_v48 = vsel %vm867_vm14, %v1155_v43, %v1147_v20  ;;  %v1164_v51 = vsel %vm867_vm14, %v1147_v20, %v1155_v43  ;;  %vm9944_vm2 = vmmov %vm9943_vm4 }
 0x239   : > { %5186 = vmatprep.subr.msk.mxu1 %vm5743_vm3, %v1159_v46 }
 0x23a   : > { %5187 = vmatpush1.msk.msra.mxu1 %vm5849_vm15, %v1165_v47 }
 0x23b   : > { %v1309_v49 = vpop.permute.xlu0 %1308  ;;  %5188 = vmatprep.subr.msk.mxu1 %vm5743_vm3, %v1158_v48  ;;  %v1307_v50 = vpop.permute.xlu1 %1306 }
 0x23c   : > { %5189 = vmatpush1.msk.msra.mxu1 %vm5849_vm15, %v1164_v51  ;;  %v1319_v53 = vsel %vm9748_vm11, %v1309_v49, %v1307_v50  ;;  %v1311_v54 = vsel %vm9748_vm11, %v1307_v50, %v1309_v49 }
 0x23d   : > { %5190 = vmatprep.subr.msk.mxu1 %vm5869_vm12, %v1319_v53 }
 0x23e   : > { %5191 = vmatpush2.msk.msra.mxu1 %vm5784_vm9, %v1311_v54 }
 0x23f   : > { %v1305_v55 = vpop.permute.xlu0 %1304  ;;  %v1303_v56 = vpop.permute.xlu1 %1302 }
 0x240   : > { %v1318_v57 = vsel %vm9748_vm11, %v1305_v55, %v1303_v56  ;;  %v1310_v58 = vsel %vm9748_vm11, %v1303_v56, %v1305_v55  ;;  %vm9946_vm11 = vmmov %vm9944_vm2 }
 0x241   : > { %5192 = vmatprep.subr.msk.mxu1 %vm5869_vm12, %v1318_v57 }
 0x242   : > { %5193 = vmatpush2.msk.msra.mxu1 %vm5784_vm9, %v1310_v58 }
 0x243   : > { %1411 = vmatmul.mubr.f32.vlgmr.msra.gmra.mxu1 %v1324_v59 }
 0x244   : > { %5195 = vmatprep.mubr.msk.f32.mxu1 %vm9799_vm0, %v1327_v60 }
 0x247   : > { %1417 = vmatmul.mubr.f32.gmra.mxu1 %v1326_v61 }
 0x24c   : > { %v1333_v62 = vpop.permute.xlu0 %1332  ;;  %v1338_v4 = vpop.permute.xlu1 %1337 }
 0x303   : > { %v1412_v63 = vpop.f32.mrf.mxu1 }
 0x304   : > { %v1413_v0 = vadd.f32 %v1412_v63, %v1333_v62 }
 0x305   : > { %v1414_v1 = vpop.f32.mrf.mxu1 }
 0x306   : > { %v6083_v2 = vmax.f32 %v1413_v0, 0.0  ;;  %v1415_v3 = vadd.f32 %v1414_v1, %v1333_v62 }
 0x307   : > { %v1418_v6 = vpop.f32.mrf.mxu1 }
 0x308   : > { %1427 = vst [vmem:[%s624_s4] sm:$0xff] %v6083_v2  ;;  %v6086_v7 = vmax.f32 %v1415_v3, 0.0  ;;  %v1419_v8 = vadd.f32 %v1418_v6, %v1338_v4  ;;  %1507 = vrot.lane.b32.xlu0 %v6083_v2, %s9936_s3  ;;  %1567 = vrot.lane.b32.xlu1 %v6083_v2, %s9937_s1 }
 0x309   : > { %v1420_v11 = vpop.f32.mrf.mxu1 }
 0x30a   : > { %1428 = vst [vmem:[%s624_s4 + $0x8] sm:$0xff] %v6086_v7  ;;  %v6093_v12 = vmax.f32 %v1419_v8, 0.0  ;;  %v1421_v13 = vadd.f32 %v1420_v11, %v1338_v4 }
 0x30c   : > { %1429 = vst [vmem:[%s624_s4 + $0x10] sm:$0xff] %v6093_v12  ;;  %v6096_v15 = vmax.f32 %v1421_v13, 0.0  ;;  %1569 = vrot.lane.b32.xlu0 %v6086_v7, %s9937_s1  ;;  %1545 = vrot.lane.b32.xlu1 %v6083_v2, %s9938_s28 }
 0x30e   : > { %1430 = vst [vmem:[%s624_s4 + $0x18] sm:$0xff] %v6096_v15 }
 0x310   : > { %1547 = vrot.lane.b32.xlu0 %v6086_v7, %s9938_s28  ;;  %1523 = vrot.lane.b32.xlu1 %v6083_v2, %s9939_s2 }
 0x314   : > { %1525 = vrot.lane.b32.xlu0 %v6086_v7, %s9939_s2  ;;  %1501 = vrot.lane.b32.xlu1 %v6086_v7, %s9936_s3 }
 0x318   : > { %1479 = vrot.lane.b32.xlu1 %v6086_v7, %s9923_s26  ;;  %1509 = vrot.lane.b32.xlu0 %v6093_v12, %s9936_s3 }
 0x31c   : > { %1487 = vrot.lane.b32.xlu0 %v6093_v12, %s9923_s26  ;;  %1571 = vrot.lane.b32.xlu1 %v6093_v12, %s9937_s1 }
 0x320   : > { %1573 = vrot.lane.b32.xlu0 %v6096_v15, %s9937_s1  ;;  %1549 = vrot.lane.b32.xlu1 %v6093_v12, %s9938_s28 }
 0x324   : > { %1551 = vrot.lane.b32.xlu0 %v6096_v15, %s9938_s28  ;;  %1527 = vrot.lane.b32.xlu1 %v6093_v12, %s9939_s2 }
 0x328   : > { %1529 = vrot.lane.b32.xlu0 %v6096_v15, %s9939_s2  ;;  %1457 = vrot.lane.b32.xlu1 %v6086_v7, %s9924_s22 }
 0x32c   : > { %1485 = vrot.lane.b32.xlu0 %v6083_v2, %s9923_s26  ;;  %1433 = vrot.lane.b32.xlu1 %v6086_v7, %s9925_s27 }
 0x330   : > { %1465 = vrot.lane.b32.xlu0 %v6093_v12, %s9924_s22  ;;  %1503 = vrot.lane.b32.xlu1 %v6096_v15, %s9936_s3 }
 0x334   : > { %1463 = vrot.lane.b32.xlu0 %v6083_v2, %s9924_s22  ;;  %1481 = vrot.lane.b32.xlu1 %v6096_v15, %s9923_s26 }
 0x338   : > { %1443 = vrot.lane.b32.xlu0 %v6093_v12, %s9925_s27  ;;  %1459 = vrot.lane.b32.xlu1 %v6096_v15, %s9924_s22 }
 0x33c   : > { %1441 = vrot.lane.b32.xlu0 %v6083_v2, %s9925_s27  ;;  %1435 = vrot.lane.b32.xlu1 %v6096_v15, %s9925_s27 }
 0x340   : > { %1595 = vrot.lane.b32.xlu0 %v6096_v15, %s9927_s25  ;;  %1593 = vrot.lane.b32.xlu1 %v6093_v12, %s9927_s25 }
 0x344   : > { %1591 = vrot.lane.b32.xlu0 %v6086_v7, %s9927_s25  ;;  %1589 = vrot.lane.b32.xlu1 %v6083_v2, %s9927_s25 }
 0x348   : > { %1619 = vperm.xlu0 %5511, %v1615_v18   ;;  %1624 = vperm.xlu1 %5512, %v1616_v19  }
 0x37a   : > { %v1508_v20 = vpop.permute.xlu0 %1507  ;;  %v1568_v22 = vpop.permute.xlu1 %1567 }
 0x37e   : > { %v1570_v23 = vpop.permute.xlu0 %1569  ;;  %v1546_v24 = vpop.permute.xlu1 %1545 }
 0x37f   : > { %v1583_v40 = vsel %vm1003_vm1, %v1570_v23, %v1568_v22  ;;  %v1575_v43 = vsel %vm1003_vm1, %v1568_v22, %v1570_v23 }
 0x382   : > { %v1548_v26 = vpop.permute.xlu0 %1547  ;;  %v1524_v27 = vpop.permute.xlu1 %1523 }
 0x383   : > { %v1553_v47 = vsel %vm9946_vm11, %v1546_v24, %v1548_v26 }
 0x386   : > { %v1526_v28 = vpop.permute.xlu0 %1525  ;;  %v1502_v29 = vpop.permute.xlu1 %1501 }
 0x38a   : > { %v1510_v30 = vpop.permute.xlu0 %1509  ;;  %v1480_v31 = vpop.permute.xlu1 %1479 }
 0x38e   : > { %v1488_v33 = vpop.permute.xlu0 %1487  ;;  %v1572_v34 = vpop.permute.xlu1 %1571 }
 0x392   : > { %v1574_v36 = vpop.permute.xlu0 %1573  ;;  %v1550_v37 = vpop.permute.xlu1 %1549 }
 0x393   : > { %v1584_v38 = vsel %vm1003_vm1, %v1574_v36, %v1572_v34  ;;  %v1576_v39 = vsel %vm1003_vm1, %v1572_v34, %v1574_v36  ;;  %v1614_v34 = vld [vmem:[%s9707_s5 + $0x18] sm:$0xff]  ;;  %v1613_v36 = vld [vmem:[%s9707_s5 + $0x10] sm:$0xff] }
 0x394   : > { %5196 = vmatprep.subr.msk.mxu0 %vm9941_vm7, %v1584_v38  ;;  %vm9945_vm7 = vmmov %vm9944_vm2 }
 0x395   : > { %1634 = vmatpush1.msra.mxu0 %v1576_v39  ;;  %v1561_v46 = vsel %vm9945_vm7, %v1548_v26, %v1546_v24  ;;  %vm9951_vm7 = vcmask 7168  }
 0x396   : > { %v1552_v41 = vpop.permute.xlu0 %1551  ;;  %5197 = vmatprep.subr.msk.mxu0 %vm9942_vm10, %v1583_v40  ;;  %v1528_v42 = vpop.permute.xlu1 %1527  ;;  %vm9947_vm10 = vcmask 1039360  }
 0x397   : > { %v1554_v44 = vsel %vm9943_vm4, %v1550_v37, %v1552_v41  ;;  %1636 = vmatpush1.msra.mxu0 %v1575_v43  ;;  %v1562_v45 = vsel %vm9944_vm2, %v1552_v41, %v1550_v37  ;;  %vm9948_vm4 = vmmov %vm9947_vm10 }
 0x398   : > { %5198 = vmatprep.subr.msk.mxu0 %vm5757_vm5, %v1562_v45  ;;  %vm9949_vm2 = vmmov %vm9948_vm4 }
 0x399   : > { %5199 = vmatpush1.msk.msra.mxu0 %vm5764_vm6, %v1554_v44  ;;  %v1539_v53 = vsel %vm9949_vm2, %v1526_v28, %v1524_v27  ;;  %vm9950_vm11 = vmmov %vm9949_vm2 }
 0x39a   : > { %v1530_v48 = vpop.permute.xlu0 %1529  ;;  %5200 = vmatprep.subr.msk.mxu0 %vm5757_vm5, %v1561_v46  ;;  %v1458_v49 = vpop.permute.xlu1 %1457  ;;  %v1531_v54 = vsel %vm9950_vm11, %v1524_v27, %v1526_v28  ;;  %vm9955_vm11 = vcmask 121856  }
 0x39b   : > { %v1532_v50 = vsel %vm9947_vm10, %v1528_v42, %v1530_v48  ;;  %5201 = vmatpush1.msk.msra.mxu0 %vm5764_vm6, %v1553_v47  ;;  %v1540_v51 = vsel %vm9948_vm4, %v1530_v48, %v1528_v42  ;;  %vm9952_vm10 = vmmov %vm9951_vm7 }
 0x39c   : > { %5202 = vmatprep.subr.msk.mxu0 %vm5778_vm8, %v1540_v51  ;;  %vm9953_vm4 = vmmov %vm9951_vm7  ;;  %v1895_v51 = vld [vmem:[%s9709_s7 + $0x8] sm:$0xff] }
 0x39d   : > { %5203 = vmatpush1.msk.msra.mxu0 %vm5784_vm9, %v1532_v50  ;;  %v1511_v61 = vsel %vm9953_vm4, %v1508_v20, %v1502_v29  ;;  %vm9954_vm2 = vmmov %vm9953_vm4  ;;  %5254 = vmatprep.mubr.msk.f32.mxu1 %vm9799_vm0, %v1895_v51  ;;  %v2193_v51 = vld [vmem:[%s9711_s9 + $0x600] sm:$0xff] }
 0x39e   : > { %v1486_v55 = vpop.permute.xlu0 %1485  ;;  %5204 = vmatprep.subr.msk.mxu0 %vm5778_vm8, %v1539_v53  ;;  %v1434_v56 = vpop.permute.xlu1 %1433  ;;  %v1517_v62 = vsel %vm9954_vm2, %v1502_v29, %v1508_v20  ;;  %vm9959_vm2 = vcmp.ge.s32.totalorder %v5736_v9, 16  ;;  %v2122_v53 = vld [vmem:[%s9711_s9 + $0x3c8] sm:$0xff] }
 0x39f   : > { %5205 = vmatpush1.msk.msra.mxu0 %vm5784_vm9, %v1531_v54  ;;  %v2121_v54 = vld [vmem:[%s9711_s9 + $0x3c0] sm:$0xff] }
 0x3a0   : > { %1645 = vmatprep.subr.mxu0 %v6096_v15 }
 0x3a1   : > { %1646 = vmatpush1.msra.mxu0 %v6093_v12 }
 0x3a2   : > { %v1466_v57 = vpop.permute.xlu0 %1465  ;;  %1647 = vmatprep.subr.mxu0 %v6086_v7  ;;  %v1504_v58 = vpop.permute.xlu1 %1503 }
 0x3a3   : > { %v1518_v59 = vsel %vm9951_vm7, %v1504_v58, %v1510_v30  ;;  %1648 = vmatpush1.msra.mxu0 %v6083_v2  ;;  %v1512_v60 = vsel %vm9952_vm10, %v1510_v30, %v1504_v58  ;;  %vm9956_vm7 = vmmov %vm9955_vm11  ;;  %v2113_v58 = vld [vmem:[%s9711_s9 + $0x380] sm:$0xff] }
 0x3a4   : > { %5206 = vmatprep.subr.msk.mxu0 %vm5743_vm3, %v1512_v60  ;;  %vm9957_vm10 = vmmov %vm9956_vm7  ;;  %v2105_v60 = vld [vmem:[%s9711_s9 + $0x340] sm:$0xff] }
 0x3a5   : > { %5207 = vmatpush1.msk.msra.mxu0 %vm5764_vm6, %v1518_v59  ;;  %v1489_v3 = vsel %vm9957_vm10, %v1486_v55, %v1480_v31  ;;  %vm9958_vm4 = vmmov %vm9956_vm7  ;;  %v2106_v59 = vld [vmem:[%s9711_s9 + $0x348] sm:$0xff] }
 0x3a6   : > { %v1464_v63 = vpop.permute.xlu0 %1463  ;;  %5208 = vmatprep.subr.msk.mxu0 %vm5743_vm3, %v1511_v61  ;;  %v1482_v0 = vpop.permute.xlu1 %1481  ;;  %v1495_v4 = vsel %vm9958_vm4, %v1480_v31, %v1486_v55  ;;  %v2114_v55 = vld [vmem:[%s9711_s9 + $0x388] sm:$0xff] }
 0x3a7   : > { %v1496_v1 = vsel %vm9955_vm11, %v1482_v0, %v1488_v33  ;;  %5209 = vmatpush1.msk.msra.mxu0 %vm5764_vm6, %v1517_v62  ;;  %v1490_v2 = vsel %vm9956_vm7, %v1488_v33, %v1482_v0  ;;  %v1467_v12 = vsel %vm9799_vm0, %v1464_v63, %v1458_v49  ;;  %v1473_v13 = vsel %vm9799_vm0, %v1458_v49, %v1464_v63  ;;  %vm9960_vm11 = vmmov %vm9959_vm2  ;;  %v1611_v33 = vld [vmem:[%s9707_s5] sm:$0xff]  ;;  %v2098_v61 = vld [vmem:[%s9711_s9 + $0x308] sm:$0xff] }
 0x3a8   : > { %5210 = vmatprep.subr.msk.mxu0 %vm5778_vm8, %v1490_v2  ;;  %vm9961_vm7 = vcmask 908288   ;;  %v2097_v62 = vld [vmem:[%s9711_s9 + $0x300] sm:$0xff]  ;;  %v2090_v63 = vld [vmem:[%s9711_s9 + $0x2c8] sm:$0xff] }
 0x3a9   : > { %5211 = vmatpush1.msk.msra.mxu0 %vm5821_vm13, %v1496_v1  ;;  %vm9962_vm10 = vmmov %vm9961_vm7  ;;  %v2089_v0 = vld [vmem:[%s9711_s9 + $0x2c0] sm:$0xff]  ;;  %v2082_v1 = vld [vmem:[%s9711_s9 + $0x288] sm:$0xff] }
 0x3aa   : > { %v1444_v6 = vpop.permute.xlu0 %1443  ;;  %5212 = vmatprep.subr.msk.mxu0 %vm5778_vm8, %v1489_v3  ;;  %v1460_v7 = vpop.permute.xlu1 %1459  ;;  %vm9963_vm4 = vmmov %vm9961_vm7  ;;  %v2081_v2 = vld [vmem:[%s9711_s9 + $0x280] sm:$0xff]  ;;  %v2074_v3 = vld [vmem:[%s9711_s9 + $0x248] sm:$0xff] }
 0x3ab   : > { %v1474_v8 = vsel %vm9799_vm0, %v1460_v7, %v1466_v57  ;;  %5213 = vmatpush1.msk.msra.mxu0 %vm5821_vm13, %v1495_v4  ;;  %v1468_v11 = vsel %vm9799_vm0, %v1466_v57, %v1460_v7  ;;  %v1898_v57 = vld [vmem:[%s9710_s8] sm:$0xff] }
 0x3ac   : > { %1657 = vmatprep.subr.mxu0 %v1468_v11  ;;  %v2073_v4 = vld [vmem:[%s9711_s9 + $0x240] sm:$0xff] }
 0x3ad   : > { %5214 = vmatpush1.msk.msra.mxu0 %vm9959_vm2, %v1474_v8  ;;  %vm9964_vm2 = vmmov %vm9963_vm4  ;;  %v2065_v7 = vld [vmem:[%s9711_s9 + $0x200] sm:$0xff]  ;;  %v2058_v8 = vld [vmem:[%s9711_s9 + $0x1c8] sm:$0xff] }
 0x3ae   : > { %v1442_v15 = vpop.permute.xlu0 %1441  ;;  %1659 = vmatprep.subr.mxu0 %v1467_v12  ;;  %v1436_v17 = vpop.permute.xlu1 %1435  ;;  %v2057_v11 = vld [vmem:[%s9711_s9 + $0x1c0] sm:$0xff]  ;;  %v2050_v12 = vld [vmem:[%s9711_s9 + $0x188] sm:$0xff] }
 0x3af   : > { %v1452_v18 = vsel %vm867_vm14, %v1436_v17, %v1444_v6  ;;  %5215 = vmatpush1.msk.msra.mxu0 %vm9960_vm11, %v1473_v13  ;;  %v1446_v19 = vsel %vm867_vm14, %v1444_v6, %v1436_v17  ;;  %v1445_v20 = vsel %vm867_vm14, %v1442_v15, %v1434_v56  ;;  %v1451_v22 = vsel %vm867_vm14, %v1434_v56, %v1442_v15  ;;  %v1899_v56 = vld [vmem:[%s9710_s8 + $0x8] sm:$0xff]  ;;  %v2049_v13 = vld [vmem:[%s9711_s9 + $0x180] sm:$0xff] }
 0x3b0   : > { %5216 = vmatprep.subr.msk.mxu0 %vm5743_vm3, %v1446_v19  ;;  %v2066_v6 = vld [vmem:[%s9711_s9 + $0x208] sm:$0xff]  ;;  %v2041_v17 = vld [vmem:[%s9711_s9 + $0x140] sm:$0xff]  ;;  %vm9965_vm11 = vcmp.lt.s32.totalorder %v5739_v10, 240 }
 0x3b1   : > { %5217 = vmatpush1.msk.msra.mxu0 %vm5849_vm15, %v1452_v18  ;;  %v2042_v15 = vld [vmem:[%s9711_s9 + $0x148] sm:$0xff]  ;;  %v2033_v19 = vld [vmem:[%s9711_s9 + $0x100] sm:$0xff] }
 0x3b2   : > { %v1596_v23 = vpop.permute.xlu0 %1595  ;;  %5218 = vmatprep.subr.msk.mxu0 %vm5743_vm3, %v1445_v20  ;;  %v1594_v24 = vpop.permute.xlu1 %1593  ;;  %v2034_v18 = vld [vmem:[%s9711_s9 + $0x108] sm:$0xff] }
 0x3b3   : > { %v1598_v26 = vsel %vm9961_vm7, %v1594_v24, %v1596_v23  ;;  %5219 = vmatpush1.msk.msra.mxu0 %vm5849_vm15, %v1451_v22  ;;  %v1606_v27 = vsel %vm9962_vm10, %v1596_v23, %v1594_v24  ;;  %v2026_v20 = vld [vmem:[%s9711_s9 + $0xc8] sm:$0xff]  ;;  %v2025_v22 = vld [vmem:[%s9711_s9 + $0xc0] sm:$0xff]  ;;  %vm9966_vm7 = vmmov %vm9965_vm11  ;;  %vm9967_vm10 = vcmask 924672  }
 0x3b4   : > { %5220 = vmatprep.subr.msk.mxu0 %vm5869_vm12, %v1606_v27  ;;  %v2018_v23 = vld [vmem:[%s9711_s9 + $0x88] sm:$0xff]  ;;  %v2017_v24 = vld [vmem:[%s9711_s9 + $0x80] sm:$0xff] }
 0x3b5   : > { %5221 = vmatpush2.msk.msra.mxu0 %vm5784_vm9, %v1598_v26  ;;  %v2010_v26 = vld [vmem:[%s9711_s9 + $0x48] sm:$0xff]  ;;  %v2009_v27 = vld [vmem:[%s9711_s9 + $0x40] sm:$0xff] }
 0x3b6   : > { %v1592_v28 = vpop.permute.xlu0 %1591  ;;  %v1590_v29 = vpop.permute.xlu1 %1589 }
 0x3b7   : > { %v1597_v30 = vsel %vm9963_vm4, %v1590_v29, %v1592_v28  ;;  %v1605_v31 = vsel %vm9964_vm2, %v1592_v28, %v1590_v29  ;;  %v2002_v28 = vld [vmem:[%s9711_s9 + $0x8] sm:$0xff]  ;;  %v2001_v29 = vld [vmem:[%s9711_s9] sm:$0xff]  ;;  %vm9968_vm4 = vmmov %vm9967_vm10 }
 0x3b8   : > { %5222 = vmatprep.subr.msk.mxu0 %vm5869_vm12, %v1605_v31  ;;  %v2249_v31 = vld [vmem:[%s9711_s9 + $0x7c0] sm:$0xff]  ;;  %vm9969_vm2 = vmmov %vm9968_vm4 }
 0x3b9   : > { %5223 = vmatpush2.msk.msra.mxu0 %vm5784_vm9, %v1597_v30  ;;  %v2250_v30 = vld [vmem:[%s9711_s9 + $0x7c8] sm:$0xff] }
 0x3ba   : > { %1698 = vmatmul.mubr.f32.vlgmr.msra.gmra.mxu0 %v1611_v33  ;;  %2257 = vmatprep.subr.mxu0 %v2122_v53  ;;  %v2242_v33 = vld [vmem:[%s9711_s9 + $0x788] sm:$0xff] }
 0x3bb   : > { %5225 = vmatprep.mubr.msk.f32.mxu0 %vm9799_vm0, %v1614_v34  ;;  %2258 = vmatpush1.msra.mxu0 %v2121_v54  ;;  %v2241_v34 = vld [vmem:[%s9711_s9 + $0x780] sm:$0xff]  ;;  %v2186_v53 = vld [vmem:[%s9711_s9 + $0x5c8] sm:$0xff] }
 0x3bc   : > { %2259 = vmatprep.subr.mxu0 %v2114_v55  ;;  %v2185_v54 = vld [vmem:[%s9711_s9 + $0x5c0] sm:$0xff]  ;;  %v2178_v55 = vld [vmem:[%s9711_s9 + $0x588] sm:$0xff] }
 0x3bd   : > { %2260 = vmatpush1.msra.mxu0 %v2113_v58  ;;  %v2169_v58 = vld [vmem:[%s9711_s9 + $0x540] sm:$0xff] }
 0x3be   : > { %1704 = vmatmul.mubr.f32.gmra.mxu0 %v1613_v36  ;;  %2261 = vmatprep.subr.mxu0 %v2106_v59  ;;  %v2234_v36 = vld [vmem:[%s9711_s9 + $0x748] sm:$0xff] }
 0x3bf   : > { %2262 = vmatpush1.msra.mxu0 %v2105_v60  ;;  %v2162_v59 = vld [vmem:[%s9711_s9 + $0x508] sm:$0xff] }
 0x3c0   : > { %2263 = vmatprep.subr.mxu0 %v2098_v61 }
 0x3c1   : > { %2264 = vmatpush1.msra.mxu0 %v2097_v62  ;;  %v2161_v62 = vld [vmem:[%s9711_s9 + $0x500] sm:$0xff] }
 0x3c2   : > { %2265 = vmatprep.subr.mxu0 %v2090_v63  ;;  %v2154_v63 = vld [vmem:[%s9711_s9 + $0x4c8] sm:$0xff] }
 0x3c3   : > { %v1620_v37 = vpop.permute.xlu0 %1619  ;;  %v1625_v45 = vpop.permute.xlu1 %1624  ;;  %2266 = vmatpush1.msra.mxu0 %v2089_v0 }
 0x3c4   : > { %2267 = vmatprep.subr.mxu0 %v2082_v1 }
 0x3c5   : > { %2268 = vmatpush1.msra.mxu0 %v2081_v2 }
 0x3c6   : > { %2269 = vmatprep.subr.mxu0 %v2074_v3 }
 0x3c7   : > { %2270 = vmatpush1.msra.mxu0 %v2073_v4 }
 0x3c8   : > { %2271 = vmatprep.subr.mxu0 %v2066_v6 }
 0x3c9   : > { %2272 = vmatpush1.msra.mxu0 %v2065_v7 }
 0x3ca   : > { %2273 = vmatprep.subr.mxu0 %v2058_v8 }
 0x3cb   : > { %2274 = vmatpush1.msra.mxu0 %v2057_v11 }
 0x3cc   : > { %2275 = vmatprep.subr.mxu0 %v2050_v12 }
 0x3cd   : > { %2276 = vmatpush1.msra.mxu0 %v2049_v13 }
 0x3ce   : > { %2277 = vmatprep.subr.mxu0 %v2042_v15 }
 0x3cf   : > { %2278 = vmatpush1.msra.mxu0 %v2041_v17 }
 0x3d0   : > { %2279 = vmatprep.subr.mxu0 %v2034_v18 }
 0x3d1   : > { %2280 = vmatpush1.msra.mxu0 %v2033_v19 }
 0x3d2   : > { %2281 = vmatprep.subr.mxu0 %v2026_v20 }
 0x3d3   : > { %2282 = vmatpush1.msra.mxu0 %v2025_v22 }
 0x3d4   : > { %2283 = vmatprep.subr.mxu0 %v2018_v23 }
 0x3d5   : > { %2284 = vmatpush1.msra.mxu0 %v2017_v24 }
 0x3d6   : > { %2285 = vmatprep.subr.mxu0 %v2010_v26 }
 0x3d7   : > { %2286 = vmatpush1.msra.mxu0 %v2009_v27 }
 0x3d8   : > { %2287 = vmatprep.subr.mxu0 %v2002_v28 }
 0x3d9   : > { %2288 = vmatpush1.msra.mxu0 %v2001_v29 }
 0x3da   : > { %2289 = vmatprep.subr.mxu0 %v2250_v30 }
 0x3db   : > { %2290 = vmatpush2.msra.mxu0 %v2249_v31 }
 0x3dc   : > { %2291 = vmatprep.subr.mxu0 %v2242_v33 }
 0x3dd   : > { %2292 = vmatpush2.msra.mxu0 %v2241_v34 }
 0x3de   : > { %2293 = vmatprep.subr.mxu0 %v2234_v36 }
 0x47a   : > { %v1699_v38 = vpop.f32.mrf.mxu0 }
 0x47b   : > { %v1700_v39 = vadd.f32 %v1699_v38, %v1620_v37  ;;  %v2226_v38 = vld [vmem:[%s9711_s9 + $0x708] sm:$0xff] }
 0x47c   : > { %v1701_v40 = vpop.f32.mrf.mxu0 }
 0x47d   : > { %v6271_v41 = vmax.f32 %v1700_v39, 0.0  ;;  %v1702_v42 = vadd.f32 %v1701_v40, %v1620_v37  ;;  %v2233_v37 = vld [vmem:[%s9711_s9 + $0x740] sm:$0xff]  ;;  %v2218_v40 = vld [vmem:[%s9711_s9 + $0x6c8] sm:$0xff] }
 0x47e   : > { %v1705_v44 = vpop.f32.mrf.mxu0  ;;  %v2225_v39 = vld [vmem:[%s9711_s9 + $0x700] sm:$0xff]  ;;  %2294 = vmatpush2.msra.mxu0 %v2233_v37 }
 0x47f   : > { %1790 = vrot.lane.b32.xlu0 %v6271_v41, %s9936_s3  ;;  %1850 = vrot.lane.b32.xlu1 %v6271_v41, %s9937_s1  ;;  %v6277_v43 = vmax.f32 %v1702_v42, 0.0  ;;  %v1706_v46 = vadd.f32 %v1705_v44, %v1625_v45  ;;  %v2217_v42 = vld [vmem:[%s9711_s9 + $0x6c0] sm:$0xff]  ;;  %v2210_v44 = vld [vmem:[%s9711_s9 + $0x688] sm:$0xff] }
 0x480   : > { %v1707_v48 = vpop.f32.mrf.mxu0  ;;  %2295 = vmatprep.subr.mxu0 %v2226_v38 }
 0x481   : > { %v6291_v47 = vmax.f32 %v1706_v46, 0.0  ;;  %v1708_v49 = vadd.f32 %v1707_v48, %v1625_v45  ;;  %2296 = vmatpush2.msra.mxu0 %v2225_v39  ;;  %v2209_v45 = vld [vmem:[%s9711_s9 + $0x680] sm:$0xff]  ;;  %v2202_v46 = vld [vmem:[%s9711_s9 + $0x648] sm:$0xff] }
 0x482   : > { %2297 = vmatprep.subr.mxu0 %v2218_v40  ;;  %v2201_v48 = vld [vmem:[%s9711_s9 + $0x640] sm:$0xff] }
 0x483   : > { %1852 = vrot.lane.b32.xlu0 %v6277_v43, %s9937_s1  ;;  %1828 = vrot.lane.b32.xlu1 %v6271_v41, %s9938_s28  ;;  %v6301_v50 = vmax.f32 %v1708_v49, 0.0  ;;  %v2194_v49 = vld [vmem:[%s9711_s9 + $0x608] sm:$0xff] }
 0x484   : > { %2298 = vmatpush2.msra.mxu0 %v2217_v42 }
 0x485   : > { %2299 = vmatprep.subr.mxu0 %v2210_v44 }
 0x486   : > { %2300 = vmatpush2.msra.mxu0 %v2209_v45 }
 0x487   : > { %1830 = vrot.lane.b32.xlu0 %v6277_v43, %s9938_s28  ;;  %1806 = vrot.lane.b32.xlu1 %v6271_v41, %s9939_s2 }
 0x488   : > { %2301 = vmatprep.subr.mxu0 %v2202_v46 }
 0x489   : > { %2302 = vmatpush2.msra.mxu0 %v2201_v48 }
 0x48a   : > { %2303 = vmatprep.subr.mxu0 %v2194_v49 }
 0x48b   : > { %1808 = vrot.lane.b32.xlu0 %v6277_v43, %s9939_s2  ;;  %1784 = vrot.lane.b32.xlu1 %v6277_v43, %s9936_s3 }
 0x48c   : > { %2304 = vmatpush2.msra.mxu0 %v2193_v51 }
 0x48d   : > { %2305 = vmatprep.subr.mxu0 %v2186_v53 }
 0x48e   : > { %2306 = vmatpush2.msra.mxu0 %v2185_v54 }
 0x48f   : > { %1762 = vrot.lane.b32.xlu1 %v6277_v43, %s9923_s26  ;;  %1792 = vrot.lane.b32.xlu0 %v6291_v47, %s9936_s3 }
 0x490   : > { %2307 = vmatprep.subr.mxu0 %v2178_v55 }
 0x493   : > { %1770 = vrot.lane.b32.xlu0 %v6291_v47, %s9923_s26  ;;  %1854 = vrot.lane.b32.xlu1 %v6291_v47, %s9937_s1 }
 0x497   : > { %1856 = vrot.lane.b32.xlu0 %v6301_v50, %s9937_s1  ;;  %1832 = vrot.lane.b32.xlu1 %v6291_v47, %s9938_s28  ;;  %s5530_s1 = smov 96  }
 0x49b   : > { %1834 = vrot.lane.b32.xlu0 %v6301_v50, %s9938_s28  ;;  %1810 = vrot.lane.b32.xlu1 %v6291_v47, %s9939_s2  ;;  %s5531_s28 = smov 97  }
 0x49f   : > { %1812 = vrot.lane.b32.xlu0 %v6301_v50, %s9939_s2  ;;  %1740 = vrot.lane.b32.xlu1 %v6277_v43, %s9924_s22 }
 0x4a3   : > { %1768 = vrot.lane.b32.xlu0 %v6271_v41, %s9923_s26  ;;  %1716 = vrot.lane.b32.xlu1 %v6277_v43, %s9925_s27 }
 0x4a7   : > { %1748 = vrot.lane.b32.xlu0 %v6291_v47, %s9924_s22  ;;  %1786 = vrot.lane.b32.xlu1 %v6301_v50, %s9936_s3 }
 0x4ab   : > { %1746 = vrot.lane.b32.xlu0 %v6271_v41, %s9924_s22  ;;  %1764 = vrot.lane.b32.xlu1 %v6301_v50, %s9923_s26 }
 0x4af   : > { %1726 = vrot.lane.b32.xlu0 %v6291_v47, %s9925_s27  ;;  %1742 = vrot.lane.b32.xlu1 %v6301_v50, %s9924_s22  ;;  %s5485_s22 = sshll.u32 %s10483_s30, 7 }
 0x4b0   : > { %s9681_s6 = scalar_lea.vmem %s9721_s19, %s5485_s22 }
 0x4b3   : > { %1724 = vrot.lane.b32.xlu0 %v6271_v41, %s9925_s27  ;;  %1718 = vrot.lane.b32.xlu1 %v6301_v50, %s9925_s27  ;;  %s5532_s27 = smov 95  }
 0x4b7   : > { %1878 = vrot.lane.b32.xlu0 %v6301_v50, %s9927_s25  ;;  %1876 = vrot.lane.b32.xlu1 %v6291_v47, %s9927_s25 }
 0x4bb   : > { %1874 = vrot.lane.b32.xlu0 %v6277_v43, %s9927_s25  ;;  %1872 = vrot.lane.b32.xlu1 %v6271_v41, %s9927_s25 }
 0x4bf   : > { %1907 = vperm.xlu0 %5511, %v1899_v56   ;;  %1902 = vperm.xlu1 %5512, %v1898_v57   ;;  %v2177_v56 = vld [vmem:[%s9711_s9 + $0x580] sm:$0xff]  ;;  %v2170_v57 = vld [vmem:[%s9711_s9 + $0x548] sm:$0xff] }
 0x4c0   : > { %2308 = vmatpush2.msra.mxu0 %v2177_v56 }
 0x4c1   : > { %2309 = vmatprep.subr.mxu0 %v2170_v57 }
 0x4c2   : > { %2310 = vmatpush2.msra.mxu0 %v2169_v58 }
 0x4c3   : > { %2311 = vmatprep.subr.mxu0 %v2162_v59 }
 0x4c4   : > { %2312 = vmatpush2.msra.mxu0 %v2161_v62 }
 0x4c5   : > { %2313 = vmatprep.subr.mxu0 %v2154_v63 }
 0x4f1   : > { %v6518_v60 = vpop.permute.xlu0 %1790  ;;  %v1851_v61 = vpop.permute.xlu1 %1850 }
 0x4f5   : > { %v1853_v0 = vpop.permute.xlu0 %1852  ;;  %v1829_v1 = vpop.permute.xlu1 %1828 }
 0x4f6   : > { %v1866_v19 = vsel %vm1003_vm1, %v1853_v0, %v1851_v61  ;;  %v1858_v23 = vsel %vm1003_vm1, %v1851_v61, %v1853_v0 }
 0x4f9   : > { %v1831_v2 = vpop.permute.xlu0 %1830  ;;  %v1807_v3 = vpop.permute.xlu1 %1806 }
 0x4fa   : > { %v1844_v27 = vsel %vm9969_vm2, %v1831_v2, %v1829_v1 }
 0x4fd   : > { %v1809_v4 = vpop.permute.xlu0 %1808  ;;  %v1785_v6 = vpop.permute.xlu1 %1784 }
 0x501   : > { %v1793_v7 = vpop.permute.xlu0 %1792  ;;  %v1763_v8 = vpop.permute.xlu1 %1762 }
 0x505   : > { %v1771_v11 = vpop.permute.xlu0 %1770  ;;  %v1855_v12 = vpop.permute.xlu1 %1854 }
 0x509   : > { %v1857_v13 = vpop.permute.xlu0 %1856  ;;  %v1833_v15 = vpop.permute.xlu1 %1832 }
 0x50a   : > { %v1867_v17 = vsel %vm1003_vm1, %v1857_v13, %v1855_v12  ;;  %v1859_v18 = vsel %vm1003_vm1, %v1855_v12, %v1857_v13  ;;  %vm9971_vm1 = vcmask 1039360   ;;  %v2100_v12 = vld [vmem:[%s9711_s9 + $0x318] sm:$0xff]  ;;  %v2099_v13 = vld [vmem:[%s9711_s9 + $0x310] sm:$0xff] }
 0x50b   : > { %5226 = vmatprep.subr.msk.mxu1 %vm9965_vm11, %v1867_v17  ;;  %vm9970_vm11 = vmmov %vm9969_vm2  ;;  %v2091_v17 = vld [vmem:[%s9711_s9 + $0x2d0] sm:$0xff] }
 0x50c   : > { %1917 = vmatpush1.msra.mxu1 %v1859_v18  ;;  %v1836_v28 = vsel %vm9970_vm11, %v1829_v1, %v1831_v2  ;;  %v2084_v18 = vld [vmem:[%s9711_s9 + $0x298] sm:$0xff] }
 0x50d   : > { %v1835_v20 = vpop.permute.xlu0 %1834  ;;  %5227 = vmatprep.subr.msk.mxu1 %vm9966_vm7, %v1866_v19  ;;  %v1811_v22 = vpop.permute.xlu1 %1810  ;;  %vm9972_vm7 = vmmov %vm9971_vm1  ;;  %v2083_v19 = vld [vmem:[%s9711_s9 + $0x290] sm:$0xff] }
 0x50e   : > { %v1837_v24 = vsel %vm9967_vm10, %v1833_v15, %v1835_v20  ;;  %1919 = vmatpush1.msra.mxu1 %v1858_v23  ;;  %v1845_v26 = vsel %vm9968_vm4, %v1835_v20, %v1833_v15  ;;  %vm9973_vm10 = vmmov %vm9971_vm1  ;;  %v2092_v15 = vld [vmem:[%s9711_s9 + $0x2d8] sm:$0xff] }
 0x50f   : > { %5228 = vmatprep.subr.msk.mxu1 %vm5757_vm5, %v1845_v26  ;;  %v1822_v34 = vsel %vm9973_vm10, %v1809_v4, %v1807_v3  ;;  %vm9974_vm4 = vmmov %vm9971_vm1  ;;  %v2076_v20 = vld [vmem:[%s9711_s9 + $0x258] sm:$0xff] }
 0x510   : > { %5229 = vmatpush1.msk.msra.mxu1 %vm5764_vm6, %v1837_v24  ;;  %v1814_v36 = vsel %vm9974_vm4, %v1807_v3, %v1809_v4  ;;  %v1894_v3 = vld [vmem:[%s9709_s7] sm:$0xff]  ;;  %v1897_v4 = vld [vmem:[%s9709_s7 + $0x18] sm:$0xff]  ;;  %v2067_v24 = vld [vmem:[%s9711_s9 + $0x210] sm:$0xff] }
 0x511   : > { %v1813_v29 = vpop.permute.xlu0 %1812  ;;  %5230 = vmatprep.subr.msk.mxu1 %vm5757_vm5, %v1844_v27  ;;  %v1741_v30 = vpop.permute.xlu1 %1740  ;;  %vm9975_vm5 = vcmask 7168   ;;  %v2068_v23 = vld [vmem:[%s9711_s9 + $0x218] sm:$0xff]  ;;  %v2059_v27 = vld [vmem:[%s9711_s9 + $0x1d0] sm:$0xff] }
 0x512   : > { %v1815_v31 = vsel %vm9971_vm1, %v1811_v22, %v1813_v29  ;;  %5231 = vmatpush1.msk.msra.mxu1 %vm5764_vm6, %v1836_v28  ;;  %v1823_v33 = vsel %vm9972_vm7, %v1813_v29, %v1811_v22  ;;  %vm9976_vm2 = vmmov %vm9975_vm5  ;;  %vm9979_vm7 = vcmask 121856   ;;  %v2075_v22 = vld [vmem:[%s9711_s9 + $0x250] sm:$0xff]  ;;  %v2060_v26 = vld [vmem:[%s9711_s9 + $0x1d8] sm:$0xff] }
 0x513   : > { %5232 = vmatprep.subr.msk.mxu1 %vm5778_vm8, %v1823_v33  ;;  %vm9977_vm11 = vmmov %vm9976_vm2  ;;  %v2052_v28 = vld [vmem:[%s9711_s9 + $0x198] sm:$0xff]  ;;  %v2051_v29 = vld [vmem:[%s9711_s9 + $0x190] sm:$0xff] }
 0x514   : > { %5233 = vmatpush1.msk.msra.mxu1 %vm5784_vm9, %v1815_v31  ;;  %vm9978_vm1 = vmmov %vm9976_vm2  ;;  %v2043_v31 = vld [vmem:[%s9711_s9 + $0x150] sm:$0xff]  ;;  %v2036_v33 = vld [vmem:[%s9711_s9 + $0x118] sm:$0xff] }
 0x515   : > { %v1769_v21 = vpop.permute.xlu0 %1768  ;;  %5234 = vmatprep.subr.msk.mxu1 %vm5778_vm8, %v1822_v34  ;;  %v1717_v37 = vpop.permute.xlu1 %1716  ;;  %vm9980_vm10 = vmmov %vm9979_vm7  ;;  %v2035_v34 = vld [vmem:[%s9711_s9 + $0x110] sm:$0xff] }
 0x516   : > { %5235 = vmatpush1.msk.msra.mxu1 %vm5784_vm9, %v1814_v36  ;;  %vm9981_vm4 = vmmov %vm9979_vm7  ;;  %v2028_v36 = vld [vmem:[%s9711_s9 + $0xd8] sm:$0xff] }
 0x517   : > { %1928 = vmatprep.subr.mxu1 %v6301_v50  ;;  %v1794_v50 = vsel %vm9977_vm11, %v6518_v60, %v1785_v6  ;;  %v1772_v46 = vsel %vm9981_vm4, %v1769_v21, %v1763_v8 }
 0x518   : > { %1929 = vmatpush1.msra.mxu1 %v6291_v47  ;;  %v1800_v47 = vsel %vm9978_vm1, %v1785_v6, %v6518_v60  ;;  %v2123_v6 = vld [vmem:[%s9711_s9 + $0x3d0] sm:$0xff] }
 0x519   : > { %v1749_v38 = vpop.permute.xlu0 %1748  ;;  %1930 = vmatprep.subr.mxu1 %v6277_v43  ;;  %v1787_v39 = vpop.permute.xlu1 %1786 }
 0x51a   : > { %v1801_v40 = vsel %vm9975_vm5, %v1787_v39, %v1793_v7  ;;  %1931 = vmatpush1.msra.mxu1 %v6271_v41  ;;  %v1795_v42 = vsel %vm9976_vm2, %v1793_v7, %v1787_v39  ;;  %vm9982_vm5 = vmmov %vm9981_vm4  ;;  %v2116_v7 = vld [vmem:[%s9711_s9 + $0x398] sm:$0xff] }
 0x51b   : > { %5236 = vmatprep.subr.msk.mxu1 %vm5743_vm3, %v1795_v42  ;;  %v1778_v48 = vsel %vm9982_vm5, %v1763_v8, %v1769_v21  ;;  %v1896_v8 = vld [vmem:[%s9709_s7 + $0x10] sm:$0xff]  ;;  %v2012_v39 = vld [vmem:[%s9711_s9 + $0x58] sm:$0xff] }
 0x51c   : > { %5237 = vmatpush1.msk.msra.mxu1 %vm5764_vm6, %v1801_v40  ;;  %v2027_v21 = vld [vmem:[%s9711_s9 + $0xd0] sm:$0xff]  ;;  %v2004_v42 = vld [vmem:[%s9711_s9 + $0x18] sm:$0xff] }
 0x51d   : > { %v1747_v43 = vpop.permute.xlu0 %1746  ;;  %5238 = vmatprep.subr.msk.mxu1 %vm5743_vm3, %v1794_v50  ;;  %v1765_v44 = vpop.permute.xlu1 %1764  ;;  %v2011_v40 = vld [vmem:[%s9711_s9 + $0x50] sm:$0xff] }
 0x51e   : > { %v1779_v41 = vsel %vm9979_vm7, %v1765_v44, %v1771_v11  ;;  %5239 = vmatpush1.msk.msra.mxu1 %vm5764_vm6, %v1800_v47  ;;  %v1773_v45 = vsel %vm9980_vm10, %v1771_v11, %v1765_v44  ;;  %vm9983_vm6 = vcmp.ge.s32.totalorder %v5736_v9, 16  ;;  %v1750_v54 = vsel %vm9799_vm0, %v1747_v43, %v1741_v30  ;;  %v2107_v11 = vld [vmem:[%s9711_s9 + $0x350] sm:$0xff]  ;;  %v2252_v47 = vld [vmem:[%s9711_s9 + $0x7d8] sm:$0xff] }
 0x51f   : > { %5240 = vmatprep.subr.msk.mxu1 %vm5778_vm8, %v1773_v45  ;;  %v1756_v55 = vsel %vm9799_vm0, %v1741_v30, %v1747_v43  ;;  %v2044_v30 = vld [vmem:[%s9711_s9 + $0x158] sm:$0xff]  ;;  %v2003_v50 = vld [vmem:[%s9711_s9 + $0x10] sm:$0xff]  ;;  %vm10023_vm10 = vcmask 1039360  }
 0x520   : > { %5241 = vmatpush1.msk.msra.mxu1 %vm5821_vm13, %v1779_v41  ;;  %v2251_v43 = vld [vmem:[%s9711_s9 + $0x7d0] sm:$0xff]  ;;  %v2244_v44 = vld [vmem:[%s9711_s9 + $0x798] sm:$0xff]  ;;  %vm10024_vm4 = vmmov %vm10023_vm10 }
 0x521   : > { %v1727_v49 = vpop.permute.xlu0 %1726  ;;  %5242 = vmatprep.subr.msk.mxu1 %vm5778_vm8, %v1772_v46  ;;  %v1743_v51 = vpop.permute.xlu1 %1742  ;;  %vm9984_vm8 = vmmov %vm9983_vm6  ;;  %v2243_v41 = vld [vmem:[%s9711_s9 + $0x790] sm:$0xff]  ;;  %v2236_v45 = vld [vmem:[%s9711_s9 + $0x758] sm:$0xff] }
 0x522   : > { %v1757_v25 = vsel %vm9799_vm0, %v1743_v51, %v1749_v38  ;;  %5243 = vmatpush1.msk.msra.mxu1 %vm5821_vm13, %v1778_v48  ;;  %v1751_v53 = vsel %vm9799_vm0, %v1749_v38, %v1743_v51  ;;  %vm9985_vm13 = vcmask 908288   ;;  %v2019_v38 = vld [vmem:[%s9711_s9 + $0x90] sm:$0xff]  ;;  %v2228_v48 = vld [vmem:[%s9711_s9 + $0x718] sm:$0xff]  ;;  %vm10025_vm5 = vmmov %vm10024_vm4 }
 0x523   : > { %1940 = vmatprep.subr.mxu1 %v1751_v53  ;;  %vm9986_vm2 = vmmov %vm9985_vm13  ;;  %v2235_v46 = vld [vmem:[%s9711_s9 + $0x750] sm:$0xff]  ;;  %v2220_v51 = vld [vmem:[%s9711_s9 + $0x6d8] sm:$0xff] }
 0x524   : > { %5244 = vmatpush1.msk.msra.mxu1 %vm9983_vm6, %v1757_v25  ;;  %vm9988_vm11 = vmmov %vm9986_vm2  ;;  %v2219_v25 = vld [vmem:[%s9711_s9 + $0x6d0] sm:$0xff]  ;;  %v2212_v53 = vld [vmem:[%s9711_s9 + $0x698] sm:$0xff] }
 0x525   : > { %v1725_v56 = vpop.permute.xlu0 %1724  ;;  %1942 = vmatprep.subr.mxu1 %v1750_v54  ;;  %v1719_v32 = vpop.permute.xlu1 %1718  ;;  %v2211_v54 = vld [vmem:[%s9711_s9 + $0x690] sm:$0xff]  ;;  %vm10026_vm6 = vmmov %vm10024_vm4 }
 0x526   : > { %v1735_v57 = vsel %vm867_vm14, %v1719_v32, %v1727_v49  ;;  %5245 = vmatpush1.msk.msra.mxu1 %vm9984_vm8, %v1756_v55  ;;  %v1729_v52 = vsel %vm867_vm14, %v1727_v49, %v1719_v32  ;;  %v1728_v58 = vsel %vm867_vm14, %v1725_v56, %v1717_v37  ;;  %v1734_v59 = vsel %vm867_vm14, %v1717_v37, %v1725_v56  ;;  %vm9987_vm14 = vmmov %vm9986_vm2  ;;  %v2020_v37 = vld [vmem:[%s9711_s9 + $0x98] sm:$0xff]  ;;  %v2227_v49 = vld [vmem:[%s9711_s9 + $0x710] sm:$0xff] }
 0x527   : > { %5246 = vmatprep.subr.msk.mxu1 %vm5743_vm3, %v1729_v52  ;;  %v2204_v55 = vld [vmem:[%s9711_s9 + $0x658] sm:$0xff]  ;;  %v2203_v56 = vld [vmem:[%s9711_s9 + $0x650] sm:$0xff]  ;;  %vm10027_vm8 = vcmask 7168  }
 0x528   : > { %5247 = vmatpush1.msk.msra.mxu1 %vm5849_vm15, %v1735_v57  ;;  %v2196_v32 = vld [vmem:[%s9711_s9 + $0x618] sm:$0xff]  ;;  %v2195_v57 = vld [vmem:[%s9711_s9 + $0x610] sm:$0xff] }
 0x529   : > { %v1879_v60 = vpop.permute.xlu0 %1878  ;;  %5248 = vmatprep.subr.msk.mxu1 %vm5743_vm3, %v1728_v58  ;;  %v1877_v61 = vpop.permute.xlu1 %1876  ;;  %v2188_v52 = vld [vmem:[%s9711_s9 + $0x5d8] sm:$0xff]  ;;  %v2187_v58 = vld [vmem:[%s9711_s9 + $0x5d0] sm:$0xff]  ;;  %vm9804_vm3 = vcmask 785408  }
 0x52a   : > { %v1881_v62 = vsel %vm9985_vm13, %v1877_v61, %v1879_v60  ;;  %5249 = vmatpush1.msk.msra.mxu1 %vm5849_vm15, %v1734_v59  ;;  %v1889_v63 = vsel %vm9986_vm2, %v1879_v60, %v1877_v61  ;;  %v2180_v59 = vld [vmem:[%s9711_s9 + $0x598] sm:$0xff]  ;;  %v2179_v60 = vld [vmem:[%s9711_s9 + $0x590] sm:$0xff]  ;;  %vm9801_vm13 = vcmp.ge.s32.totalorder %v5736_v9, 32  ;;  %vm10049_vm2 = vmmov %vm10027_vm8 }
 0x52b   : > { %5250 = vmatprep.subr.msk.mxu1 %vm5869_vm12, %v1889_v63  ;;  %v2172_v61 = vld [vmem:[%s9711_s9 + $0x558] sm:$0xff] }
 0x52c   : > { %5251 = vmatpush2.msk.msra.mxu1 %vm5784_vm9, %v1881_v62  ;;  %v2171_v62 = vld [vmem:[%s9711_s9 + $0x550] sm:$0xff]  ;;  %v2164_v63 = vld [vmem:[%s9711_s9 + $0x518] sm:$0xff] }
 0x52d   : > { %v1875_v0 = vpop.permute.xlu0 %1874  ;;  %v1873_v1 = vpop.permute.xlu1 %1872 }
 0x52e   : > { %v1880_v2 = vsel %vm9987_vm14, %v1873_v1, %v1875_v0  ;;  %v1888_v16 = vsel %vm9988_vm11, %v1875_v0, %v1873_v1  ;;  %v2163_v0 = vld [vmem:[%s9711_s9 + $0x510] sm:$0xff]  ;;  %v2156_v1 = vld [vmem:[%s9711_s9 + $0x4d8] sm:$0xff]  ;;  %vm10050_vm14 = vmmov %vm10049_vm2  ;;  %vm9800_vm11 = vcmask 252928  }
 0x52f   : > { %5252 = vmatprep.subr.msk.mxu1 %vm5869_vm12, %v1888_v16  ;;  %v2155_v16 = vld [vmem:[%s9711_s9 + $0x4d0] sm:$0xff]  ;;  %vm9798_vm12 = vcmask 793600  }
 0x530   : > { %5253 = vmatpush2.msk.msra.mxu1 %vm5784_vm9, %v1880_v2  ;;  %v2153_v2 = vld [vmem:[%s9711_s9 + $0x4c0] sm:$0xff] }
 0x531   : > { %1981 = vmatmul.mubr.f32.vlgmr.msra.gmra.mxu1 %v1894_v3  ;;  %2334 = vmatprep.subr.mxu1 %v2124_v5  ;;  %v2146_v3 = vld [vmem:[%s9711_s9 + $0x488] sm:$0xff]  ;;  %v2148_v5 = vld [vmem:[%s9711_s9 + $0x498] sm:$0xff] }
 0x532   : > { %5255 = vmatprep.mubr.msk.f32.mxu1 %vm9799_vm0, %v1897_v4  ;;  %2335 = vmatpush1.msra.mxu1 %v2123_v6  ;;  %v2145_v4 = vld [vmem:[%s9711_s9 + $0x480] sm:$0xff]  ;;  %v2147_v6 = vld [vmem:[%s9711_s9 + $0x490] sm:$0xff] }
 0x533   : > { %2336 = vmatprep.subr.mxu1 %v2116_v7  ;;  %2314 = vmatpush2.msra.mxu0 %v2153_v2  ;;  %v2138_v7 = vld [vmem:[%s9711_s9 + $0x448] sm:$0xff]  ;;  %v2061_v2 = vld [vmem:[%s9711_s9 + $0x1e0] sm:$0xff] }
 0x534   : > { %2337 = vmatpush1.msra.mxu1 %v2115_v14  ;;  %2315 = vmatprep.subr.mxu0 %v2146_v3  ;;  %v2140_v14 = vld [vmem:[%s9711_s9 + $0x458] sm:$0xff]  ;;  %v2054_v3 = vld [vmem:[%s9711_s9 + $0x1a8] sm:$0xff] }
 0x535   : > { %1987 = vmatmul.mubr.f32.gmra.mxu1 %v1896_v8  ;;  %2338 = vmatprep.subr.mxu1 %v2108_v35  ;;  %v2137_v8 = vld [vmem:[%s9711_s9 + $0x440] sm:$0xff]  ;;  %v2139_v35 = vld [vmem:[%s9711_s9 + $0x450] sm:$0xff] }
 0x536   : > { %2339 = vmatpush1.msra.mxu1 %v2107_v11  ;;  %2316 = vmatpush2.msra.mxu0 %v2145_v4  ;;  %v2130_v11 = vld [vmem:[%s9711_s9 + $0x408] sm:$0xff]  ;;  %v2053_v4 = vld [vmem:[%s9711_s9 + $0x1a0] sm:$0xff] }
 0x537   : > { %2340 = vmatprep.subr.mxu1 %v2100_v12  ;;  %2317 = vmatprep.subr.mxu0 %v2138_v7  ;;  %v2132_v12 = vld [vmem:[%s9711_s9 + $0x418] sm:$0xff]  ;;  %v2046_v7 = vld [vmem:[%s9711_s9 + $0x168] sm:$0xff] }
 0x538   : > { %2341 = vmatpush1.msra.mxu1 %v2099_v13  ;;  %2318 = vmatpush2.msra.mxu0 %v2137_v8  ;;  %v2129_v13 = vld [vmem:[%s9711_s9 + $0x400] sm:$0xff] }
 0x539   : > { %2342 = vmatprep.subr.mxu1 %v2092_v15  ;;  %2319 = vmatprep.subr.mxu0 %v2130_v11  ;;  %v2131_v15 = vld [vmem:[%s9711_s9 + $0x410] sm:$0xff]  ;;  %v2045_v8 = vld [vmem:[%s9711_s9 + $0x160] sm:$0xff]  ;;  %v2038_v11 = vld [vmem:[%s9711_s9 + $0x128] sm:$0xff] }
 0x53a   : > { %2343 = vmatpush1.msra.mxu1 %v2091_v17  ;;  %2320 = vmatpush2.msra.mxu0 %v2129_v13  ;;  %v2126_v17 = vld [vmem:[%s9711_s9 + $0x3e8] sm:$0xff]  ;;  %v2037_v13 = vld [vmem:[%s9711_s9 + $0x120] sm:$0xff] }
 0x53b   : > { %2344 = vmatprep.subr.mxu1 %v2084_v18  ;;  %v2128_v18 = vld [vmem:[%s9711_s9 + $0x3f8] sm:$0xff]  ;;  %2411 = vmatprep.subr.mxu0 %v2126_v17  ;;  %v2030_v17 = vld [vmem:[%s9711_s9 + $0xe8] sm:$0xff] }
 0x53c   : > { %2345 = vmatpush1.msra.mxu1 %v2083_v19  ;;  %v1903_v19 = vpop.permute.xlu1 %1902 }
 0x53d   : > { %2346 = vmatprep.subr.mxu1 %v2076_v20 }
 0x53e   : > { %2347 = vmatpush1.msra.mxu1 %v2075_v22 }
 0x53f   : > { %2348 = vmatprep.subr.mxu1 %v2068_v23 }
 0x540   : > { %2349 = vmatpush1.msra.mxu1 %v2067_v24 }
 0x541   : > { %2350 = vmatprep.subr.mxu1 %v2060_v26 }
 0x542   : > { %2351 = vmatpush1.msra.mxu1 %v2059_v27  ;;  %v1908_v27 = vpop.permute.xlu0 %1907 }
 0x543   : > { %2352 = vmatprep.subr.mxu1 %v2052_v28 }
 0x544   : > { %2353 = vmatpush1.msra.mxu1 %v2051_v29 }
 0x545   : > { %2354 = vmatprep.subr.mxu1 %v2044_v30 }
 0x546   : > { %2355 = vmatpush1.msra.mxu1 %v2043_v31 }
 0x547   : > { %2356 = vmatprep.subr.mxu1 %v2036_v33  ;;  %v2125_v33 = vld [vmem:[%s9711_s9 + $0x3e0] sm:$0xff] }
 0x548   : > { %2357 = vmatpush1.msra.mxu1 %v2035_v34  ;;  %v2127_v34 = vld [vmem:[%s9711_s9 + $0x3f0] sm:$0xff] }
 0x549   : > { %2358 = vmatprep.subr.mxu1 %v2028_v36 }
 0x54a   : > { %2359 = vmatpush1.msra.mxu1 %v2027_v21 }
 0x54b   : > { %2360 = vmatprep.subr.mxu1 %v2020_v37  ;;  %v2118_v37 = vld [vmem:[%s9711_s9 + $0x3a8] sm:$0xff] }
 0x54c   : > { %2361 = vmatpush1.msra.mxu1 %v2019_v38  ;;  %v2120_v38 = vld [vmem:[%s9711_s9 + $0x3b8] sm:$0xff] }
 0x54d   : > { %2362 = vmatprep.subr.mxu1 %v2012_v39  ;;  %v2117_v39 = vld [vmem:[%s9711_s9 + $0x3a0] sm:$0xff] }
 0x54e   : > { %2363 = vmatpush1.msra.mxu1 %v2011_v40  ;;  %v2119_v40 = vld [vmem:[%s9711_s9 + $0x3b0] sm:$0xff] }
 0x54f   : > { %2364 = vmatprep.subr.mxu1 %v2004_v42 }
 0x550   : > { %2365 = vmatpush1.msra.mxu1 %v2003_v50  ;;  %v2110_v50 = vld [vmem:[%s9711_s9 + $0x368] sm:$0xff] }
 0x551   : > { %2366 = vmatprep.subr.mxu1 %v2252_v47  ;;  %v2112_v47 = vld [vmem:[%s9711_s9 + $0x378] sm:$0xff] }
 0x552   : > { %2367 = vmatpush2.msra.mxu1 %v2251_v43  ;;  %v2109_v43 = vld [vmem:[%s9711_s9 + $0x360] sm:$0xff] }
 0x553   : > { %2368 = vmatprep.subr.mxu1 %v2244_v44  ;;  %v2111_v44 = vld [vmem:[%s9711_s9 + $0x370] sm:$0xff] }
 0x554   : > { %2369 = vmatpush2.msra.mxu1 %v2243_v41  ;;  %v2102_v41 = vld [vmem:[%s9711_s9 + $0x328] sm:$0xff] }
 0x555   : > { %2370 = vmatprep.subr.mxu1 %v2236_v45  ;;  %v2104_v45 = vld [vmem:[%s9711_s9 + $0x338] sm:$0xff] }
 0x556   : > { %2371 = vmatpush2.msra.mxu1 %v2235_v46  ;;  %v2101_v46 = vld [vmem:[%s9711_s9 + $0x320] sm:$0xff] }
 0x557   : > { %2372 = vmatprep.subr.mxu1 %v2228_v48  ;;  %v2103_v48 = vld [vmem:[%s9711_s9 + $0x330] sm:$0xff] }
 0x558   : > { %2373 = vmatpush2.msra.mxu1 %v2227_v49  ;;  %v2094_v49 = vld [vmem:[%s9711_s9 + $0x2e8] sm:$0xff] }
 0x559   : > { %2374 = vmatprep.subr.mxu1 %v2220_v51  ;;  %v2096_v51 = vld [vmem:[%s9711_s9 + $0x2f8] sm:$0xff] }
 0x55a   : > { %2375 = vmatpush2.msra.mxu1 %v2219_v25  ;;  %v2093_v25 = vld [vmem:[%s9711_s9 + $0x2e0] sm:$0xff] }
 0x55b   : > { %2376 = vmatprep.subr.mxu1 %v2212_v53  ;;  %v2095_v53 = vld [vmem:[%s9711_s9 + $0x2f0] sm:$0xff] }
 0x55c   : > { %2377 = vmatpush2.msra.mxu1 %v2211_v54  ;;  %v2086_v54 = vld [vmem:[%s9711_s9 + $0x2a8] sm:$0xff] }
 0x55d   : > { %2378 = vmatprep.subr.mxu1 %v2204_v55  ;;  %v2088_v55 = vld [vmem:[%s9711_s9 + $0x2b8] sm:$0xff] }
 0x55e   : > { %2379 = vmatpush2.msra.mxu1 %v2203_v56  ;;  %v2085_v56 = vld [vmem:[%s9711_s9 + $0x2a0] sm:$0xff] }
 0x55f   : > { %2380 = vmatprep.subr.mxu1 %v2196_v32  ;;  %v2087_v32 = vld [vmem:[%s9711_s9 + $0x2b0] sm:$0xff] }
 0x560   : > { %2381 = vmatpush2.msra.mxu1 %v2195_v57  ;;  %v2078_v57 = vld [vmem:[%s9711_s9 + $0x268] sm:$0xff] }
 0x561   : > { %2382 = vmatprep.subr.mxu1 %v2188_v52  ;;  %v2080_v52 = vld [vmem:[%s9711_s9 + $0x278] sm:$0xff] }
 0x562   : > { %2383 = vmatpush2.msra.mxu1 %v2187_v58  ;;  %v2077_v58 = vld [vmem:[%s9711_s9 + $0x260] sm:$0xff] }
 0x563   : > { %2384 = vmatprep.subr.mxu1 %v2180_v59  ;;  %v2079_v59 = vld [vmem:[%s9711_s9 + $0x270] sm:$0xff] }
 0x564   : > { %2385 = vmatpush2.msra.mxu1 %v2179_v60  ;;  %v2070_v60 = vld [vmem:[%s9711_s9 + $0x228] sm:$0xff] }
 0x565   : > { %2386 = vmatprep.subr.mxu1 %v2172_v61  ;;  %v2072_v61 = vld [vmem:[%s9711_s9 + $0x238] sm:$0xff] }
 0x566   : > { %2387 = vmatpush2.msra.mxu1 %v2171_v62  ;;  %v2069_v62 = vld [vmem:[%s9711_s9 + $0x220] sm:$0xff] }
 0x567   : > { %2388 = vmatprep.subr.mxu1 %v2164_v63  ;;  %v2071_v63 = vld [vmem:[%s9711_s9 + $0x230] sm:$0xff] }
 0x568   : > { %2389 = vmatpush2.msra.mxu1 %v2163_v0  ;;  %v2062_v0 = vld [vmem:[%s9711_s9 + $0x1e8] sm:$0xff] }
 0x569   : > { %2390 = vmatprep.subr.mxu1 %v2156_v1  ;;  %v2064_v1 = vld [vmem:[%s9711_s9 + $0x1f8] sm:$0xff] }
 0x56a   : > { %2391 = vmatpush2.msra.mxu1 %v2155_v16  ;;  %v2063_v16 = vld [vmem:[%s9711_s9 + $0x1f0] sm:$0xff] }
 0x56b   : > { %2392 = vmatprep.subr.mxu1 %v2148_v5  ;;  %v2056_v5 = vld [vmem:[%s9711_s9 + $0x1b8] sm:$0xff] }
 0x56c   : > { %2393 = vmatpush2.msra.mxu1 %v2147_v6  ;;  %v2055_v6 = vld [vmem:[%s9711_s9 + $0x1b0] sm:$0xff] }
 0x56d   : > { %2394 = vmatprep.subr.mxu1 %v2140_v14  ;;  %v2048_v14 = vld [vmem:[%s9711_s9 + $0x178] sm:$0xff] }
 0x56e   : > { %2395 = vmatpush2.msra.mxu1 %v2139_v35  ;;  %v2047_v35 = vld [vmem:[%s9711_s9 + $0x170] sm:$0xff] }
 0x56f   : > { %2396 = vmatprep.subr.mxu1 %v2132_v12  ;;  %v2040_v12 = vld [vmem:[%s9711_s9 + $0x138] sm:$0xff] }
 0x570   : > { %2397 = vmatpush2.msra.mxu1 %v2131_v15  ;;  %v2039_v15 = vld [vmem:[%s9711_s9 + $0x130] sm:$0xff] }
 0x571   : > { %2488 = vmatprep.subr.mxu1 %v2128_v18  ;;  %v2032_v18 = vld [vmem:[%s9711_s9 + $0xf8] sm:$0xff] }
 0x5f1   : > { %v1982_v20 = vpop.f32.mrf.mxu1 }
 0x5f2   : > { %v1983_v22 = vadd.f32 %v1982_v20, %v1903_v19  ;;  %v2031_v20 = vld [vmem:[%s9711_s9 + $0xf0] sm:$0xff] }
 0x5f3   : > { %v1984_v23 = vpop.f32.mrf.mxu1 }
 0x5f4   : > { %v6855_v24 = vmax.f32 %v1983_v22, 0.0  ;;  %v1985_v26 = vadd.f32 %v1984_v23, %v1903_v19  ;;  %v2029_v19 = vld [vmem:[%s9711_s9 + $0xe0] sm:$0xff]  ;;  %v2022_v22 = vld [vmem:[%s9711_s9 + $0xa8] sm:$0xff]  ;;  %v2024_v23 = vld [vmem:[%s9711_s9 + $0xb8] sm:$0xff] }
 0x5f5   : > { %v1988_v28 = vpop.f32.mrf.mxu1 }
 0x5f6   : > { %1997 = vst [vmem:[%s6853_s23] sm:$0xff] %v6855_v24  ;;  %v1994_v29 = vmax.f32 %v1985_v26, 0.0  ;;  %v1989_v30 = vadd.f32 %v1988_v28, %v1908_v27  ;;  %v2021_v26 = vld [vmem:[%s9711_s9 + $0xa0] sm:$0xff]  ;;  %v2014_v28 = vld [vmem:[%s9711_s9 + $0x68] sm:$0xff] }
 0x5f7   : > { %v1990_v31 = vpop.f32.mrf.mxu1 }
 0x5f8   : > { %1998 = vst [vmem:[%s6853_s23 + $0x8] sm:$0xff] %v1994_v29  ;;  %v6866_v36 = vmax.f32 %v1989_v30, 0.0  ;;  %v1991_v21 = vadd.f32 %v1990_v31, %v1908_v27  ;;  %2321 = vmatprep.mubr.f32.mxu0 %v1994_v29  ;;  %2398 = vmatprep.mubr.f32.mxu1 %v1994_v29  ;;  %v2023_v27 = vld [vmem:[%s9711_s9 + $0xb0] sm:$0xff]  ;;  %v2013_v30 = vld [vmem:[%s9711_s9 + $0x60] sm:$0xff] }
 0x5f9   : > { %2322 = vmatmul.mubr.f32.vlgmr.msra.gmra.mxu0 %v6855_v24  ;;  %2399 = vmatmul.mubr.f32.vlgmr.msra.gmra.mxu1 %v6855_v24  ;;  %v2015_v31 = vld [vmem:[%s9711_s9 + $0x70] sm:$0xff] }
 0x5fa   : > { %1999 = vst [vmem:[%s6853_s23 + $0x10] sm:$0xff] %v6866_v36  ;;  %v6884_v42 = vmax.f32 %v1991_v21, 0.0  ;;  %2412 = vmatpush1.msra.mxu0 %v2125_v33  ;;  %2489 = vmatpush1.msra.mxu1 %v2127_v34  ;;  %v2006_v33 = vld [vmem:[%s9711_s9 + $0x28] sm:$0xff]  ;;  %v2008_v34 = vld [vmem:[%s9711_s9 + $0x38] sm:$0xff]  ;;  %v2005_v21 = vld [vmem:[%s9711_s9 + $0x20] sm:$0xff] }
 0x5fb   : > { %2413 = vmatprep.subr.mxu0 %v2118_v37  ;;  %2490 = vmatprep.subr.mxu1 %v2120_v38  ;;  %v2007_v37 = vld [vmem:[%s9711_s9 + $0x30] sm:$0xff]  ;;  %v2254_v38 = vld [vmem:[%s9711_s9 + $0x7e8] sm:$0xff] }
 0x5fc   : > { %2000 = vst [vmem:[%s6853_s23 + $0x18] sm:$0xff] %v6884_v42  ;;  %2414 = vmatpush1.msra.mxu0 %v2117_v39  ;;  %2491 = vmatpush1.msra.mxu1 %v2119_v40  ;;  %v2256_v39 = vld [vmem:[%s9711_s9 + $0x7f8] sm:$0xff]  ;;  %v2253_v40 = vld [vmem:[%s9711_s9 + $0x7e0] sm:$0xff]  ;;  %s5534_s23 = smov 32  }
 0x5fd   : > { %2327 = vmatprep.mubr.f32.mxu0 %v6884_v42  ;;  %2404 = vmatprep.mubr.f32.mxu1 %v6884_v42 }
 0x5fe   : > { %2415 = vmatprep.subr.mxu0 %v2110_v50  ;;  %2492 = vmatprep.subr.mxu1 %v2112_v47  ;;  %v2255_v50 = vld [vmem:[%s9711_s9 + $0x7f0] sm:$0xff]  ;;  %v2246_v47 = vld [vmem:[%s9711_s9 + $0x7a8] sm:$0xff] }
 0x5ff   : > { %2328 = vmatmul.mubr.f32.gmra.mxu0 %v6866_v36  ;;  %2405 = vmatmul.mubr.f32.gmra.mxu1 %v6866_v36 }
 0x600   : > { %2416 = vmatpush1.msra.mxu0 %v2109_v43  ;;  %2493 = vmatpush1.msra.mxu1 %v2111_v44  ;;  %v2248_v43 = vld [vmem:[%s9711_s9 + $0x7b8] sm:$0xff]  ;;  %v2245_v44 = vld [vmem:[%s9711_s9 + $0x7a0] sm:$0xff] }
 0x601   : > { %2417 = vmatprep.subr.mxu0 %v2102_v41  ;;  %2475 = vmatprep.mubr.f32.mxu0 %v1994_v29  ;;  %v2247_v41 = vld [vmem:[%s9711_s9 + $0x7b0] sm:$0xff] }
 0x602   : > { %2494 = vmatprep.subr.mxu1 %v2104_v45  ;;  %2552 = vmatprep.mubr.f32.mxu1 %v1994_v29  ;;  %v2016_v29 = vld [vmem:[%s9711_s9 + $0x78] sm:$0xff]  ;;  %v2238_v45 = vld [vmem:[%s9711_s9 + $0x768] sm:$0xff] }
 0x603   : > { %2418 = vmatpush1.msra.mxu0 %v2101_v46  ;;  %2495 = vmatpush1.msra.mxu1 %v2103_v48  ;;  %v2240_v46 = vld [vmem:[%s9711_s9 + $0x778] sm:$0xff]  ;;  %v2237_v48 = vld [vmem:[%s9711_s9 + $0x760] sm:$0xff] }
 0x604   : > { %2419 = vmatprep.subr.mxu0 %v2094_v49  ;;  %2496 = vmatprep.subr.mxu1 %v2096_v51  ;;  %v2239_v49 = vld [vmem:[%s9711_s9 + $0x770] sm:$0xff]  ;;  %v2230_v51 = vld [vmem:[%s9711_s9 + $0x728] sm:$0xff] }
 0x605   : > { %2420 = vmatpush1.msra.mxu0 %v2093_v25  ;;  %2497 = vmatpush1.msra.mxu1 %v2095_v53  ;;  %v2232_v25 = vld [vmem:[%s9711_s9 + $0x738] sm:$0xff]  ;;  %v2229_v53 = vld [vmem:[%s9711_s9 + $0x720] sm:$0xff] }
 0x606   : > { %2421 = vmatprep.subr.mxu0 %v2086_v54  ;;  %2498 = vmatprep.subr.mxu1 %v2088_v55  ;;  %v2231_v54 = vld [vmem:[%s9711_s9 + $0x730] sm:$0xff]  ;;  %v2222_v55 = vld [vmem:[%s9711_s9 + $0x6e8] sm:$0xff] }
 0x607   : > { %2422 = vmatpush1.msra.mxu0 %v2085_v56  ;;  %2499 = vmatpush1.msra.mxu1 %v2087_v32  ;;  %v2224_v56 = vld [vmem:[%s9711_s9 + $0x6f8] sm:$0xff]  ;;  %v2221_v32 = vld [vmem:[%s9711_s9 + $0x6e0] sm:$0xff] }
 0x608   : > { %2423 = vmatprep.subr.mxu0 %v2078_v57  ;;  %2500 = vmatprep.subr.mxu1 %v2080_v52  ;;  %v2223_v57 = vld [vmem:[%s9711_s9 + $0x6f0] sm:$0xff]  ;;  %v2214_v52 = vld [vmem:[%s9711_s9 + $0x6a8] sm:$0xff] }
 0x609   : > { %2424 = vmatpush1.msra.mxu0 %v2077_v58  ;;  %2501 = vmatpush1.msra.mxu1 %v2079_v59  ;;  %v2216_v58 = vld [vmem:[%s9711_s9 + $0x6b8] sm:$0xff]  ;;  %v2213_v59 = vld [vmem:[%s9711_s9 + $0x6a0] sm:$0xff] }
 0x60a   : > { %2425 = vmatprep.subr.mxu0 %v2070_v60  ;;  %2502 = vmatprep.subr.mxu1 %v2072_v61  ;;  %v2215_v60 = vld [vmem:[%s9711_s9 + $0x6b0] sm:$0xff]  ;;  %v2206_v61 = vld [vmem:[%s9711_s9 + $0x668] sm:$0xff] }
 0x60b   : > { %2426 = vmatpush1.msra.mxu0 %v2069_v62  ;;  %2503 = vmatpush1.msra.mxu1 %v2071_v63  ;;  %v2208_v62 = vld [vmem:[%s9711_s9 + $0x678] sm:$0xff]  ;;  %v2205_v63 = vld [vmem:[%s9711_s9 + $0x660] sm:$0xff] }
 0x60c   : > { %2427 = vmatprep.subr.mxu0 %v2062_v0  ;;  %2504 = vmatprep.subr.mxu1 %v2064_v1  ;;  %v2207_v0 = vld [vmem:[%s9711_s9 + $0x670] sm:$0xff]  ;;  %v2198_v1 = vld [vmem:[%s9711_s9 + $0x628] sm:$0xff] }
 0x60d   : > { %2428 = vmatpush1.msra.mxu0 %v2061_v2  ;;  %2505 = vmatpush1.msra.mxu1 %v2063_v16  ;;  %v2200_v2 = vld [vmem:[%s9711_s9 + $0x638] sm:$0xff]  ;;  %v2197_v16 = vld [vmem:[%s9711_s9 + $0x620] sm:$0xff] }
 0x60e   : > { %2429 = vmatprep.subr.mxu0 %v2054_v3  ;;  %2506 = vmatprep.subr.mxu1 %v2056_v5  ;;  %v2199_v3 = vld [vmem:[%s9711_s9 + $0x630] sm:$0xff]  ;;  %v2190_v5 = vld [vmem:[%s9711_s9 + $0x5e8] sm:$0xff] }
 0x60f   : > { %2430 = vmatpush1.msra.mxu0 %v2053_v4  ;;  %2507 = vmatpush1.msra.mxu1 %v2055_v6  ;;  %v2192_v4 = vld [vmem:[%s9711_s9 + $0x5f8] sm:$0xff]  ;;  %v2189_v6 = vld [vmem:[%s9711_s9 + $0x5e0] sm:$0xff] }
 0x610   : > { %2431 = vmatprep.subr.mxu0 %v2046_v7  ;;  %2508 = vmatprep.subr.mxu1 %v2048_v14  ;;  %v2191_v7 = vld [vmem:[%s9711_s9 + $0x5f0] sm:$0xff]  ;;  %v2182_v14 = vld [vmem:[%s9711_s9 + $0x5a8] sm:$0xff] }
 0x611   : > { %2432 = vmatpush1.msra.mxu0 %v2045_v8  ;;  %2509 = vmatpush1.msra.mxu1 %v2047_v35  ;;  %v2184_v8 = vld [vmem:[%s9711_s9 + $0x5b8] sm:$0xff]  ;;  %v2181_v35 = vld [vmem:[%s9711_s9 + $0x5a0] sm:$0xff] }
 0x612   : > { %2433 = vmatprep.subr.mxu0 %v2038_v11  ;;  %2510 = vmatprep.subr.mxu1 %v2040_v12  ;;  %v2183_v11 = vld [vmem:[%s9711_s9 + $0x5b0] sm:$0xff]  ;;  %v2174_v12 = vld [vmem:[%s9711_s9 + $0x568] sm:$0xff] }
 0x613   : > { %2434 = vmatpush1.msra.mxu0 %v2037_v13  ;;  %2511 = vmatpush1.msra.mxu1 %v2039_v15  ;;  %v2176_v13 = vld [vmem:[%s9711_s9 + $0x578] sm:$0xff]  ;;  %v2173_v15 = vld [vmem:[%s9711_s9 + $0x560] sm:$0xff] }
 0x614   : > { %2435 = vmatprep.subr.mxu0 %v2030_v17  ;;  %2512 = vmatprep.subr.mxu1 %v2032_v18  ;;  %v2175_v17 = vld [vmem:[%s9711_s9 + $0x570] sm:$0xff]  ;;  %v2166_v18 = vld [vmem:[%s9711_s9 + $0x528] sm:$0xff] }
 0x615   : > { %2436 = vmatpush1.msra.mxu0 %v2029_v19  ;;  %2513 = vmatpush1.msra.mxu1 %v2031_v20  ;;  %v2168_v19 = vld [vmem:[%s9711_s9 + $0x538] sm:$0xff]  ;;  %v2165_v20 = vld [vmem:[%s9711_s9 + $0x520] sm:$0xff] }
 0x616   : > { %2437 = vmatprep.subr.mxu0 %v2022_v22  ;;  %2514 = vmatprep.subr.mxu1 %v2024_v23  ;;  %v2167_v22 = vld [vmem:[%s9711_s9 + $0x530] sm:$0xff]  ;;  %v2158_v23 = vld [vmem:[%s9711_s9 + $0x4e8] sm:$0xff] }
 0x617   : > { %2438 = vmatpush1.msra.mxu0 %v2021_v26  ;;  %2515 = vmatpush1.msra.mxu1 %v2023_v27  ;;  %v2160_v26 = vld [vmem:[%s9711_s9 + $0x4f8] sm:$0xff]  ;;  %v2157_v27 = vld [vmem:[%s9711_s9 + $0x4e0] sm:$0xff] }
 0x618   : > { %2439 = vmatprep.subr.mxu0 %v2014_v28  ;;  %2516 = vmatprep.subr.mxu1 %v2016_v29  ;;  %v2159_v28 = vld [vmem:[%s9711_s9 + $0x4f0] sm:$0xff]  ;;  %v2150_v29 = vld [vmem:[%s9711_s9 + $0x4a8] sm:$0xff] }
 0x619   : > { %2440 = vmatpush1.msra.mxu0 %v2013_v30  ;;  %2517 = vmatpush1.msra.mxu1 %v2015_v31  ;;  %v2152_v30 = vld [vmem:[%s9711_s9 + $0x4b8] sm:$0xff]  ;;  %v2149_v31 = vld [vmem:[%s9711_s9 + $0x4a0] sm:$0xff] }
 0x61a   : > { %2441 = vmatprep.subr.mxu0 %v2006_v33  ;;  %2518 = vmatprep.subr.mxu1 %v2008_v34  ;;  %v2151_v33 = vld [vmem:[%s9711_s9 + $0x4b0] sm:$0xff]  ;;  %v2142_v34 = vld [vmem:[%s9711_s9 + $0x468] sm:$0xff] }
 0x61b   : > { %2442 = vmatpush1.msra.mxu0 %v2005_v21  ;;  %2519 = vmatpush1.msra.mxu1 %v2007_v37  ;;  %v2144_v21 = vld [vmem:[%s9711_s9 + $0x478] sm:$0xff]  ;;  %v2141_v37 = vld [vmem:[%s9711_s9 + $0x460] sm:$0xff] }
 0x61c   : > { %2443 = vmatprep.subr.mxu0 %v2254_v38  ;;  %2520 = vmatprep.subr.mxu1 %v2256_v39  ;;  %v2143_v38 = vld [vmem:[%s9711_s9 + $0x470] sm:$0xff]  ;;  %v2134_v39 = vld [vmem:[%s9711_s9 + $0x428] sm:$0xff] }
 0x61d   : > { %2444 = vmatpush2.msra.mxu0 %v2253_v40  ;;  %2521 = vmatpush2.msra.mxu1 %v2255_v50  ;;  %v2136_v40 = vld [vmem:[%s9711_s9 + $0x438] sm:$0xff]  ;;  %v2133_v50 = vld [vmem:[%s9711_s9 + $0x420] sm:$0xff] }
 0x61e   : > { %2445 = vmatprep.subr.mxu0 %v2246_v47  ;;  %2522 = vmatprep.subr.mxu1 %v2248_v43  ;;  %v2135_v47 = vld [vmem:[%s9711_s9 + $0x430] sm:$0xff] }
 0x61f   : > { %2446 = vmatpush2.msra.mxu0 %v2245_v44  ;;  %2523 = vmatpush2.msra.mxu1 %v2247_v41 }
 0x620   : > { %2447 = vmatprep.subr.mxu0 %v2238_v45  ;;  %2524 = vmatprep.subr.mxu1 %v2240_v46 }
 0x621   : > { %2448 = vmatpush2.msra.mxu0 %v2237_v48  ;;  %2525 = vmatpush2.msra.mxu1 %v2239_v49 }
 0x622   : > { %2449 = vmatprep.subr.mxu0 %v2230_v51  ;;  %2526 = vmatprep.subr.mxu1 %v2232_v25 }
 0x623   : > { %2450 = vmatpush2.msra.mxu0 %v2229_v53  ;;  %2527 = vmatpush2.msra.mxu1 %v2231_v54 }
 0x624   : > { %2451 = vmatprep.subr.mxu0 %v2222_v55  ;;  %2528 = vmatprep.subr.mxu1 %v2224_v56 }
 0x625   : > { %2452 = vmatpush2.msra.mxu0 %v2221_v32  ;;  %2529 = vmatpush2.msra.mxu1 %v2223_v57 }
 0x626   : > { %2453 = vmatprep.subr.mxu0 %v2214_v52  ;;  %2530 = vmatprep.subr.mxu1 %v2216_v58 }
 0x627   : > { %2454 = vmatpush2.msra.mxu0 %v2213_v59  ;;  %2531 = vmatpush2.msra.mxu1 %v2215_v60 }
 0x628   : > { %2455 = vmatprep.subr.mxu0 %v2206_v61  ;;  %2532 = vmatprep.subr.mxu1 %v2208_v62 }
 0x629   : > { %2456 = vmatpush2.msra.mxu0 %v2205_v63  ;;  %2533 = vmatpush2.msra.mxu1 %v2207_v0 }
 0x62a   : > { %2457 = vmatprep.subr.mxu0 %v2198_v1  ;;  %2534 = vmatprep.subr.mxu1 %v2200_v2 }
 0x62b   : > { %2458 = vmatpush2.msra.mxu0 %v2197_v16  ;;  %2535 = vmatpush2.msra.mxu1 %v2199_v3 }
 0x62c   : > { %2459 = vmatprep.subr.mxu0 %v2190_v5  ;;  %2536 = vmatprep.subr.mxu1 %v2192_v4 }
 0x62d   : > { %2460 = vmatpush2.msra.mxu0 %v2189_v6  ;;  %2537 = vmatpush2.msra.mxu1 %v2191_v7 }
 0x62e   : > { %2461 = vmatprep.subr.mxu0 %v2182_v14  ;;  %2538 = vmatprep.subr.mxu1 %v2184_v8 }
 0x62f   : > { %2462 = vmatpush2.msra.mxu0 %v2181_v35  ;;  %2539 = vmatpush2.msra.mxu1 %v2183_v11 }
 0x630   : > { %2463 = vmatprep.subr.mxu0 %v2174_v12  ;;  %2540 = vmatprep.subr.mxu1 %v2176_v13 }
 0x631   : > { %2464 = vmatpush2.msra.mxu0 %v2173_v15  ;;  %2541 = vmatpush2.msra.mxu1 %v2175_v17 }
 0x632   : > { %2465 = vmatprep.subr.mxu0 %v2166_v18  ;;  %2542 = vmatprep.subr.mxu1 %v2168_v19 }
 0x633   : > { %2466 = vmatpush2.msra.mxu0 %v2165_v20  ;;  %2543 = vmatpush2.msra.mxu1 %v2167_v22 }
 0x634   : > { %2467 = vmatprep.subr.mxu0 %v2158_v23  ;;  %2544 = vmatprep.subr.mxu1 %v2160_v26 }
 0x635   : > { %2468 = vmatpush2.msra.mxu0 %v2157_v27  ;;  %2545 = vmatpush2.msra.mxu1 %v2159_v28 }
 0x636   : > { %2469 = vmatprep.subr.mxu0 %v2150_v29  ;;  %2546 = vmatprep.subr.mxu1 %v2152_v30 }
 0x637   : > { %2470 = vmatpush2.msra.mxu0 %v2149_v31  ;;  %2547 = vmatpush2.msra.mxu1 %v2151_v33  ;;  %v7555_v33 = vld [vmem:[%s9712_s10 + $0x8] sm:$0xff] }
 0x638   : > { %2471 = vmatprep.subr.mxu0 %v2142_v34  ;;  %2548 = vmatprep.subr.mxu1 %v2144_v21  ;;  %10010 = vst [vmem:[#allocation24_spill] sm:$0xff] %v7555_v33 }
 0x639   : > { %2472 = vmatpush2.msra.mxu0 %v2141_v37  ;;  %2549 = vmatpush2.msra.mxu1 %v2143_v38 }
 0x63a   : > { %2473 = vmatprep.subr.mxu0 %v2134_v39  ;;  %2550 = vmatprep.subr.mxu1 %v2136_v40 }
 0x63b   : > { %2474 = vmatpush2.msra.mxu0 %v2133_v50  ;;  %2551 = vmatpush2.msra.mxu1 %v2135_v47 }
 0x63c   : > { %2476 = vmatmul.mubr.f32.vlgmr.msra.gmra.mxu0 %v6855_v24  ;;  %2553 = vmatmul.mubr.f32.vlgmr.msra.gmra.mxu1 %v6855_v24 }
 0x63d   : > { %2481 = vmatprep.mubr.f32.mxu0 %v6884_v42  ;;  %2558 = vmatprep.mubr.f32.mxu1 %v6884_v42 }
 0x640   : > { %2482 = vmatmul.mubr.f32.gmra.mxu0 %v6866_v36  ;;  %2559 = vmatmul.mubr.f32.gmra.mxu1 %v6866_v36 }
 0x641   : > { %5282 = vmatprep.mubr.msk.f32.mxu0 %vm9799_vm0, %v7555_v33  ;;  %5308 = vmatprep.mubr.msk.f32.mxu1 %vm9799_vm0, %v7555_v33  ;;  %vm9803_vm0 = vcmask 269312  }
 0x6b9   : > { %v7258_v43 = vpop.f32.mrf.mxu0  ;;  %v7260_v44 = vpop.f32.mrf.mxu1 }
 0x6ba   : > { %3081 = vrot.lane.b32.xlu1 %v7260_v44, %s5530_s1  ;;  %3077 = vrot.lane.b32.xlu0 %v7258_v43, %s5530_s1 }
 0x6bb   : > { %v7294_v24 = vpop.f32.mrf.mxu0  ;;  %v7308_v36 = vpop.f32.mrf.mxu1 }
 0x6be   : > { %2998 = vrot.lane.b32.xlu1 %v7260_v44, %s5531_s28  ;;  %2994 = vrot.lane.b32.xlu0 %v7258_v43, %s5531_s28 }
 0x6bf   : > { %v7318_v42 = vpop.f32.mrf.mxu0  ;;  %v7344_v41 = vpop.f32.mrf.mxu1 }
 0x6c1   : > { %v7366_v45 = vpop.f32.mrf.mxu0  ;;  %v7380_v46 = vpop.f32.mrf.mxu1 }
 0x6c2   : > { %2916 = vrot.lane.b32.xlu1 %v7260_v44, %s9939_s2  ;;  %2912 = vrot.lane.b32.xlu0 %v7258_v43, %s9939_s2 }
 0x6c6   : > { %2840 = vrot.lane.b32.xlu1 %v7260_v44, %s9936_s3  ;;  %2836 = vrot.lane.b32.xlu0 %v7258_v43, %s9936_s3 }
 0x6ca   : > { %3164 = vrot.lane.b32.xlu1 %v7260_v44, %s5532_s27  ;;  %2753 = vrot.lane.b32.xlu0 %v7258_v43, %s5533_s16 }
 0x6ce   : > { %2757 = vrot.lane.b32.xlu1 %v7260_v44, %s5533_s16  ;;  %2670 = vrot.lane.b32.xlu0 %v7258_v43, %s5534_s23 }
 0x6d2   : > { %2674 = vrot.lane.b32.xlu1 %v7260_v44, %s5534_s23  ;;  %2587 = vrot.lane.b32.xlu0 %v7258_v43, %s5535_s24 }
 0x6d6   : > { %2591 = vrot.lane.b32.xlu1 %v7260_v44, %s5535_s24  ;;  %3160 = vrot.lane.b32.xlu0 %v7258_v43, %s5532_s27 }
 0x6da   : > { %2838 = vrot.lane.b32.xlu1 %v7294_v24, %s9936_s3  ;;  %3079 = vrot.lane.b32.xlu0 %v7294_v24, %s5530_s1 }
 0x6de   : > { %2755 = vrot.lane.b32.xlu1 %v7294_v24, %s5533_s16  ;;  %2996 = vrot.lane.b32.xlu0 %v7294_v24, %s5531_s28 }
 0x6e2   : > { %2672 = vrot.lane.b32.xlu1 %v7294_v24, %s5534_s23  ;;  %2914 = vrot.lane.b32.xlu0 %v7294_v24, %s9939_s2 }
 0x6e6   : > { %2589 = vrot.lane.b32.xlu1 %v7294_v24, %s5535_s24  ;;  %3083 = vrot.lane.b32.xlu0 %v7308_v36, %s5530_s1 }
 0x6ea   : > { %3166 = vrot.lane.b32.xlu1 %v7308_v36, %s5532_s27  ;;  %3000 = vrot.lane.b32.xlu0 %v7308_v36, %s5531_s28 }
 0x6ee   : > { %2918 = vrot.lane.b32.xlu0 %v7308_v36, %s9939_s2  ;;  %3093 = vrot.lane.b32.xlu1 %v7318_v42, %s5530_s1 }
 0x6f2   : > { %2842 = vrot.lane.b32.xlu0 %v7308_v36, %s9936_s3  ;;  %3010 = vrot.lane.b32.xlu1 %v7318_v42, %s5531_s28 }
 0x6f6   : > { %3162 = vrot.lane.b32.xlu0 %v7294_v24, %s5532_s27  ;;  %2928 = vrot.lane.b32.xlu1 %v7318_v42, %s9939_s2 }
 0x6fa   : > { %2759 = vrot.lane.b32.xlu0 %v7308_v36, %s5533_s16  ;;  %2850 = vrot.lane.b32.xlu1 %v7318_v42, %s9936_s3 }
 0x6fc   : > { %v7410_v55 = vpop.f32.mrf.mxu1  ;;  %v7428_v58 = vpop.f32.mrf.mxu0 }
 0x6fd   : > { %9992 = vst [vmem:[#allocation6_spill] sm:$0xff] %v7410_v55  ;;  %9994 = vst [vmem:[#allocation8_spill] sm:$0xff] %v7428_v58 }
 0x6fe   : > { %2676 = vrot.lane.b32.xlu0 %v7308_v36, %s5534_s23  ;;  %2767 = vrot.lane.b32.xlu1 %v7318_v42, %s5533_s16  ;;  %v7446_v63 = vpop.f32.mrf.mxu1  ;;  %v7488_v8 = vpop.f32.mrf.mxu0 }
 0x6ff   : > { %9997 = vst [vmem:[#allocation11_spill] sm:$0xff] %v7446_v63  ;;  %9999 = vst [vmem:[#allocation13_spill] sm:$0xff] %v7488_v8 }
 0x700   : > { %v7514_v18 = vpop.f32.mrf.mxu0  ;;  %v7524_v22 = vpop.f32.mrf.mxu1 }
 0x701   : > { %10003 = vst [vmem:[#allocation17_spill] sm:$0xff] %v7514_v18  ;;  %10005 = vst [vmem:[#allocation19_spill] sm:$0xff] %v7524_v22 }
 0x702   : > { %2593 = vrot.lane.b32.xlu0 %v7308_v36, %s5535_s24  ;;  %2684 = vrot.lane.b32.xlu1 %v7318_v42, %s5534_s23  ;;  %v7534_v27 = vpop.f32.mrf.mxu1  ;;  %v7577_v39 = vpop.f32.mrf.mxu0 }
 0x703   : > { %10007 = vst [vmem:[#allocation21_spill] sm:$0xff] %v7534_v27  ;;  %10011 = vst [vmem:[#allocation25_spill] sm:$0xff] %v7577_v39 }
 0x706   : > { %3097 = vrot.lane.b32.xlu0 %v7344_v41, %s5530_s1  ;;  %2601 = vrot.lane.b32.xlu1 %v7318_v42, %s5535_s24 }
 0x70a   : > { %3014 = vrot.lane.b32.xlu0 %v7344_v41, %s5531_s28  ;;  %2854 = vrot.lane.b32.xlu1 %v7344_v41, %s9936_s3 }
 0x70e   : > { %2932 = vrot.lane.b32.xlu0 %v7344_v41, %s9939_s2  ;;  %3176 = vrot.lane.b32.xlu1 %v7318_v42, %s5532_s27 }
 0x712   : > { %3180 = vrot.lane.b32.xlu0 %v7344_v41, %s5532_s27  ;;  %2688 = vrot.lane.b32.xlu1 %v7344_v41, %s5534_s23 }
 0x716   : > { %2771 = vrot.lane.b32.xlu0 %v7344_v41, %s5533_s16  ;;  %2605 = vrot.lane.b32.xlu1 %v7344_v41, %s5535_s24 }
 0x71a   : > { %2852 = vrot.lane.b32.xlu0 %v7366_v45, %s9936_s3  ;;  %3095 = vrot.lane.b32.xlu1 %v7366_v45, %s5530_s1 }
 0x71e   : > { %2769 = vrot.lane.b32.xlu0 %v7366_v45, %s5533_s16  ;;  %3012 = vrot.lane.b32.xlu1 %v7366_v45, %s5531_s28 }
 0x722   : > { %2686 = vrot.lane.b32.xlu0 %v7366_v45, %s5534_s23  ;;  %2930 = vrot.lane.b32.xlu1 %v7366_v45, %s9939_s2 }
 0x726   : > { %2603 = vrot.lane.b32.xlu0 %v7366_v45, %s5535_s24  ;;  %3099 = vrot.lane.b32.xlu1 %v7380_v46, %s5530_s1 }
 0x72a   : > { %2856 = vrot.lane.b32.xlu0 %v7380_v46, %s9936_s3  ;;  %3016 = vrot.lane.b32.xlu1 %v7380_v46, %s5531_s28 }
 0x72c   : > { %v7390_v48 = vpop.permute.xlu1 %3081  ;;  %v7392_v49 = vpop.permute.xlu0 %3077 }
 0x72d   : > { %9989 = vst [vmem:[#allocation3_spill] sm:$0xff] %v7392_v49 }
 0x72e   : > { %2690 = vrot.lane.b32.xlu0 %v7380_v46, %s5534_s23  ;;  %2934 = vrot.lane.b32.xlu1 %v7380_v46, %s9939_s2 }
 0x730   : > { %v7398_v51 = vpop.permute.xlu1 %2998  ;;  %v7400_v25 = vpop.permute.xlu0 %2994 }
 0x731   : > { %9990 = vst [vmem:[#allocation4_spill] sm:$0xff] %v7400_v25 }
 0x732   : > { %2607 = vrot.lane.b32.xlu0 %v7380_v46, %s5535_s24  ;;  %3178 = vrot.lane.b32.xlu1 %v7366_v45, %s5532_s27 }
 0x734   : > { %v7406_v53 = vpop.permute.xlu1 %2916  ;;  %v7408_v54 = vpop.permute.xlu0 %2912 }
 0x735   : > { %9991 = vst [vmem:[#allocation5_spill] sm:$0xff] %v7408_v54 }
 0x736   : > { %3089 = vrot.lane.b32.xlu0 %v7410_v55, %s5530_s1  ;;  %2773 = vrot.lane.b32.xlu1 %v7380_v46, %s5533_s16 }
 0x738   : > { %v7416_v56 = vpop.permute.xlu1 %2840  ;;  %v7418_v32 = vpop.permute.xlu0 %2836 }
 0x739   : > { %9993 = vst [vmem:[#allocation7_spill] sm:$0xff] %v7416_v56 }
 0x73a   : > { %3006 = vrot.lane.b32.xlu0 %v7410_v55, %s5531_s28  ;;  %3182 = vrot.lane.b32.xlu1 %v7380_v46, %s5532_s27 }
 0x73c   : > { %v7424_v57 = vpop.permute.xlu1 %3164  ;;  %v7426_v52 = vpop.permute.xlu0 %2753 }
 0x73e   : > { %2924 = vrot.lane.b32.xlu0 %v7410_v55, %s9939_s2  ;;  %3085 = vrot.lane.b32.xlu1 %v7428_v58, %s5530_s1 }
 0x740   : > { %v7434_v59 = vpop.permute.xlu1 %2757  ;;  %v7436_v60 = vpop.permute.xlu0 %2670 }
 0x741   : > { %9995 = vst [vmem:[#allocation9_spill] sm:$0xff] %v7434_v59 }
 0x742   : > { %3168 = vrot.lane.b32.xlu0 %v7428_v58, %s5532_s27  ;;  %3002 = vrot.lane.b32.xlu1 %v7428_v58, %s5531_s28 }
 0x744   : > { %v7442_v61 = vpop.permute.xlu1 %2674  ;;  %v7444_v62 = vpop.permute.xlu0 %2587 }
 0x745   : > { %9996 = vst [vmem:[#allocation10_spill] sm:$0xff] %v7442_v61 }
 0x746   : > { %2830 = vrot.lane.b32.xlu0 %v7446_v63, %s9936_s3  ;;  %2920 = vrot.lane.b32.xlu1 %v7428_v58, %s9939_s2 }
 0x748   : > { %v7452_v0 = vpop.permute.xlu1 %2591  ;;  %v7454_v1 = vpop.permute.xlu0 %3160 }
 0x749   : > { %9998 = vst [vmem:[#allocation12_spill] sm:$0xff] %v7452_v0  ;;  %v700_v0 = vand.u32 31, %v5739_v10 }
 0x74a   : > { %2747 = vrot.lane.b32.xlu0 %v7446_v63, %s5533_s16  ;;  %2844 = vrot.lane.b32.xlu1 %v7428_v58, %s9936_s3 }
 0x74b   : > { %vm7622_vm9 = vcmp.ne.s32.totalorder %v700_v0, 0  ;;  %vm7650_vm1 = vcmp.ne.s32.totalorder %v700_v0, 31 }
 0x74c   : > { %v7460_v2 = vpop.permute.xlu1 %2838  ;;  %v7462_v16 = vpop.permute.xlu0 %3079 }
 0x74d   : > { %v3111_v10 = vsel %vm9804_vm3, %v7462_v16, %v7390_v48 }
 0x74e   : > { %2664 = vrot.lane.b32.xlu0 %v7446_v63, %s5534_s23  ;;  %2761 = vrot.lane.b32.xlu1 %v7428_v58, %s5533_s16 }
 0x750   : > { %v7468_v3 = vpop.permute.xlu1 %2755  ;;  %v7470_v5 = vpop.permute.xlu0 %2996 }
 0x752   : > { %2567 = vrot.lane.b32.xlu0 %v7446_v63, %s5535_s24  ;;  %2678 = vrot.lane.b32.xlu1 %v7428_v58, %s5534_s23 }
 0x754   : > { %v7476_v4 = vpop.permute.xlu1 %2672  ;;  %v7478_v6 = vpop.permute.xlu0 %2914 }
 0x756   : > { %3091 = vrot.lane.b32.xlu0 %v7446_v63, %s5530_s1  ;;  %2595 = vrot.lane.b32.xlu1 %v7428_v58, %s5535_s24 }
 0x758   : > { %v7484_v7 = vpop.permute.xlu1 %2589  ;;  %v7486_v14 = vpop.permute.xlu0 %3083 }
 0x75a   : > { %2846 = vrot.lane.b32.xlu0 %v7488_v8, %s9936_s3  ;;  %3087 = vrot.lane.b32.xlu1 %v7488_v8, %s5530_s1 }
 0x75c   : > { %v7494_v35 = vpop.permute.xlu1 %3166  ;;  %v7496_v11 = vpop.permute.xlu0 %3000 }
 0x75d   : > { %10000 = vst [vmem:[#allocation14_spill] sm:$0xff] %v7494_v35 }
 0x75e   : > { %3008 = vrot.lane.b32.xlu0 %v7446_v63, %s5531_s28  ;;  %3004 = vrot.lane.b32.xlu1 %v7488_v8, %s5531_s28 }
 0x760   : > { %v7502_v12 = vpop.permute.xlu0 %2918  ;;  %v7504_v13 = vpop.permute.xlu1 %3093 }
 0x761   : > { %10001 = vst [vmem:[#allocation15_spill] sm:$0xff] %v7504_v13 }
 0x762   : > { %2763 = vrot.lane.b32.xlu0 %v7488_v8, %s5533_s16  ;;  %2922 = vrot.lane.b32.xlu1 %v7488_v8, %s9939_s2 }
 0x764   : > { %v7510_v15 = vpop.permute.xlu0 %2842  ;;  %v7512_v17 = vpop.permute.xlu1 %3010 }
 0x765   : > { %10002 = vst [vmem:[#allocation16_spill] sm:$0xff] %v7512_v17 }
 0x766   : > { %2926 = vrot.lane.b32.xlu0 %v7446_v63, %s9939_s2  ;;  %2609 = vrot.lane.b32.xlu1 %v7514_v18, %s5535_s24 }
 0x768   : > { %v7520_v19 = vpop.permute.xlu0 %3162  ;;  %v7522_v20 = vpop.permute.xlu1 %2928 }
 0x769   : > { %10004 = vst [vmem:[#allocation18_spill] sm:$0xff] %v7522_v20 }
 0x76a   : > { %2680 = vrot.lane.b32.xlu0 %v7488_v8, %s5534_s23  ;;  %2862 = vrot.lane.b32.xlu1 %v7524_v22, %s9936_s3 }
 0x76c   : > { %v7530_v23 = vpop.permute.xlu0 %2759  ;;  %v7532_v26 = vpop.permute.xlu1 %2850 }
 0x76d   : > { %10006 = vst [vmem:[#allocation20_spill] sm:$0xff] %v7530_v23 }
 0x76e   : > { %2832 = vrot.lane.b32.xlu1 %v7534_v27, %s9936_s3  ;;  %3101 = vrot.lane.b32.xlu0 %v7514_v18, %s5530_s1 }
 0x770   : > { %v7540_v28 = vpop.permute.xlu0 %2676  ;;  %v7542_v29 = vpop.permute.xlu1 %2767 }
 0x771   : > { %10008 = vst [vmem:[#allocation22_spill] sm:$0xff] %v7540_v28  ;;  %v693_v28 = vand.u32 31, %v5736_v9 }
 0x772   : > { %2749 = vrot.lane.b32.xlu1 %v7534_v27, %s5533_s16  ;;  %3018 = vrot.lane.b32.xlu0 %v7514_v18, %s5531_s28 }
 0x773   : > { %vm7631_vm15 = vcmp.ne.s32.totalorder %v693_v28, 0  ;;  %vm7661_vm7 = vcmp.ne.s32.totalorder %v693_v28, 31  ;;  %v2944_v28 = vsel %vm10026_vm6, %v7408_v54, %v7478_v6 }
 0x774   : > { %v7548_v30 = vpop.permute.xlu0 %2593  ;;  %v7550_v31 = vpop.permute.xlu1 %2684 }
 0x775   : > { %10009 = vst [vmem:[#allocation23_spill] sm:$0xff] %v7548_v30 }
 0x776   : > { %2666 = vrot.lane.b32.xlu1 %v7534_v27, %s5534_s23  ;;  %2936 = vrot.lane.b32.xlu0 %v7514_v18, %s9939_s2 }
 0x778   : > { %v7565_v34 = vpop.permute.xlu0 %3097  ;;  %v7567_v21 = vpop.permute.xlu1 %2601 }
 0x77a   : > { %2569 = vrot.lane.b32.xlu1 %v7534_v27, %s5535_s24  ;;  %2597 = vrot.lane.b32.xlu0 %v7488_v8, %s5535_s24 }
 0x77c   : > { %v7573_v37 = vpop.permute.xlu0 %3014  ;;  %v7575_v38 = vpop.permute.xlu1 %2854 }
 0x77e   : > { %3105 = vrot.lane.b32.xlu0 %v7524_v22, %s5530_s1  ;;  %3103 = vrot.lane.b32.xlu1 %v7577_v39, %s5530_s1 }
 0x780   : > { %v7583_v40 = vpop.permute.xlu0 %2932  ;;  %v7585_v50 = vpop.permute.xlu1 %3176 }
 0x782   : > { %3022 = vrot.lane.b32.xlu0 %v7524_v22, %s5531_s28  ;;  %3020 = vrot.lane.b32.xlu1 %v7577_v39, %s5531_s28 }
 0x784   : > { %v7591_v47 = vpop.permute.xlu0 %3180  ;;  %v7593_v33 = vpop.permute.xlu1 %2688 }
 0x785   : > { %10012 = vst [vmem:[#allocation26_spill] sm:$0xff] %v7593_v33 }
 0x786   : > { %2940 = vrot.lane.b32.xlu0 %v7524_v22, %s9939_s2  ;;  %2938 = vrot.lane.b32.xlu1 %v7577_v39, %s9939_s2 }
 0x788   : > { %v7599_v58 = vpop.permute.xlu0 %2771  ;;  %v7601_v35 = vpop.permute.xlu1 %2605 }
 0x789   : > { %10013 = vst [vmem:[#allocation27_spill] sm:$0xff] %v7599_v58  ;;  %10014 = vst [vmem:[#allocation28_spill] sm:$0xff] %v7601_v35 }
 0x78a   : > { %3184 = vrot.lane.b32.xlu0 %v7514_v18, %s5532_s27  ;;  %3107 = vrot.lane.b32.xlu1 %v7534_v27, %s5530_s1 }
 0x78c   : > { %v7608_v30 = vpop.permute.xlu0 %2852  ;;  %v3096_v61 = vpop.permute.xlu1 %3095 }
 0x78d   : > { %v3118_v33 = vsel %vm9804_vm3, %v3096_v61, %v7565_v34  ;;  %v3117_v35 = vsel %vm9804_vm3, %v7504_v13, %v3096_v61 }
 0x78e   : > { %3265 = vmatprep.subr.mxu0 %v3118_v33  ;;  %2858 = vrot.lane.b32.xlu0 %v7514_v18, %s9936_s3  ;;  %v3110_v33 = vsel %vm9804_vm3, %v7392_v49, %v7462_v16  ;;  %v3028_v16 = vsel %vm9798_vm12, %v7470_v5, %v7398_v51 }
 0x78f   : > { %2860 = vrot.lane.b32.xlu1 %v7577_v39, %s9936_s3  ;;  %3266 = vmatpush1.msra.mxu0 %v3117_v35 }
 0x790   : > { %v7626_v23 = vpop.permute.xlu0 %2769  ;;  %3267 = vmatprep.subr.mxu0 %v3111_v10  ;;  %v3013_v61 = vpop.permute.xlu1 %3012 }
 0x791   : > { %v3034_v35 = vsel %vm9798_vm12, %v7512_v17, %v3013_v61  ;;  %3268 = vmatpush1.msra.mxu0 %v3110_v33  ;;  %v3035_v58 = vsel %vm9798_vm12, %v3013_v61, %v7573_v37 }
 0x792   : > { %5256 = vmatprep.subr.msk.mxu0 %vm7622_vm9, %v3035_v58  ;;  %2775 = vrot.lane.b32.xlu0 %v7514_v18, %s5533_s16  ;;  %v3027_v58 = vsel %vm9798_vm12, %v7400_v25, %v7470_v5  ;;  %v2945_v5 = vsel %vm10025_vm5, %v7478_v6, %v7406_v53 }
 0x793   : > { %3024 = vrot.lane.b32.xlu1 %v7534_v27, %s5531_s28  ;;  %5257 = vmatpush1.msk.msra.mxu0 %vm7631_vm15, %v3034_v35  ;;  %v10021_v35 = vmov 0 }
 0x794   : > { %v7657_v61 = vpop.permute.xlu0 %2686  ;;  %5258 = vmatprep.subr.msk.mxu0 %vm7622_vm9, %v3028_v16  ;;  %v2931_v33 = vpop.permute.xlu1 %2930  ;;  %v10022_v35 = vsel %vm7661_vm7, 4294967295, %v10021_v35 }
 0x795   : > { %v2951_v0 = vsel %vm10023_vm10, %v7522_v20, %v2931_v33  ;;  %5259 = vmatpush1.msk.msra.mxu0 %vm7631_vm15, %v3027_v58  ;;  %v2952_v17 = vsel %vm10024_vm4, %v2931_v33, %v7583_v40  ;;  %vm10051_vm10 = vmmov %vm10049_vm2 }
 0x796   : > { %5260 = vmatprep.subr.msk.mxu0 %vm7650_vm1, %v2952_v17  ;;  %2692 = vrot.lane.b32.xlu0 %v7514_v18, %s5534_s23  ;;  %vm7841_vm4 = vmand %vm9801_vm13, %vm7661_vm7 }
 0x797   : > { %2777 = vrot.lane.b32.xlu1 %v7577_v39, %s5533_s16  ;;  %5261 = vmatpush1.msk.msra.mxu0 %vm7661_vm7, %v2951_v0 }
 0x798   : > { %v7685_v16 = vpop.permute.xlu0 %2603  ;;  %5262 = vmatprep.subr.msk.mxu0 %vm7650_vm1, %v2945_v5  ;;  %v7689_v17 = vpop.permute.xlu1 %3099 }
 0x799   : > { %5263 = vmatpush1.msk.msra.mxu0 %vm7661_vm7, %v2944_v28 }
 0x79a   : > { %3277 = vmatprep.subr.mxu0 %v7366_v45  ;;  %2848 = vrot.lane.b32.xlu0 %v7410_v55, %s9936_s3  ;;  %v2871_v45 = vsel %vm10027_vm8, %v7532_v26, %v7608_v30  ;;  %vm9809_vm8 = vcmask 261120  }
 0x79b   : > { %2942 = vrot.lane.b32.xlu1 %v7534_v27, %s9939_s2  ;;  %3278 = vmatpush1.msra.mxu0 %v7318_v42 }
 0x79c   : > { %v7699_v6 = vpop.permute.xlu0 %2856  ;;  %3279 = vmatprep.subr.mxu0 %v7294_v24  ;;  %v7702_v58 = vpop.permute.xlu1 %3016 }
 0x79d   : > { %3280 = vmatpush1.msra.mxu0 %v7258_v43 }
 0x79e   : > { %5264 = vmatprep.subr.msk.mxu0 %vm7622_vm9, %v2871_v45  ;;  %2611 = vrot.lane.b32.xlu0 %v7577_v39, %s5535_s24 }
 0x79f   : > { %2694 = vrot.lane.b32.xlu1 %v7577_v39, %s5534_s23 }
 0x7a0   : > { %v7714_v42 = vpop.permute.xlu0 %2690  ;;  %v7716_v24 = vpop.permute.xlu1 %2934 }
 0x7a1   : > { %10028 = vst [vmem:[#allocation29_spill] sm:$0xff] %v7714_v42 }
 0x7a2   : > { %3186 = vrot.lane.b32.xlu0 %v7577_v39, %s5532_s27 }
 0x7a3   : > { %3188 = vrot.lane.b32.xlu1 %v7524_v22, %s5532_s27 }
 0x7a4   : > { %v7722_v43 = vpop.permute.xlu0 %2607  ;;  %v7724_v33 = vpop.permute.xlu1 %3178 }
 0x7a5   : > { %10029 = vst [vmem:[#allocation30_spill] sm:$0xff] %v7722_v43 }
 0x7a6   : > { %3172 = vrot.lane.b32.xlu0 %v7410_v55, %s5532_s27 }
 0x7a7   : > { %3170 = vrot.lane.b32.xlu1 %v7488_v8, %s5532_s27  ;;  %v3247_v8 = vld [vmem:[%s9713_s11] sm:$0xff] }
 0x7a8   : > { %v7730_v0 = vpop.permute.xlu0 %3089  ;;  %v7732_v5 = vpop.permute.xlu1 %2773 }
 0x7a9   : > { %10030 = vst [vmem:[#allocation31_spill] sm:$0xff] %v7730_v0  ;;  %10031 = vst [vmem:[#allocation32_spill] sm:$0xff] %v7732_v5 }
 0x7aa   : > { %2765 = vrot.lane.b32.xlu0 %v7410_v55, %s5533_s16 }
 0x7ab   : > { %2779 = vrot.lane.b32.xlu1 %v7524_v22, %s5533_s16 }
 0x7ac   : > { %v7738_v28 = vpop.permute.xlu0 %3006  ;;  %v7740_v45 = vpop.permute.xlu1 %3182 }
 0x7ad   : > { %10032 = vst [vmem:[#allocation33_spill] sm:$0xff] %v7738_v28  ;;  %10033 = vst [vmem:[#allocation34_spill] sm:$0xff] %v7740_v45 }
 0x7ae   : > { %2682 = vrot.lane.b32.xlu0 %v7410_v55, %s5534_s23 }
 0x7af   : > { %2696 = vrot.lane.b32.xlu1 %v7524_v22, %s5534_s23 }
 0x7b0   : > { %v7746_v54 = vpop.permute.xlu0 %2924  ;;  %v7748_v20 = vpop.permute.xlu1 %3085 }
 0x7b1   : > { %10034 = vst [vmem:[#allocation35_spill] sm:$0xff] %v7746_v54 }
 0x7b2   : > { %2599 = vrot.lane.b32.xlu0 %v7410_v55, %s5535_s24 }
 0x7b3   : > { %2613 = vrot.lane.b32.xlu1 %v7524_v22, %s5535_s24  ;;  %v3248_v22 = vld [vmem:[%s9713_s11 + $0x8] sm:$0xff] }
 0x7b4   : > { %v7754_v25 = vpop.permute.xlu0 %3168  ;;  %v7756_v49 = vpop.permute.xlu1 %3002 }
 0x7b5   : > { %10035 = vst [vmem:[#allocation36_spill] sm:$0xff] %v7754_v25 }
 0x7b6   : > { %3174 = vrot.lane.b32.xlu0 %v7446_v63, %s5532_s27 }
 0x7b7   : > { %3190 = vrot.lane.b32.xlu1 %v7534_v27, %s5532_s27 }
 0x7b8   : > { %v7765_v18 = vpop.permute.xlu0 %2830  ;;  %v7767_v55 = vpop.permute.xlu1 %2920 }
 0x7b9   : > { %10036 = vst [vmem:[#allocation37_spill] sm:$0xff] %v7765_v18 }
 0x7ba   : > { %3251 = vperm.xlu0 %5511, %v3247_v8  }
 0x7bb   : > { %3256 = vperm.xlu1 %5512, %v3248_v22  }
 0x7bc   : > { %v7772_v25 = vpop.permute.xlu0 %2747  ;;  %v7774_v63 = vpop.permute.xlu1 %2844 }
 0x7bd   : > { %10037 = vst [vmem:[#allocation38_spill] sm:$0xff] %v7774_v63 }
 0x7c0   : > { %v7776_v39 = vpop.permute.xlu0 %2664  ;;  %v7778_v27 = vpop.permute.xlu1 %2761 }
 0x7c1   : > { %10038 = vst [vmem:[#allocation39_spill] sm:$0xff] %v7778_v27 }
 0x7c4   : > { %v7780_v45 = vpop.permute.xlu0 %2567  ;;  %v7782_v54 = vpop.permute.xlu1 %2678 }
 0x7c5   : > { %10039 = vst [vmem:[#allocation40_spill] sm:$0xff] %v7782_v54  ;;  %v684_v54 = vadd.s32 384, %v5736_v9 }
 0x7c8   : > { %v7784_v43 = vpop.permute.xlu0 %3091  ;;  %v7786_v28 = vpop.permute.xlu1 %2595 }
 0x7c9   : > { %10040 = vst [vmem:[#allocation41_spill] sm:$0xff] %v7784_v43  ;;  %10041 = vst [vmem:[#allocation42_spill] sm:$0xff] %v7786_v28 }
 0x7cc   : > { %v7788_v42 = vpop.permute.xlu0 %2846  ;;  %v7790_v8 = vpop.permute.xlu1 %3087 }
 0x7cd   : > { %10042 = vst [vmem:[#allocation43_spill] sm:$0xff] %v7788_v42  ;;  %10043 = vst [vmem:[#allocation44_spill] sm:$0xff] %v7790_v8  ;;  %v683_v42 = vadd.s32 256, %v5736_v9  ;;  %v714_v8 = vand.u32 31, %v684_v54  ;;  %v2864_v54 = vsel %vm10050_vm14, %v7418_v32, %v7460_v2 }
 0x7cf   : > { %vm7845_vm5 = vcmp.ne.s32.totalorder %v714_v8, 0 }
 0x7d0   : > { %v7792_v22 = vpop.permute.xlu0 %3008  ;;  %v7794_v0 = vpop.permute.xlu1 %3004 }
 0x7d1   : > { %10044 = vst [vmem:[#allocation45_spill] sm:$0xff] %v7792_v22  ;;  %10045 = vst [vmem:[#allocation46_spill] sm:$0xff] %v7794_v0 }
 0x7d4   : > { %v7796_v63 = vpop.permute.xlu0 %2763  ;;  %v7798_v5 = vpop.permute.xlu1 %2922 }
 0x7d5   : > { %10046 = vst [vmem:[#allocation47_spill] sm:$0xff] %v7796_v63  ;;  %v707_v63 = vand.u32 31, %v683_v42  ;;  %v3119_v42 = vsel %vm9804_vm3, %v7565_v34, %v7689_v17  ;;  %v10055_v34 = vmov 0 }
 0x7d6   : > { %v10056_v34 = vsel %vm7845_vm5, 4294967295, %v10055_v34 }
 0x7d7   : > { %vm7861_vm6 = vcmp.ne.s32.totalorder %v707_v63, 0  ;;  %vm7911_vm14 = vcmp.ne.s32.totalorder %v707_v63, 31  ;;  %v2699_v63 = vsel %vm9809_vm8, %v7436_v60, %v7476_v4 }
 0x7d8   : > { %v7800_v27 = vpop.permute.xlu0 %2926  ;;  %v7802_v56 = vpop.permute.xlu1 %2609 }
 0x7d9   : > { %10047 = vst [vmem:[#allocation48_spill] sm:$0xff] %v7802_v56 }
 0x7dc   : > { %v7805_v43 = vpop.permute.xlu0 %2680  ;;  %v7807_v28 = vpop.permute.xlu1 %2862 }
 0x7dd   : > { %10048 = vst [vmem:[#allocation49_spill] sm:$0xff] %v7805_v43 }
 0x7e0   : > { %v7810_v22 = vpop.permute.xlu1 %2832  ;;  %v7812_v0 = vpop.permute.xlu0 %3101 }
 0x7e1   : > { %v2895_v56 = vsel %vm10049_vm2, %v7810_v22, %v7532_v26  ;;  %v3120_v43 = vsel %vm9804_vm3, %v7689_v17, %v7812_v0  ;;  %v2894_v26 = vsel %vm10051_vm10, %v7765_v18, %v7418_v32  ;;  %v10057_v18 = vmov 0 }
 0x7e2   : > { %5265 = vmatpush1.msk.msra.mxu0 %vm7631_vm15, %v2895_v56  ;;  %3342 = vmatprep.subr.mxu1 %v3120_v43  ;;  %v3113_v56 = vsel %vm9804_vm3, %v7486_v14, %v7748_v20  ;;  %v10052_v43 = vmov 0  ;;  %v10058_v18 = vsel %vm7861_vm6, 4294967295, %v10057_v18  ;;  %vm7893_vm2 = vcmp.ne.s32.totalorder %v714_v8, 31 }
 0x7e3   : > { %5266 = vmatprep.subr.msk.mxu0 %vm7622_vm9, %v2864_v54  ;;  %3343 = vmatpush1.msra.mxu1 %v3119_v42  ;;  %v10053_v43 = vsel %vm7841_vm4, 4294967295, %v10052_v43  ;;  %v2789_v54 = vsel %vm9800_vm11, %v7542_v29, %v7626_v23  ;;  %v3112_v42 = vsel %vm9804_vm3, %v7390_v48, %v7486_v14  ;;  %v3036_v48 = vsel %vm9798_vm12, %v7573_v37, %v7702_v58 }
 0x7e4   : > { %10054 = vst [vmem:[#allocation50_spill] sm:$0xff] %v10053_v43  ;;  %5267 = vmatpush1.msk.msra.mxu0 %vm7631_vm15, %v2894_v26  ;;  %v7851_v32 = vpop.permute.xlu1 %2749  ;;  %3344 = vmatprep.subr.mxu1 %v3113_v56  ;;  %v7853_v17 = vpop.permute.xlu0 %3018  ;;  %v2782_v14 = vsel %vm9800_vm11, %v7426_v52, %v7468_v3  ;;  %v3030_v37 = vsel %vm9798_vm12, %v7496_v11, %v7756_v49  ;;  %vm10063_vm10 = vcmask 1039360  }
 0x7e5   : > { %v2813_v26 = vsel %vm9800_vm11, %v7851_v32, %v7542_v29  ;;  %5268 = vmatprep.subr.msk.mxu0 %vm7650_vm1, %v2789_v54  ;;  %3345 = vmatpush1.msra.mxu1 %v3112_v42  ;;  %v3037_v56 = vsel %vm9798_vm12, %v7702_v58, %v7853_v17  ;;  %v2812_v29 = vsel %vm9800_vm11, %v7772_v25, %v7426_v52  ;;  %v10059_v58 = vmov 0 }
 0x7e6   : > { %5269 = vmatpush1.msk.msra.mxu0 %vm7841_vm4, %v2813_v26  ;;  %5284 = vmatprep.subr.msk.mxu1 %vm7845_vm5, %v3037_v56  ;;  %v10060_v58 = vsel %vm7893_vm2, 4294967295, %v10059_v58  ;;  %v3029_v54 = vsel %vm9798_vm12, %v7398_v51, %v7496_v11  ;;  %v2706_v8 = vsel %vm9809_vm8, %v7550_v31, %v7657_v61  ;;  %v10061_v26 = vmov 0  ;;  %vm10064_vm12 = vmmov %vm10063_vm10 }
 0x7e7   : > { %5270 = vmatprep.subr.msk.mxu0 %vm7650_vm1, %v2782_v14  ;;  %5285 = vmatpush1.msk.msra.mxu1 %vm7861_vm6, %v3036_v48  ;;  %v10062_v26 = vsel %vm7911_vm14, 4294967295, %v10061_v26  ;;  %v2953_v56 = vsel %vm10064_vm12, %v7583_v40, %v7716_v24  ;;  %vm10065_vm12 = vmmov %vm10063_vm10 }
 0x7e8   : > { %5271 = vmatpush1.msk.msra.mxu0 %vm7841_vm4, %v2812_v29  ;;  %v7902_v52 = vpop.permute.xlu1 %2666  ;;  %5286 = vmatprep.subr.msk.mxu1 %vm7845_vm5, %v3030_v37  ;;  %v7906_v42 = vpop.permute.xlu0 %2936  ;;  %v2947_v40 = vsel %vm10065_vm12, %v7502_v12, %v7767_v55  ;;  %vm10069_vm11 = vmmov %vm10065_vm12  ;;  %v2623_v29 = vsel %vm9803_vm0, %v7567_v21, %v7685_v16  ;;  %vm10070_vm12 = vcmask 7168  }
 0x7e9   : > { %v2730_v51 = vsel %vm9809_vm8, %v7902_v52, %v7550_v31  ;;  %3289 = vmatprep.subr.mxu0 %v2706_v8  ;;  %5287 = vmatpush1.msk.msra.mxu1 %vm7861_vm6, %v3029_v54  ;;  %v2954_v11 = vsel %vm10063_vm10, %v7716_v24, %v7906_v42  ;;  %v2729_v31 = vsel %vm9809_vm8, %v7776_v39, %v7436_v60  ;;  %vm7945_vm10 = vmand %vm9801_vm13, %vm7631_vm15  ;;  %v10066_v24 = vmov 0 }
 0x7ea   : > { %5272 = vmatpush1.msk.msra.mxu0 %vm9801_vm13, %v2730_v51  ;;  %5288 = vmatprep.subr.msk.mxu1 %vm7893_vm2, %v2954_v11  ;;  %v10067_v24 = vsel %vm7945_vm10, 4294967295, %v10066_v24  ;;  %v2946_v60 = vsel %vm10069_vm11, %v7406_v53, %v7502_v12  ;;  %v2616_v53 = vsel %vm9803_vm0, %v7444_v62, %v7484_v7  ;;  %vm9802_vm11 = vcmask 777216  }
 0x7eb   : > { %3291 = vmatprep.subr.mxu0 %v2699_v63  ;;  %5289 = vmatpush1.msk.msra.mxu1 %vm7911_vm14, %v2953_v56  ;;  %10068 = vst [vmem:[#allocation51_spill] sm:$0xff] %v10067_v24  ;;  %v2646_v12 = vsel %vm9803_vm0, %v7780_v45, %v7444_v62  ;;  %v3201_v54 = vsel %vm9802_vm11, %v7724_v33, %v7591_v47  ;;  %v686_v8 = vadd.s32 640, %v5736_v9 }
 0x7ec   : > { %5273 = vmatpush1.msk.msra.mxu0 %vm9801_vm13, %v2729_v31  ;;  %v7954_v48 = vpop.permute.xlu1 %2569  ;;  %5290 = vmatprep.subr.msk.mxu1 %vm7893_vm2, %v2947_v40  ;;  %v7958_v14 = vpop.permute.xlu0 %2597  ;;  %v3200_v62 = vsel %vm9802_vm11, %v7585_v50, %v7724_v33  ;;  %vm10071_vm13 = vmmov %vm10070_vm12  ;;  %v8014_v33 = vld [vmem:[%s9712_s10] sm:$0xff]  ;;  %v3193_v11 = vsel %vm9802_vm11, %v7454_v1, %v7520_v19 }
 0x7ed   : > { %v2647_v37 = vsel %vm9803_vm0, %v7954_v48, %v7567_v21  ;;  %5274 = vmatprep.subr.msk.mxu0 %vm7622_vm9, %v2623_v29  ;;  %5291 = vmatpush1.msk.msra.mxu1 %vm7911_vm14, %v2946_v60  ;;  %v2872_v51 = vsel %vm10071_vm13, %v7608_v30, %v7575_v38  ;;  %v10072_v30 = vld [vmem:[#allocation7_spill] sm:$0xff]  ;;  %vm10073_vm13 = vmmov %vm10070_vm12  ;;  %v728_v31 = vand.u32 31, %v686_v8  ;;  %v10074_v60 = vld [vmem:[#allocation32_spill] sm:$0xff] }
 0x7ee   : > { %5275 = vmatpush1.msk.msra.mxu0 %vm7945_vm10, %v2647_v37  ;;  %3354 = vmatprep.subr.mxu1 %v7380_v46  ;;  %v2865_v56 = vsel %vm10070_vm12, %v7460_v2, %v10072_v30  ;;  %v10075_v2 = vld [vmem:[#allocation27_spill] sm:$0xff]  ;;  %v8046_v37 = vld [vmem:[%s9712_s10 + $0x18] sm:$0xff] }
 0x7ef   : > { %5276 = vmatprep.subr.msk.mxu0 %vm7622_vm9, %v2616_v53  ;;  %3355 = vmatpush1.msra.mxu1 %v7344_v41  ;;  %v685_v41 = vadd.s32 512, %v5736_v9  ;;  %v10078_v8 = vld [vmem:[#allocation31_spill] sm:$0xff] }
 0x7f0   : > { %5277 = vmatpush1.msk.msra.mxu0 %vm7945_vm10, %v2646_v12  ;;  %3356 = vmatprep.subr.mxu1 %v7308_v36  ;;  %v7985_v46 = vpop.permute.xlu0 %3105  ;;  %v3104_v21 = vpop.permute.xlu1 %3103  ;;  %v2873_v36 = vsel %vm10070_vm12, %v7575_v38, %v7699_v6  ;;  %v2866_v38 = vsel %vm10073_vm13, %v10072_v30, %v7510_v15  ;;  %vm10076_vm13 = vcmask 252928   ;;  %v10083_v30 = vmov 0 }
 0x7f1   : > { %5278 = vmatprep.subr.msk.mxu0 %vm7650_vm1, %v3201_v54  ;;  %3357 = vmatpush1.msra.mxu1 %v7260_v44  ;;  %v3194_v44 = vsel %vm9802_vm11, %v7520_v19, %v7424_v57  ;;  %v3122_v40 = vsel %vm9804_vm3, %v3104_v21, %v7985_v46  ;;  %v2791_v29 = vsel %vm10076_vm13, %v10075_v2, %v10074_v60  ;;  %v721_v53 = vand.u32 31, %v685_v41  ;;  %vm10077_vm12 = vmmov %vm10076_vm13  ;;  %v8063_v41 = vld [vmem:[%s9712_s10 + $0x10] sm:$0xff] }
 0x7f2   : > { %5279 = vmatpush2.msk.msra.mxu0 %vm7661_vm7, %v3200_v62  ;;  %5292 = vmatprep.subr.msk.mxu1 %vm7845_vm5, %v2873_v36  ;;  %v2790_v12 = vsel %vm10077_vm12, %v7626_v23, %v10075_v2  ;;  %v3121_v54 = vsel %vm9804_vm3, %v7812_v0, %v3104_v21  ;;  %v10079_v62 = vld [vmem:[#allocation44_spill] sm:$0xff]  ;;  %vm10080_vm13 = vcmask 130048   ;;  %vm8075_vm11 = vcmp.ne.s32.totalorder %v728_v31, 0  ;;  %vm10086_vm0 = vmmov %vm10077_vm12  ;;  %v10092_v2 = vld [vmem:[#allocation26_spill] sm:$0xff] }
 0x7f3   : > { %5280 = vmatprep.subr.msk.mxu0 %vm7650_vm1, %v3194_v44  ;;  %5293 = vmatpush1.msk.msra.mxu1 %vm7861_vm6, %v2872_v51  ;;  %v3115_v36 = vsel %vm9804_vm3, %v10079_v62, %v10078_v8  ;;  %v10081_v23 = vld [vmem:[#allocation20_spill] sm:$0xff]  ;;  %v10082_v51 = vld [vmem:[#allocation9_spill] sm:$0xff]  ;;  %v3114_v44 = vsel %vm9804_vm3, %v7748_v20, %v10079_v62  ;;  %v10084_v30 = vsel %vm8075_vm11, 4294967295, %v10083_v30  ;;  %v10095_v62 = vld [vmem:[#allocation46_spill] sm:$0xff]  ;;  %vm10106_vm10 = vcmask 1039360  }
 0x7f4   : > { %5281 = vmatpush2.msk.msra.mxu0 %vm7661_vm7, %v3193_v11  ;;  %5294 = vmatprep.subr.msk.mxu1 %vm7845_vm5, %v2866_v38  ;;  %v8033_v19 = vpop.permute.xlu0 %3022  ;;  %v3021_v63 = vpop.permute.xlu1 %3020  ;;  %v2784_v0 = vsel %vm10077_vm12, %v10082_v51, %v10081_v23  ;;  %10085 = vst [vmem:[#allocation7_spill] sm:$0xff] %v10084_v30  ;;  %v2783_v38 = vsel %vm10086_vm0, %v7468_v3, %v10082_v51  ;;  %vm10090_vm12 = vcmask 793600   ;;  %v10097_v51 = vld [vmem:[#allocation22_spill] sm:$0xff] }
 0x7f5   : > { %3330 = vmatmul.mubr.f32.vlgmr.msra.gmra.mxu0 %v8014_v33  ;;  %5295 = vmatpush1.msk.msra.mxu1 %vm7861_vm6, %v2865_v56  ;;  %v10087_v56 = vmov 0  ;;  %v3039_v20 = vsel %vm10090_vm12, %v3021_v63, %v8033_v19  ;;  %vm10093_vm0 = vmmov %vm10090_vm12 }
 0x7f6   : > { %3419 = vmatprep.subr.mxu0 %v3122_v40  ;;  %5296 = vmatprep.subr.msk.mxu1 %vm7893_vm2, %v2791_v29  ;;  %v10091_v40 = vld [vmem:[#allocation29_spill] sm:$0xff]  ;;  %v3038_v29 = vsel %vm10093_vm0, %v7853_v17, %v3021_v63  ;;  %vm10096_vm12 = vmmov %vm10093_vm0  ;;  %vm8113_vm0 = vcmp.ne.s32.totalorder %v728_v31, 31 }
 0x7f7   : > { %3420 = vmatpush1.msra.mxu0 %v3121_v54  ;;  %5297 = vmatpush1.msk.msra.mxu1 %vm7911_vm14, %v2790_v12  ;;  %v2708_v3 = vsel %vm9809_vm8, %v10092_v2, %v10091_v40  ;;  %v2707_v12 = vsel %vm9809_vm8, %v7657_v61, %v10092_v2  ;;  %v10094_v54 = vld [vmem:[#allocation33_spill] sm:$0xff]  ;;  %vm10102_vm3 = vmmov %vm10096_vm12  ;;  %v10103_v2 = vmov 0 }
 0x7f8   : > { %3421 = vmatprep.subr.mxu0 %v3115_v36  ;;  %5283 = vmatprep.mubr.msk.f32.mxu0 %vm10080_vm13, %v8046_v37  ;;  %v8070_v21 = vpop.permute.xlu0 %2940  ;;  %v2939_v11 = vpop.permute.xlu1 %2938  ;;  %vm8084_vm13 = vcmp.ne.s32.totalorder %v721_v53, 0  ;;  %v3032_v36 = vsel %vm10096_vm12, %v10095_v62, %v10094_v54  ;;  %v3031_v61 = vsel %vm10102_vm3, %v7756_v49, %v10095_v62  ;;  %vm8125_vm12 = vcmp.ne.s32.totalorder %v721_v53, 31  ;;  %v10107_v49 = vld [vmem:[#allocation30_spill] sm:$0xff]  ;;  %v10113_v62 = vld [vmem:[#allocation35_spill] sm:$0xff] }
 0x7f9   : > { %5298 = vmatprep.subr.msk.mxu1 %vm7893_vm2, %v2784_v0  ;;  %3422 = vmatpush1.msra.mxu0 %v3114_v44  ;;  %v10088_v56 = vsel %vm8084_vm13, 4294967295, %v10087_v56  ;;  %v10098_v0 = vld [vmem:[#allocation10_spill] sm:$0xff]  ;;  %v10104_v2 = vsel %vm8125_vm12, 4294967295, %v10103_v2  ;;  %v2956_v31 = vsel %vm10106_vm10, %v2939_v11, %v8070_v21  ;;  %vm10109_vm3 = vcmask 269312  }
 0x7fa   : > { %10089 = vst [vmem:[#allocation32_spill] sm:$0xff] %v10088_v56  ;;  %3336 = vmatmul.mubr.f32.gmra.mxu0 %v8063_v41  ;;  %5299 = vmatpush1.msk.msra.mxu1 %vm7911_vm14, %v2783_v38  ;;  %v2701_v17 = vsel %vm9809_vm8, %v10098_v0, %v10097_v51  ;;  %v10099_v38 = vmov 0  ;;  %10105 = vst [vmem:[#allocation31_spill] sm:$0xff] %v10104_v2  ;;  %v8146_v53 = vadd.s32 896, %v5736_v9 }
 0x7fb   : > { %5310 = vmatprep.subr.msk.mxu0 %vm8075_vm11, %v3039_v20  ;;  %3366 = vmatprep.subr.mxu1 %v2708_v3  ;;  %v10100_v38 = vsel %vm8113_vm0, 4294967295, %v10099_v38  ;;  %v2700_v20 = vsel %vm9809_vm8, %v7476_v4, %v10098_v0  ;;  %v10108_v3 = vld [vmem:[#allocation28_spill] sm:$0xff]  ;;  %vm10110_vm4 = vmmov %vm10109_vm3 }
 0x7fc   : > { %5311 = vmatpush1.msk.msra.mxu0 %vm8084_vm13, %v3038_v29  ;;  %3367 = vmatpush1.msra.mxu1 %v2707_v12  ;;  %v8111_v63 = vpop.permute.xlu0 %3184  ;;  %v3108_v44 = vpop.permute.xlu1 %3107  ;;  %10101 = vst [vmem:[#allocation27_spill] sm:$0xff] %v10100_v38  ;;  %v2625_v29 = vsel %vm10109_vm3, %v10108_v3, %v10107_v49  ;;  %v2624_v12 = vsel %vm10110_vm4, %v7685_v16, %v10108_v3  ;;  %vm10111_vm8 = vmmov %vm10106_vm10  ;;  %v742_v3 = vand.u32 31, %v8146_v53 }
 0x7fd   : > { %5312 = vmatprep.subr.msk.mxu0 %vm8075_vm11, %v3032_v36  ;;  %3368 = vmatprep.subr.mxu1 %v2701_v17  ;;  %v2955_v4 = vsel %vm10111_vm8, %v7906_v42, %v2939_v11  ;;  %10112 = vst [vmem:[#allocation44_spill] sm:$0xff] %v8146_v53  ;;  %vm10114_vm4 = vmmov %vm10111_vm8  ;;  %v10115_v42 = vld [vmem:[#allocation23_spill] sm:$0xff]  ;;  %v10116_v11 = vld [vmem:[#allocation12_spill] sm:$0xff] }
 0x7fe   : > { %5313 = vmatpush1.msk.msra.mxu0 %vm8084_vm13, %v3031_v61  ;;  %3369 = vmatpush1.msra.mxu1 %v2700_v20  ;;  %v2949_v16 = vsel %vm10114_vm4, %v7798_v5, %v10113_v62  ;;  %vm10117_vm8 = vmmov %vm10109_vm3 }
 0x7ff   : > { %5314 = vmatprep.subr.msk.mxu0 %vm8113_vm0, %v2956_v31  ;;  %5300 = vmatprep.subr.msk.mxu1 %vm7845_vm5, %v2625_v29  ;;  %v2618_v36 = vsel %vm10117_vm8, %v10116_v11, %v10115_v42  ;;  %vm10118_vm10 = vmmov %vm10109_vm3  ;;  %v687_v29 = vadd.s32 768, %v5736_v9 }
 0x800   : > { %5315 = vmatpush1.msk.msra.mxu0 %vm8125_vm12, %v2955_v4  ;;  %5301 = vmatpush1.msk.msra.mxu1 %vm7861_vm6, %v2624_v12  ;;  %v2859_v0 = vpop.permute.xlu0 %2858  ;;  %v2617_v17 = vsel %vm10118_vm10, %v7484_v7, %v10116_v11  ;;  %vm10119_vm3 = vmmov %vm10114_vm4  ;;  %v10120_v7 = vld [vmem:[#allocation34_spill] sm:$0xff]  ;;  %vm10121_vm4 = vcmask 777216   ;;  %v10124_v12 = vld [vmem:[#allocation17_spill] sm:$0xff] }
 0x801   : > { %v2948_v61 = vsel %vm10119_vm3, %v7767_v55, %v7798_v5  ;;  %5316 = vmatprep.subr.msk.mxu0 %vm8113_vm0, %v2949_v16  ;;  %5302 = vmatprep.subr.msk.mxu1 %vm7845_vm5, %v2618_v36  ;;  %v8168_v20 = vpop.permute.xlu1 %2860  ;;  %v3203_v31 = vsel %vm10121_vm4, %v10120_v7, %v8111_v63  ;;  %vm10122_vm8 = vmmov %vm10121_vm4  ;;  %v10123_v5 = vld [vmem:[#allocation25_spill] sm:$0xff]  ;;  %v10125_v4 = vld [vmem:[#allocation36_spill] sm:$0xff] }
 0x802   : > { %5317 = vmatpush1.msk.msra.mxu0 %vm8125_vm12, %v2948_v61  ;;  %5303 = vmatpush1.msk.msra.mxu1 %vm7861_vm6, %v2617_v17  ;;  %v3202_v55 = vsel %vm10122_vm8, %v7591_v47, %v10120_v7  ;;  %v10126_v16 = vld [vmem:[#allocation14_spill] sm:$0xff]  ;;  %vm10127_vm10 = vmmov %vm10121_vm4  ;;  %v10129_v17 = vld [vmem:[#allocation13_spill] sm:$0xff]  ;;  %vm10131_vm8 = vcmask 7168   ;;  %vm10152_vm6 = vcmask 130048  }
 0x803   : > { %3431 = vmatprep.subr.mxu0 %v10123_v5  ;;  %5304 = vmatprep.subr.msk.mxu1 %vm7893_vm2, %v3203_v31  ;;  %v3196_v11 = vsel %vm10127_vm10, %v10126_v16, %v10125_v4  ;;  %vm10128_vm3 = vmmov %vm10121_vm4  ;;  %v10130_v7 = vld [vmem:[#allocation8_spill] sm:$0xff]  ;;  %v2875_v31 = vsel %vm10131_vm8, %v2859_v0, %v8168_v20  ;;  %v10136_v5 = vld [vmem:[#allocation15_spill] sm:$0xff]  ;;  %vm10137_vm4 = vcmask 785408  }
 0x804   : > { %3432 = vmatpush1.msra.mxu0 %v10124_v12  ;;  %5305 = vmatpush2.msk.msra.mxu1 %vm7911_vm14, %v3202_v55  ;;  %v2776_v36 = vpop.permute.xlu0 %2775  ;;  %v3195_v47 = vsel %vm10128_vm3, %v7424_v57, %v10126_v16  ;;  %vm10132_vm10 = vmmov %vm10131_vm8  ;;  %vm8208_vm3 = vcmp.ne.s32.totalorder %v742_v3, 0  ;;  %v10133_v57 = vmov 0  ;;  %v3143_v12 = vsel %vm10137_vm4, %v3108_v44, %v10136_v5  ;;  %v10384_v10 = vld [vmem:[#allocation44_spill] sm:$0xff] }
 0x805   : > { %3433 = vmatprep.subr.mxu0 %v10129_v17  ;;  %5306 = vmatprep.subr.msk.mxu1 %vm7893_vm2, %v3196_v11  ;;  %v3025_v61 = vpop.permute.xlu1 %3024  ;;  %v2874_v55 = vsel %vm10132_vm10, %v7699_v6, %v2859_v0  ;;  %v10134_v57 = vsel %vm8208_vm3, 4294967295, %v10133_v57  ;;  %v735_v16 = vand.u32 31, %v687_v29  ;;  %vm10138_vm8 = vcmp.lt.s32.totalorder %v8146_v53, 992  ;;  %v10139_v6 = vld [vmem:[#allocation43_spill] sm:$0xff]  ;;  %v10140_v0 = vld [vmem:[#allocation38_spill] sm:$0xff]  ;;  %vm10142_vm2 = vmmov %vm10132_vm10 }
 0x806   : > { %3434 = vmatpush1.msra.mxu0 %v10130_v7  ;;  %5307 = vmatpush2.msk.msra.mxu1 %vm7911_vm14, %v3195_v47  ;;  %10135 = vst [vmem:[#allocation20_spill] sm:$0xff] %v10134_v57  ;;  %v2868_v11 = vsel %vm10132_vm10, %v10140_v0, %v10139_v6  ;;  %vm10141_vm14 = vmmov %vm10137_vm4  ;;  %v2867_v7 = vsel %vm10142_vm2, %v7510_v15, %v10140_v0  ;;  %v10143_v29 = vld [vmem:[#allocation3_spill] sm:$0xff]  ;;  %vm10147_vm2 = vcmask 252928   ;;  %v10157_v0 = vld [vmem:[#allocation16_spill] sm:$0xff] }
 0x807   : > { %5318 = vmatprep.subr.msk.mxu0 %vm8075_vm11, %v2875_v31  ;;  %3407 = vmatmul.mubr.f32.vlgmr.msra.gmra.mxu1 %v8014_v33  ;;  %v3123_v47 = vsel %vm10141_vm14, %v7985_v46, %v3108_v44  ;;  %v10144_v31 = vld [vmem:[#allocation41_spill] sm:$0xff]  ;;  %vm10145_vm14 = vmmov %vm10138_vm8  ;;  %v10149_v44 = vmov 0  ;;  %vm8297_vm7 = vcmp.ne.s32.totalorder %v735_v16, 31 }
 0x808   : > { %5319 = vmatpush1.msk.msra.mxu0 %vm8084_vm13, %v2874_v55  ;;  %5336 = vmatprep.subr.msk.mxu1 %vm10138_vm8, %v3143_v12  ;;  %v2693_v17 = vpop.permute.xlu0 %2692  ;;  %v3142_v55 = vsel %vm10137_vm4, %v10144_v31, %v10143_v29  ;;  %vm10146_vm8 = vmmov %vm10137_vm4  ;;  %v10153_v12 = vmov 0  ;;  %v10160_v29 = vld [vmem:[#allocation47_spill] sm:$0xff] }
 0x809   : > { %5320 = vmatprep.subr.msk.mxu0 %vm8075_vm11, %v2868_v11  ;;  %3497 = vmatpush1.msra.mxu1 %v3123_v47  ;;  %v8231_v5 = vpop.permute.xlu1 %2777  ;;  %v3116_v15 = vsel %vm10146_vm8, %v10078_v8, %v10144_v31  ;;  %vm10148_vm10 = vmmov %vm10145_vm14 }
 0x80a   : > { %5321 = vmatpush1.msk.msra.mxu0 %vm8084_vm13, %v2867_v7  ;;  %5337 = vmatprep.subr.msk.mxu1 %vm10145_vm14, %v3142_v55  ;;  %v2793_v46 = vsel %vm10147_vm2, %v2776_v36, %v8231_v5  ;;  %vm8246_vm4 = vmand %vm10148_vm10, %vm8208_vm3  ;;  %vm8252_vm14 = vcmp.ne.s32.totalorder %v735_v16, 0 }
 0x80b   : > { %v10150_v44 = vsel %vm8246_vm4, 4294967295, %v10149_v44  ;;  %5309 = vmatprep.mubr.msk.f32.mxu1 %vm10152_vm6, %v8046_v37  ;;  %3499 = vmatpush1.msra.mxu1 %v3116_v15  ;;  %v10154_v12 = vsel %vm8252_vm14, 4294967295, %v10153_v12  ;;  %vm10156_vm8 = vmmov %vm10147_vm2  ;;  %vm10158_vm2 = vcmask 793600   ;;  %v10164_v15 = vmov 0 }
 0x80c   : > { %10151 = vst [vmem:[#allocation9_spill] sm:$0xff] %v10150_v44  ;;  %10155 = vst [vmem:[#allocation29_spill] sm:$0xff] %v10154_v12  ;;  %v2792_v8 = vsel %vm10156_vm8, %v10074_v60, %v2776_v36  ;;  %3413 = vmatmul.mubr.f32.gmra.mxu1 %v8063_v41  ;;  %5322 = vmatprep.subr.msk.mxu0 %vm8113_vm0, %v2793_v46  ;;  %v3060_v11 = vsel %vm10158_vm2, %v3025_v61, %v10157_v0  ;;  %v2849_v47 = vpop.permute.xlu0 %2848  ;;  %v10161_v60 = vld [vmem:[#allocation39_spill] sm:$0xff] }
 0x80d   : > { %vm10159_vm10 = vmmov %vm10158_vm2  ;;  %5338 = vmatprep.subr.msk.mxu1 %vm8246_vm4, %v3060_v11  ;;  %5323 = vmatpush1.msk.msra.mxu0 %vm8125_vm12, %v2792_v8  ;;  %v2943_v31 = vpop.permute.xlu1 %2942  ;;  %vm8275_vm2 = vcmp.ne.s32.totalorder %v742_v3, 31  ;;  %v10169_v8 = vld [vmem:[#allocation18_spill] sm:$0xff]  ;;  %v10173_v11 = vmov 0 }
 0x80e   : > { %v3040_v7 = vsel %vm10159_vm10, %v8033_v19, %v3025_v61  ;;  %vm10162_vm6 = vmmov %vm10156_vm8  ;;  %v10165_v15 = vsel %vm8275_vm2, 4294967295, %v10164_v15  ;;  %v10167_v19 = vld [vmem:[#allocation4_spill] sm:$0xff]  ;;  %v10168_v61 = vld [vmem:[#allocation45_spill] sm:$0xff]  ;;  %v10174_v11 = vsel %vm8297_vm7, 4294967295, %v10173_v11 }
 0x80f   : > { %v2786_v36 = vsel %vm10162_vm6, %v10161_v60, %v10160_v29  ;;  %vm10163_vm8 = vmmov %vm10162_vm6  ;;  %10166 = vst [vmem:[#allocation26_spill] sm:$0xff] %v10165_v15  ;;  %5339 = vmatpush1.msk.msra.mxu1 %vm8252_vm14, %v3040_v7  ;;  %v3059_v46 = vsel %vm10159_vm10, %v10168_v61, %v10167_v19  ;;  %vm10170_vm6 = vcmask 1039360   ;;  %v8743_v15 = vld [vmem:[%s9714_s12 + $0x8] sm:$0xff] }
 0x810   : > { %v2785_v55 = vsel %vm10163_vm8, %v10081_v23, %v10161_v60  ;;  %5324 = vmatprep.subr.msk.mxu0 %vm8113_vm0, %v2786_v36  ;;  %v2977_v0 = vsel %vm10170_vm6, %v2943_v31, %v10169_v8  ;;  %vm10171_vm8 = vmmov %vm10159_vm10  ;;  %5340 = vmatprep.subr.msk.mxu1 %vm8246_vm4, %v3059_v46  ;;  %10175 = vst [vmem:[#allocation33_spill] sm:$0xff] %v10174_v11  ;;  %v8303_v7 = vpop.permute.xlu0 %2611  ;;  %v10176_v60 = vld [vmem:[#allocation24_spill] sm:$0xff]  ;;  %vm10177_vm10 = vcmask 130048  }
 0x811   : > { %v3033_v23 = vsel %vm10171_vm8, %v10094_v54, %v10168_v61  ;;  %vm10172_vm5 = vmmov %vm10170_vm6  ;;  %5325 = vmatpush1.msk.msra.mxu0 %vm8125_vm12, %v2785_v55  ;;  %5334 = vmatprep.mubr.msk.f32.mxu0 %vm10177_vm10, %v10176_v60  ;;  %v8309_v54 = vpop.permute.xlu1 %2694  ;;  %vm10180_vm8 = vcmask 261120   ;;  %v10183_v61 = vld [vmem:[#allocation49_spill] sm:$0xff]  ;;  %v10184_v46 = vld [vmem:[#allocation40_spill] sm:$0xff]  ;;  %10248 = vst [vmem:[#allocation47_spill] sm:$0xff] %v8743_v15 }
 0x812   : > { %v2957_v3 = vsel %vm10172_vm5, %v8070_v21, %v2943_v31  ;;  %5341 = vmatpush1.msk.msra.mxu1 %vm8252_vm14, %v3033_v23  ;;  %vm10178_vm5 = vmmov %vm10177_vm10  ;;  %v10179_v21 = vld [vmem:[#allocation5_spill] sm:$0xff]  ;;  %v2710_v36 = vsel %vm10180_vm8, %v2693_v17, %v8309_v54  ;;  %v10188_v23 = vld [vmem:[#allocation19_spill] sm:$0xff] }
 0x813   : > { %5342 = vmatprep.subr.msk.mxu1 %vm8275_vm2, %v2977_v0  ;;  %5362 = vmatprep.mubr.msk.f32.mxu1 %vm10178_vm5, %v10176_v60  ;;  %v2976_v16 = vsel %vm10170_vm6, %v7800_v27, %v10179_v21  ;;  %vm10181_vm10 = vmmov %vm10170_vm6  ;;  %v10186_v0 = vld [vmem:[#allocation21_spill] sm:$0xff]  ;;  %v10192_v60 = vld [vmem:[#allocation11_spill] sm:$0xff] }
 0x814   : > { %5343 = vmatpush1.msk.msra.mxu1 %vm8297_vm7, %v2957_v3  ;;  %v2950_v31 = vsel %vm10181_vm10, %v10113_v62, %v7800_v27  ;;  %3443 = vmatprep.subr.mxu0 %v2710_v36  ;;  %vm10182_vm5 = vmmov %vm10180_vm8  ;;  %v3187_v19 = vpop.permute.xlu0 %3186  ;;  %vm10190_vm10 = vcmask 269312   ;;  %v10193_v21 = vld [vmem:[#allocation6_spill] sm:$0xff] }
 0x815   : > { %5344 = vmatprep.subr.msk.mxu1 %vm8275_vm2, %v2976_v16  ;;  %v2709_v55 = vsel %vm10182_vm5, %v10091_v40, %v2693_v17  ;;  %vm10185_vm6 = vmmov %vm10182_vm5  ;;  %v8333_v27 = vpop.permute.xlu1 %3188  ;;  %v10189_v40 = vld [vmem:[#allocation48_spill] sm:$0xff]  ;;  %v10195_v36 = vld [vmem:[#allocation42_spill] sm:$0xff] }
 0x816   : > { %5345 = vmatpush1.msk.msra.mxu1 %vm8297_vm7, %v2950_v31  ;;  %3444 = vmatpush1.msra.mxu0 %v2709_v55  ;;  %v2703_v8 = vsel %vm10185_vm6, %v10184_v46, %v10183_v61  ;;  %vm10187_vm8 = vmmov %vm10182_vm5  ;;  %v2627_v17 = vsel %vm10190_vm10, %v10189_v40, %v8303_v7  ;;  %vm10194_vm6 = vcmask 7168  }
 0x817   : > { %3508 = vmatprep.subr.mxu1 %v10186_v0  ;;  %3445 = vmatprep.subr.mxu0 %v2703_v8  ;;  %v2702_v62 = vsel %vm10187_vm8, %v10097_v51, %v10184_v46  ;;  %vm10191_vm5 = vmmov %vm10190_vm10  ;;  %v2877_v51 = vsel %vm10194_vm6, %v7807_v28, %v7810_v22  ;;  %v10199_v46 = vld [vmem:[#allocation37_spill] sm:$0xff] }
 0x818   : > { %3509 = vmatpush1.msra.mxu1 %v10188_v23  ;;  %3446 = vmatpush1.msra.mxu0 %v2702_v62  ;;  %v2626_v3 = vsel %vm10191_vm5, %v10107_v49, %v10189_v40  ;;  %v8354_v16 = vpop.permute.xlu0 %3172  ;;  %vm10196_vm8 = vmmov %vm10191_vm5 }
 0x819   : > { %3510 = vmatprep.subr.mxu1 %v10192_v60  ;;  %5326 = vmatprep.subr.msk.mxu0 %vm8075_vm11, %v2627_v17  ;;  %v2620_v49 = vsel %vm10196_vm8, %v10195_v36, %v7958_v14  ;;  %vm10197_vm10 = vmmov %vm10191_vm5  ;;  %v3171_v22 = vpop.permute.xlu1 %3170  ;;  %vm10201_vm8 = vcmask 777216  }
 0x81a   : > { %3511 = vmatpush1.msra.mxu1 %v10193_v21  ;;  %5327 = vmatpush1.msk.msra.mxu0 %vm8084_vm13, %v2626_v3  ;;  %v2619_v31 = vsel %vm10197_vm10, %v10115_v42, %v10195_v36  ;;  %vm10198_vm5 = vmmov %vm10194_vm6  ;;  %v3205_v42 = vsel %vm10201_vm8, %v3187_v19, %v8333_v27 }
 0x81b   : > { %v2876_v55 = vsel %vm10198_vm5, %v8168_v20, %v7807_v28  ;;  %5346 = vmatprep.subr.msk.mxu1 %vm8208_vm3, %v2877_v51  ;;  %5328 = vmatprep.subr.msk.mxu0 %vm8075_vm11, %v2620_v49  ;;  %vm10200_vm6 = vmmov %vm10198_vm5 }
 0x81c   : > { %5347 = vmatpush1.msk.msra.mxu1 %vm8252_vm14, %v2876_v55  ;;  %v2870_v8 = vsel %vm10200_vm6, %v2849_v47, %v10199_v46  ;;  %5329 = vmatpush1.msk.msra.mxu0 %vm8084_vm13, %v2619_v31  ;;  %vm10202_vm10 = vmmov %vm10198_vm5  ;;  %v2766_v0 = vpop.permute.xlu0 %2765 }
 0x81d   : > { %v2869_v28 = vsel %vm10202_vm10, %v10139_v6, %v2849_v47  ;;  %vm10203_vm5 = vmmov %vm10201_vm8  ;;  %5348 = vmatprep.subr.msk.mxu1 %vm8208_vm3, %v2870_v8  ;;  %5330 = vmatprep.subr.msk.mxu0 %vm8113_vm0, %v3205_v42  ;;  %vm10206_vm10 = vcmask 252928  }
 0x81e   : > { %v3204_v20 = vsel %vm10203_vm5, %v8111_v63, %v3187_v19  ;;  %5349 = vmatpush1.msk.msra.mxu1 %vm8252_vm14, %v2869_v28  ;;  %vm10204_vm6 = vmmov %vm10203_vm5  ;;  %v2780_v63 = vpop.permute.xlu1 %2779 }
 0x81f   : > { %5331 = vmatpush2.msk.msra.mxu0 %vm8125_vm12, %v3204_v20  ;;  %v3198_v62 = vsel %vm10204_vm6, %v3171_v22, %v8354_v16  ;;  %vm10205_vm8 = vmmov %vm10203_vm5  ;;  %v2794_v47 = vsel %vm10206_vm10, %v8231_v5, %v2780_v63 }
 0x820   : > { %v3197_v6 = vsel %vm10205_vm8, %v10125_v4, %v3171_v22  ;;  %5332 = vmatprep.subr.msk.mxu0 %vm8113_vm0, %v3198_v62  ;;  %vm10207_vm5 = vmmov %vm10206_vm10  ;;  %v2683_v4 = vpop.permute.xlu0 %2682  ;;  %vm10209_vm8 = vcmask 130048  }
 0x821   : > { %5333 = vmatpush2.msk.msra.mxu0 %vm8125_vm12, %v3197_v6  ;;  %v2795_v19 = vsel %vm10207_vm5, %v2780_v63, %v7851_v32  ;;  %vm10208_vm6 = vmmov %vm10207_vm5 }
 0x822   : > { %3484 = vmatmul.mubr.f32.vlgmr.msra.gmra.mxu0 %v8014_v33  ;;  %5350 = vmatprep.subr.msk.mxu1 %vm8275_vm2, %v2795_v19  ;;  %v2788_v23 = vsel %vm10208_vm6, %v2766_v0, %v7772_v25  ;;  %vm10210_vm10 = vmmov %vm10207_vm5  ;;  %v2697_v32 = vpop.permute.xlu1 %2696  ;;  %vm10211_vm5 = vcmask 261120  }
 0x823   : > { %5351 = vmatpush1.msk.msra.mxu1 %vm8297_vm7, %v2794_v47  ;;  %5335 = vmatprep.mubr.msk.f32.mxu0 %vm10209_vm8, %v8046_v37  ;;  %v2787_v5 = vsel %vm10210_vm10, %v10160_v29, %v2766_v0  ;;  %v2712_v40 = vsel %vm10211_vm5, %v2697_v32, %v7902_v52  ;;  %vm10212_vm12 = vmmov %vm10211_vm5  ;;  %vm10215_vm10 = vcmask 269312  }
 0x824   : > { %5352 = vmatprep.subr.msk.mxu1 %vm8275_vm2, %v2788_v23  ;;  %v2711_v17 = vsel %vm10212_vm12, %v8309_v54, %v2697_v32  ;;  %v2600_v25 = vpop.permute.xlu0 %2599  ;;  %vm10213_vm6 = vmmov %vm10211_vm5  ;;  %v10219_v54 = vmov 0 }
 0x825   : > { %5353 = vmatpush1.msk.msra.mxu1 %vm8297_vm7, %v2787_v5  ;;  %v2705_v29 = vsel %vm10213_vm6, %v2683_v4, %v7776_v39  ;;  %vm10214_vm8 = vmmov %vm10211_vm5  ;;  %vm10218_vm6 = vcmp.lt.s32.totalorder %v8146_v53, 992 }
 0x826   : > { %3490 = vmatmul.mubr.f32.gmra.mxu0 %v8063_v41  ;;  %3520 = vmatprep.subr.mxu1 %v2712_v40  ;;  %v2614_v3 = vpop.permute.xlu1 %2613  ;;  %v2704_v60 = vsel %vm10214_vm8, %v10183_v61, %v2683_v4  ;;  %vm10216_vm5 = vmmov %vm10215_vm10 }
 0x827   : > { %3521 = vmatpush1.msra.mxu1 %v2711_v17  ;;  %v2628_v21 = vsel %vm10215_vm10, %v8303_v7, %v2614_v3  ;;  %v2629_v52 = vsel %vm10216_vm5, %v2614_v3, %v7954_v48  ;;  %vm10217_vm12 = vmmov %vm10216_vm5 }
 0x828   : > { %3522 = vmatprep.subr.mxu1 %v2705_v29  ;;  %v2622_v39 = vsel %vm10217_vm12, %v2600_v25, %v7780_v45  ;;  %vm8439_vm8 = vmand %vm10218_vm6, %vm8275_vm2  ;;  %v3175_v7 = vpop.permute.xlu0 %3174  ;;  %vm10308_vm2 = vcmask 252928  }
 0x829   : > { %3523 = vmatpush1.msra.mxu1 %v2704_v60  ;;  %v10220_v54 = vsel %vm8439_vm8, 4294967295, %v10219_v54  ;;  %vm10222_vm10 = vmmov %vm10216_vm5  ;;  %vm10223_vm5 = vcmask 777216  }
 0x82a   : > { %5354 = vmatprep.subr.msk.mxu1 %vm8208_vm3, %v2629_v52  ;;  %10221 = vst [vmem:[#allocation46_spill] sm:$0xff] %v10220_v54  ;;  %v2621_v48 = vsel %vm10222_vm10, %v7958_v14, %v2600_v25  ;;  %v3191_v61 = vpop.permute.xlu1 %3190  ;;  %vm10224_vm12 = vmmov %vm10223_vm5 }
 0x82b   : > { %5355 = vmatpush1.msk.msra.mxu1 %vm8252_vm14, %v2628_v21  ;;  %v3206_v51 = vsel %vm10223_vm5, %v8333_v27, %v3191_v61  ;;  %v3226_v45 = vsel %vm10224_vm12, %v3191_v61, %v7585_v50  ;;  %vm10225_vm6 = vmmov %vm10223_vm5 }
 0x82c   : > { %5356 = vmatprep.subr.msk.mxu1 %vm8208_vm3, %v2622_v39  ;;  %v3225_v14 = vsel %vm10225_vm6, %v3175_v7, %v7454_v1  ;;  %vm10226_vm10 = vmmov %vm10223_vm5  ;;  %vm10227_vm5 = vcmask 130048  }
 0x82d   : > { %5357 = vmatpush1.msk.msra.mxu1 %vm8252_vm14, %v2621_v48  ;;  %v3199_v36 = vsel %vm10226_vm10, %v8354_v16, %v3175_v7  ;;  %vm10249_vm12 = vmmov %vm10227_vm5  ;;  %vm10259_vm10 = vcmask 793600  }
 0x82e   : > { %5358 = vmatprep.subr.msk.mxu1 %vm8439_vm8, %v3226_v45  ;;  %vm10250_vm6 = vmmov %vm10227_vm5 }
 0x82f   : > { %5359 = vmatpush2.msk.msra.mxu1 %vm8297_vm7, %v3206_v51  ;;  %5390 = vmatprep.mubr.msk.f32.mxu0 %vm10250_vm6, %v8743_v15  ;;  %vm10263_vm6 = vcmask 777216  }
 0x830   : > { %5360 = vmatprep.subr.msk.mxu1 %vm8439_vm8, %v3225_v14  ;;  %vm10295_vm8 = vcmask 252928  }
 0x831   : > { %5361 = vmatpush2.msk.msra.mxu1 %vm8297_vm7, %v3199_v36  ;;  %vm10302_vm7 = vcmask 7168  }
 0x832   : > { %3561 = vmatmul.mubr.f32.vlgmr.msra.gmra.mxu1 %v8014_v33 }
 0x833   : > { %5363 = vmatprep.mubr.msk.f32.mxu1 %vm10227_vm5, %v8046_v37  ;;  %vm10260_vm5 = vcmask 252928  }
 0x835   : > { %v8469_v50 = vpop.permute.xlu0 %3251 }
 0x836   : > { %3567 = vmatmul.mubr.f32.gmra.mxu1 %v8063_v41  ;;  %v8489_v37 = vpop.permute.xlu1 %3256 }
 0x837   : > { %5416 = vmatprep.mubr.msk.f32.mxu1 %vm10249_vm12, %v8743_v15  ;;  %vm10261_vm12 = vcmask 1039360  }
 0x8b5   : > { %v3331_v27 = vpop.f32.mrf.mxu0 }
 0x8b6   : > { %v3332_v1 = vadd.f32 %v3331_v27, %v8469_v50 }
 0x8b7   : > { %v3333_v49 = vpop.f32.mrf.mxu0 }
 0x8b8   : > { %v8472_v16 = vmax.f32 %v3332_v1, 0.0  ;;  %v3334_v31 = vadd.f32 %v3333_v49, %v8469_v50 }
 0x8ba   : > { %v8475_v55 = vmax.f32 %v3334_v31, 0.0  ;;  %4097 = vrot.lane.b32.xlu0 %v8472_v16, %s5530_s1  ;;  %v3337_v33 = vpop.f32.mrf.mxu0 }
 0x8bb   : > { %v3338_v41 = vadd.f32 %v3337_v33, %v8489_v37 }
 0x8bc   : > { %3859 = vrot.lane.b32.xlu1 %v8475_v55, %s9936_s3  ;;  %v3339_v46 = vpop.f32.mrf.mxu0 }
 0x8bd   : > { %v8496_v22 = vmax.f32 %v3338_v41, 0.0  ;;  %v3340_v8 = vadd.f32 %v3339_v46, %v8489_v37 }
 0x8be   : > { %4015 = vrot.lane.b32.xlu0 %v8472_v16, %s5531_s28 }
 0x8bf   : > { %v8529_v42 = vmax.f32 %v3340_v8, 0.0 }
 0x8c0   : > { %3777 = vrot.lane.b32.xlu1 %v8475_v55, %s5533_s16 }
 0x8c2   : > { %3933 = vrot.lane.b32.xlu0 %v8472_v16, %s9939_s2 }
 0x8c4   : > { %3695 = vrot.lane.b32.xlu1 %v8475_v55, %s5534_s23 }
 0x8c6   : > { %3857 = vrot.lane.b32.xlu0 %v8472_v16, %s9936_s3 }
 0x8c7   : > { %v3408_v28 = vpop.f32.mrf.mxu1 }
 0x8c8   : > { %3613 = vrot.lane.b32.xlu1 %v8475_v55, %s5535_s24  ;;  %v3409_v20 = vadd.f32 %v3408_v28, %v8469_v50 }
 0x8c9   : > { %v3410_v62 = vpop.f32.mrf.mxu1 }
 0x8ca   : > { %3775 = vrot.lane.b32.xlu0 %v8472_v16, %s5533_s16  ;;  %v8548_v0 = vmax.f32 %v3409_v20, 0.0  ;;  %v3411_v6 = vadd.f32 %v3410_v62, %v8469_v50 }
 0x8cc   : > { %4113 = vrot.lane.b32.xlu1 %v8496_v22, %s5530_s1  ;;  %v8567_v63 = vmax.f32 %v3411_v6, 0.0  ;;  %v3414_v47 = vpop.f32.mrf.mxu1 }
 0x8cd   : > { %v3415_v19 = vadd.f32 %v3414_v47, %v8489_v37 }
 0x8ce   : > { %3693 = vrot.lane.b32.xlu0 %v8472_v16, %s5534_s23  ;;  %v3416_v23 = vpop.f32.mrf.mxu1 }
 0x8cf   : > { %v8586_v4 = vmax.f32 %v3415_v19, 0.0  ;;  %v3417_v5 = vadd.f32 %v3416_v23, %v8489_v37 }
 0x8d0   : > { %4031 = vrot.lane.b32.xlu1 %v8496_v22, %s5531_s28 }
 0x8d1   : > { %v8605_v32 = vmax.f32 %v3417_v5, 0.0 }
 0x8d2   : > { %3611 = vrot.lane.b32.xlu0 %v8472_v16, %s5535_s24 }
 0x8d4   : > { %3949 = vrot.lane.b32.xlu1 %v8496_v22, %s9939_s2 }
 0x8d6   : > { %4179 = vrot.lane.b32.xlu0 %v8472_v16, %s5532_s27 }
 0x8d8   : > { %3871 = vrot.lane.b32.xlu1 %v8496_v22, %s9936_s3 }
 0x8da   : > { %4099 = vrot.lane.b32.xlu0 %v8475_v55, %s5530_s1 }
 0x8dc   : > { %3789 = vrot.lane.b32.xlu1 %v8496_v22, %s5533_s16 }
 0x8de   : > { %4017 = vrot.lane.b32.xlu0 %v8475_v55, %s5531_s28 }
 0x8e0   : > { %3707 = vrot.lane.b32.xlu1 %v8496_v22, %s5534_s23 }
 0x8e2   : > { %3935 = vrot.lane.b32.xlu0 %v8475_v55, %s9939_s2  ;;  %v3485_v29 = vpop.f32.mrf.mxu0 }
 0x8e3   : > { %v3486_v60 = vadd.f32 %v3485_v29, %v8469_v50 }
 0x8e4   : > { %3625 = vrot.lane.b32.xlu1 %v8496_v22, %s5535_s24  ;;  %v3487_v7 = vpop.f32.mrf.mxu0 }
 0x8e5   : > { %v8636_v39 = vmax.f32 %v3486_v60, 0.0  ;;  %v3488_v51 = vadd.f32 %v3487_v7, %v8469_v50 }
 0x8e6   : > { %4181 = vrot.lane.b32.xlu0 %v8475_v55, %s5532_s27  ;;  %v3491_v31 = vpop.f32.mrf.mxu0 }
 0x8e7   : > { %10231 = vst [vmem:[#allocation28_spill] sm:$0xff] %v8636_v39  ;;  %v8655_v36 = vmax.f32 %v3488_v51, 0.0  ;;  %v3492_v41 = vadd.f32 %v3491_v31, %v8489_v37 }
 0x8e8   : > { %4195 = vrot.lane.b32.xlu1 %v8496_v22, %s5532_s27  ;;  %v3493_v23 = vpop.f32.mrf.mxu0 }
 0x8e9   : > { %10235 = vst [vmem:[#allocation34_spill] sm:$0xff] %v8655_v36  ;;  %v8682_v28 = vmax.f32 %v3492_v41, 0.0  ;;  %v3494_v29 = vadd.f32 %v3493_v23, %v8489_v37 }
 0x8ea   : > { %3873 = vrot.lane.b32.xlu0 %v8529_v42, %s9936_s3 }
 0x8eb   : > { %10241 = vst [vmem:[#allocation8_spill] sm:$0xff] %v8682_v28  ;;  %v8717_v51 = vmax.f32 %v3494_v29, 0.0 }
 0x8ec   : > { %4115 = vrot.lane.b32.xlu1 %v8529_v42, %s5530_s1 }
 0x8ed   : > { %10247 = vst [vmem:[#allocation16_spill] sm:$0xff] %v8717_v51 }
 0x8ee   : > { %3791 = vrot.lane.b32.xlu0 %v8529_v42, %s5533_s16 }
 0x8f0   : > { %4033 = vrot.lane.b32.xlu1 %v8529_v42, %s5531_s28 }
 0x8f2   : > { %3709 = vrot.lane.b32.xlu0 %v8529_v42, %s5534_s23  ;;  %v3562_v54 = vpop.f32.mrf.mxu1 }
 0x8f3   : > { %v3563_v29 = vadd.f32 %v3562_v54, %v8469_v50 }
 0x8f4   : > { %3951 = vrot.lane.b32.xlu1 %v8529_v42, %s9939_s2  ;;  %v3564_v12 = vpop.f32.mrf.mxu1 }
 0x8f5   : > { %v8753_v54 = vmax.f32 %v3563_v29, 0.0  ;;  %v3565_v56 = vadd.f32 %v3564_v12, %v8469_v50 }
 0x8f6   : > { %3627 = vrot.lane.b32.xlu0 %v8529_v42, %s5535_s24  ;;  %v3568_v53 = vpop.f32.mrf.mxu1 }
 0x8f7   : > { %10251 = vst [vmem:[#allocation39_spill] sm:$0xff] %v8753_v54  ;;  %v3569_v12 = vadd.f32 %v3568_v53, %v8489_v37 }
 0x8f8   : > { %4197 = vrot.lane.b32.xlu1 %v8529_v42, %s5532_s27 }
 0x8fa   : > { %3861 = vrot.lane.b32.xlu0 %v8548_v0, %s9936_s3 }
 0x8fc   : > { %4101 = vrot.lane.b32.xlu1 %v8548_v0, %s5530_s1 }
 0x8fe   : > { %3779 = vrot.lane.b32.xlu0 %v8548_v0, %s5533_s16 }
 0x900   : > { %4019 = vrot.lane.b32.xlu1 %v8548_v0, %s5531_s28 }
 0x902   : > { %3697 = vrot.lane.b32.xlu0 %v8548_v0, %s5534_s23 }
 0x904   : > { %3937 = vrot.lane.b32.xlu1 %v8548_v0, %s9939_s2 }
 0x906   : > { %3615 = vrot.lane.b32.xlu0 %v8548_v0, %s5535_s24 }
 0x908   : > { %4183 = vrot.lane.b32.xlu1 %v8548_v0, %s5532_s27 }
 0x90a   : > { %4103 = vrot.lane.b32.xlu0 %v8567_v63, %s5530_s1 }
 0x90c   : > { %3863 = vrot.lane.b32.xlu1 %v8567_v63, %s9936_s3 }
 0x90e   : > { %4021 = vrot.lane.b32.xlu0 %v8567_v63, %s5531_s28 }
 0x910   : > { %3781 = vrot.lane.b32.xlu1 %v8567_v63, %s5533_s16 }
 0x912   : > { %3939 = vrot.lane.b32.xlu0 %v8567_v63, %s9939_s2 }
 0x914   : > { %3699 = vrot.lane.b32.xlu1 %v8567_v63, %s5534_s23 }
 0x916   : > { %4185 = vrot.lane.b32.xlu0 %v8567_v63, %s5532_s27 }
 0x918   : > { %3617 = vrot.lane.b32.xlu1 %v8567_v63, %s5535_s24 }
 0x91a   : > { %4117 = vrot.lane.b32.xlu0 %v8586_v4, %s5530_s1 }
 0x91c   : > { %3875 = vrot.lane.b32.xlu1 %v8586_v4, %s9936_s3 }
 0x91e   : > { %4035 = vrot.lane.b32.xlu0 %v8586_v4, %s5531_s28 }
 0x920   : > { %3793 = vrot.lane.b32.xlu1 %v8586_v4, %s5533_s16 }
 0x922   : > { %3953 = vrot.lane.b32.xlu0 %v8586_v4, %s9939_s2 }
 0x924   : > { %3711 = vrot.lane.b32.xlu1 %v8586_v4, %s5534_s23 }
 0x926   : > { %4199 = vrot.lane.b32.xlu0 %v8586_v4, %s5532_s27 }
 0x928   : > { %3629 = vrot.lane.b32.xlu1 %v8586_v4, %s5535_s24 }
 0x92a   : > { %3877 = vrot.lane.b32.xlu0 %v8605_v32, %s9936_s3 }
 0x92c   : > { %4119 = vrot.lane.b32.xlu1 %v8605_v32, %s5530_s1  ;;  %v8613_v40 = vpop.permute.xlu0 %4097 }
 0x92e   : > { %v8615_v17 = vpop.permute.xlu1 %3859  ;;  %3795 = vrot.lane.b32.xlu0 %v8605_v32, %s5533_s16 }
 0x930   : > { %4037 = vrot.lane.b32.xlu1 %v8605_v32, %s5531_s28  ;;  %v8621_v25 = vpop.permute.xlu0 %4015 }
 0x931   : > { %10228 = vst [vmem:[#allocation22_spill] sm:$0xff] %v8621_v25 }
 0x932   : > { %v8623_v3 = vpop.permute.xlu1 %3777  ;;  %3713 = vrot.lane.b32.xlu0 %v8605_v32, %s5534_s23 }
 0x934   : > { %3955 = vrot.lane.b32.xlu1 %v8605_v32, %s9939_s2  ;;  %v8630_v21 = vpop.permute.xlu0 %3933 }
 0x935   : > { %10229 = vst [vmem:[#allocation10_spill] sm:$0xff] %v8630_v21 }
 0x936   : > { %v8632_v52 = vpop.permute.xlu1 %3695  ;;  %3631 = vrot.lane.b32.xlu0 %v8605_v32, %s5535_s24 }
 0x937   : > { %10230 = vst [vmem:[#allocation30_spill] sm:$0xff] %v8632_v52 }
 0x938   : > { %4201 = vrot.lane.b32.xlu1 %v8605_v32, %s5532_s27  ;;  %v8640_v48 = vpop.permute.xlu0 %3857 }
 0x939   : > { %10232 = vst [vmem:[#allocation35_spill] sm:$0xff] %v8640_v48 }
 0x93a   : > { %v8642_v61 = vpop.permute.xlu1 %3613  ;;  %3865 = vrot.lane.b32.xlu0 %v8636_v39, %s9936_s3 }
 0x93b   : > { %10233 = vst [vmem:[#allocation23_spill] sm:$0xff] %v8642_v61 }
 0x93c   : > { %4105 = vrot.lane.b32.xlu1 %v8636_v39, %s5530_s1  ;;  %v8649_v45 = vpop.permute.xlu0 %3775 }
 0x93d   : > { %10234 = vst [vmem:[#allocation12_spill] sm:$0xff] %v8649_v45 }
 0x93e   : > { %v8651_v14 = vpop.permute.xlu1 %4113  ;;  %3783 = vrot.lane.b32.xlu0 %v8636_v39, %s5533_s16 }
 0x940   : > { %4023 = vrot.lane.b32.xlu1 %v8636_v39, %s5531_s28  ;;  %v8659_v27 = vpop.permute.xlu0 %3693 }
 0x941   : > { %10236 = vst [vmem:[#allocation25_spill] sm:$0xff] %v8659_v27 }
 0x942   : > { %v8661_v1 = vpop.permute.xlu1 %4031  ;;  %4107 = vrot.lane.b32.xlu0 %v8655_v36, %s5530_s1 }
 0x943   : > { %10237 = vst [vmem:[#allocation17_spill] sm:$0xff] %v8661_v1 }
 0x944   : > { %3941 = vrot.lane.b32.xlu1 %v8636_v39, %s9939_s2  ;;  %v8667_v49 = vpop.permute.xlu0 %3611 }
 0x945   : > { %10238 = vst [vmem:[#allocation36_spill] sm:$0xff] %v8667_v49  ;;  %v3570_v49 = vpop.f32.mrf.mxu1 }
 0x946   : > { %v8669_v33 = vpop.permute.xlu1 %3949  ;;  %4025 = vrot.lane.b32.xlu0 %v8655_v36, %s5531_s28  ;;  %v3571_v24 = vadd.f32 %v3570_v49, %v8489_v37 }
 0x947   : > { %10239 = vst [vmem:[#allocation14_spill] sm:$0xff] %v8669_v33 }
 0x948   : > { %4187 = vrot.lane.b32.xlu1 %v8636_v39, %s5532_s27  ;;  %v8676_v46 = vpop.permute.xlu0 %4179  ;;  %v8802_v27 = vmax.f32 %v3571_v24, 0.0 }
 0x949   : > { %10240 = vst [vmem:[#allocation13_spill] sm:$0xff] %v8676_v46  ;;  %v8772_v46 = vmax.f32 %v3565_v56, 0.0 }
 0x94a   : > { %v8678_v8 = vpop.permute.xlu1 %3871  ;;  %3943 = vrot.lane.b32.xlu0 %v8655_v36, %s9939_s2  ;;  %10258 = vst [vmem:[#allocation40_spill] sm:$0xff] %v8802_v27 }
 0x94b   : > { %10254 = vst [vmem:[#allocation18_spill] sm:$0xff] %v8772_v46 }
 0x94c   : > { %3867 = vrot.lane.b32.xlu1 %v8655_v36, %s9936_s3  ;;  %v8686_v20 = vpop.permute.xlu0 %4099 }
 0x94e   : > { %v8688_v62 = vpop.permute.xlu1 %3789  ;;  %4121 = vrot.lane.b32.xlu0 %v8682_v28, %s5530_s1 }
 0x94f   : > { %10242 = vst [vmem:[#allocation15_spill] sm:$0xff] %v8688_v62 }
 0x950   : > { %3785 = vrot.lane.b32.xlu1 %v8655_v36, %s5533_s16  ;;  %v8694_v6 = vpop.permute.xlu0 %4017 }
 0x952   : > { %v8696_v47 = vpop.permute.xlu1 %3707  ;;  %4039 = vrot.lane.b32.xlu0 %v8682_v28, %s5531_s28 }
 0x953   : > { %10243 = vst [vmem:[#allocation43_spill] sm:$0xff] %v8696_v47 }
 0x954   : > { %3879 = vrot.lane.b32.xlu1 %v8682_v28, %s9936_s3  ;;  %v8702_v19 = vpop.permute.xlu0 %3935 }
 0x956   : > { %v8704_v5 = vpop.permute.xlu1 %3625  ;;  %3957 = vrot.lane.b32.xlu0 %v8682_v28, %s9939_s2 }
 0x957   : > { %10244 = vst [vmem:[#allocation38_spill] sm:$0xff] %v8704_v5 }
 0x958   : > { %3797 = vrot.lane.b32.xlu1 %v8682_v28, %s5533_s16  ;;  %v8711_v60 = vpop.permute.xlu0 %4181 }
 0x959   : > { %10245 = vst [vmem:[#allocation3_spill] sm:$0xff] %v8711_v60 }
 0x95a   : > { %v8713_v7 = vpop.permute.xlu1 %4195  ;;  %4203 = vrot.lane.b32.xlu0 %v8682_v28, %s5532_s27 }
 0x95b   : > { %10246 = vst [vmem:[#allocation41_spill] sm:$0xff] %v8713_v7 }
 0x95c   : > { %3715 = vrot.lane.b32.xlu1 %v8682_v28, %s5534_s23  ;;  %v8721_v31 = vpop.permute.xlu0 %3873 }
 0x95e   : > { %v8723_v41 = vpop.permute.xlu1 %4115  ;;  %3881 = vrot.lane.b32.xlu0 %v8717_v51, %s9936_s3 }
 0x960   : > { %4123 = vrot.lane.b32.xlu1 %v8717_v51, %s5530_s1  ;;  %v8729_v23 = vpop.permute.xlu0 %3791 }
 0x962   : > { %v8731_v57 = vpop.permute.xlu1 %4033  ;;  %3799 = vrot.lane.b32.xlu0 %v8717_v51, %s5533_s16 }
 0x964   : > { %4041 = vrot.lane.b32.xlu1 %v8717_v51, %s5531_s28  ;;  %v8738_v11 = vpop.permute.xlu0 %3709 }
 0x966   : > { %v8745_v2 = vpop.permute.xlu1 %3951  ;;  %3717 = vrot.lane.b32.xlu0 %v8717_v51, %s5534_s23 }
 0x968   : > { %3959 = vrot.lane.b32.xlu1 %v8717_v51, %s9939_s2  ;;  %v8757_v38 = vpop.permute.xlu0 %3627 }
 0x969   : > { %10252 = vst [vmem:[#allocation4_spill] sm:$0xff] %v8757_v38 }
 0x96a   : > { %v8759_v44 = vpop.permute.xlu1 %4197  ;;  %3869 = vrot.lane.b32.xlu0 %v8753_v54, %s9936_s3 }
 0x96b   : > { %10253 = vst [vmem:[#allocation45_spill] sm:$0xff] %v8759_v44  ;;  %v8785_v44 = vmax.f32 %v3569_v12, 0.0 }
 0x96c   : > { %4109 = vrot.lane.b32.xlu1 %v8753_v54, %s5530_s1  ;;  %v8766_v30 = vpop.permute.xlu0 %3861 }
 0x96d   : > { %10255 = vst [vmem:[#allocation24_spill] sm:$0xff] %v8785_v44 }
 0x96e   : > { %v8768_v29 = vpop.permute.xlu1 %4101  ;;  %3787 = vrot.lane.b32.xlu0 %v8753_v54, %s5533_s16 }
 0x970   : > { %4027 = vrot.lane.b32.xlu1 %v8753_v54, %s5531_s28  ;;  %v8776_v60 = vpop.permute.xlu0 %3779 }
 0x972   : > { %v4020_v50 = vpop.permute.xlu1 %4019  ;;  %3851 = vrot.lane.b32.xlu0 %v8772_v46, %s9936_s3 }
 0x974   : > { %3945 = vrot.lane.b32.xlu1 %v8753_v54, %s9939_s2  ;;  %v8783_v7 = vpop.permute.xlu0 %3697 }
 0x976   : > { %v3938_v56 = vpop.permute.xlu1 %3937  ;;  %3769 = vrot.lane.b32.xlu0 %v8772_v46, %s5533_s16 }
 0x978   : > { %3883 = vrot.lane.b32.xlu1 %v8785_v44, %s9936_s3  ;;  %v8791_v53 = vpop.permute.xlu0 %3615 }
 0x979   : > { %10256 = vst [vmem:[#allocation5_spill] sm:$0xff] %v8791_v53 }
 0x97a   : > { %v8794_v5 = vpop.permute.xlu1 %4183  ;;  %3687 = vrot.lane.b32.xlu0 %v8772_v46, %s5534_s23 }
 0x97b   : > { %10257 = vst [vmem:[#allocation49_spill] sm:$0xff] %v8794_v5 }
 0x97c   : > { %3801 = vrot.lane.b32.xlu1 %v8785_v44, %s5533_s16  ;;  %v8800_v12 = vpop.permute.xlu0 %4103 }
 0x97e   : > { %v8804_v9 = vpop.permute.xlu1 %3863  ;;  %3591 = vrot.lane.b32.xlu0 %v8772_v46, %s5535_s24 }
 0x980   : > { %3853 = vrot.lane.b32.xlu1 %v8802_v27, %s9936_s3  ;;  %v8810_v37 = vpop.permute.xlu0 %4021 }
 0x981   : > { %v8814_v49 = vsel %vm10259_vm10, %v4020_v50, %v8810_v37  ;;  %vm10266_vm10 = vcmask 785408  }
 0x982   : > { %v8816_v47 = vpop.permute.xlu1 %3781  ;;  %4111 = vrot.lane.b32.xlu0 %v8772_v46, %s5530_s1 }
 0x983   : > { %v8823_v24 = vsel %vm10260_vm5, %v8776_v60, %v8816_v47  ;;  %vm10267_vm5 = vmmov %vm10266_vm10 }
 0x984   : > { %3771 = vrot.lane.b32.xlu1 %v8802_v27, %s5533_s16  ;;  %v8827_v45 = vpop.permute.xlu0 %3939 }
 0x985   : > { %v8831_v43 = vsel %vm10261_vm12, %v3938_v56, %v8827_v45  ;;  %vm10268_vm12 = vmmov %vm10267_vm5 }
 0x986   : > { %v8833_v62 = vpop.permute.xlu1 %3699  ;;  %4029 = vrot.lane.b32.xlu0 %v8772_v46, %s5531_s28 }
 0x988   : > { %3689 = vrot.lane.b32.xlu1 %v8802_v27, %s5534_s23  ;;  %v8839_v48 = vpop.permute.xlu0 %4185 }
 0x989   : > { %10262 = vst [vmem:[#allocation21_spill] sm:$0xff] %v8839_v48  ;;  %v8844_v15 = vsel %vm10263_vm6, %v8794_v5, %v8839_v48  ;;  %v4136_v5 = vsel %vm10267_vm5, %v8651_v14, %v8723_v41  ;;  %vm10269_vm6 = vmmov %vm10267_vm5 }
 0x98a   : > { %10264 = vst [vmem:[#allocation19_spill] sm:$0xff] %v8844_v15  ;;  %v8846_v61 = vpop.permute.xlu1 %3617  ;;  %3947 = vrot.lane.b32.xlu0 %v8772_v46, %s9939_s2  ;;  %v4130_v15 = vsel %vm10268_vm12, %v8686_v20, %v8768_v29 }
 0x98b   : > { %10265 = vst [vmem:[#allocation48_spill] sm:$0xff] %v8846_v61  ;;  %v4129_v61 = vsel %vm10269_vm6, %v8613_v40, %v8686_v20 }
 0x98c   : > { %3593 = vrot.lane.b32.xlu1 %v8802_v27, %s5535_s24  ;;  %v8852_v53 = vpop.permute.xlu0 %4117 }
 0x98d   : > { %v4137_v38 = vsel %vm10266_vm10, %v8723_v41, %v8852_v53  ;;  %vm10270_vm10 = vcmask 793600  }
 0x98e   : > { %v8857_v52 = vpop.permute.xlu1 %3875  ;;  %4125 = vrot.lane.b32.xlu0 %v8785_v44, %s5530_s1  ;;  %4283 = vmatprep.subr.mxu0 %v4137_v38  ;;  %vm10271_vm5 = vmmov %vm10270_vm10 }
 0x98f   : > { %4284 = vmatpush1.msra.mxu0 %v4136_v5  ;;  %v4054_v5 = vsel %vm10271_vm5, %v8661_v1, %v8731_v57  ;;  %vm10272_vm12 = vmmov %vm10271_vm5 }
 0x990   : > { %3719 = vrot.lane.b32.xlu1 %v8785_v44, %s5534_s23  ;;  %4285 = vmatprep.subr.mxu0 %v4130_v15  ;;  %v8869_v48 = vpop.permute.xlu0 %4035  ;;  %v4048_v15 = vsel %vm10272_vm12, %v8694_v6, %v4020_v50  ;;  %vm10273_vm6 = vmmov %vm10271_vm5 }
 0x991   : > { %v4055_v38 = vsel %vm10270_vm10, %v8731_v57, %v8869_v48  ;;  %4286 = vmatpush1.msra.mxu0 %v4129_v61  ;;  %v4047_v61 = vsel %vm10273_vm6, %v8621_v25, %v8694_v6  ;;  %vm10274_vm10 = vcmask 1039360   ;;  %vm10277_vm6 = vnez %v10022_v35 }
 0x992   : > { %v8880_v41 = vpop.permute.xlu1 %3793  ;;  %4043 = vrot.lane.b32.xlu0 %v8785_v44, %s5531_s28  ;;  %5364 = vmatprep.subr.msk.mxu0 %vm7622_vm9, %v4055_v38  ;;  %vm10275_vm5 = vmmov %vm10274_vm10 }
 0x993   : > { %5365 = vmatpush1.msk.msra.mxu0 %vm7631_vm15, %v4054_v5  ;;  %v3972_v50 = vsel %vm10275_vm5, %v8669_v33, %v8745_v2  ;;  %vm10276_vm12 = vmmov %vm10275_vm5 }
 0x994   : > { %4127 = vrot.lane.b32.xlu1 %v8802_v27, %s5530_s1  ;;  %5366 = vmatprep.subr.msk.mxu0 %vm7622_vm9, %v4048_v15  ;;  %v8897_v57 = vpop.permute.xlu0 %3953  ;;  %v3966_v38 = vsel %vm10276_vm12, %v8702_v19, %v3938_v56  ;;  %s9616_s1 = scalar_lea.vmem %s9720_s18, %s5485_s22 }
 0x995   : > { %v3973_v20 = vsel %vm10274_vm10, %v8745_v2, %v8897_v57  ;;  %5367 = vmatpush1.msk.msra.mxu0 %vm7631_vm15, %v4047_v61  ;;  %vm10278_vm10 = vmmov %vm10275_vm5  ;;  %vm10279_vm5 = vcmask 7168  }
 0x996   : > { %v8907_v6 = vpop.permute.xlu1 %3711  ;;  %3961 = vrot.lane.b32.xlu0 %v8785_v44, %s9939_s2  ;;  %5368 = vmatprep.subr.msk.mxu0 %vm7650_vm1, %v3973_v20  ;;  %v3965_v5 = vsel %vm10278_vm10, %v8630_v21, %v8702_v19  ;;  %v3892_v56 = vsel %vm10279_vm5, %v8678_v8, %v8721_v31  ;;  %vm10280_vm12 = vmmov %vm10279_vm5  ;;  %vm10282_vm10 = vcmask 252928   ;;  %vm10284_vm5 = vcmask 785408  }
 0x997   : > { %5369 = vmatpush1.msk.msra.mxu0 %vm10277_vm6, %v3972_v50 }
 0x998   : > { %4045 = vrot.lane.b32.xlu1 %v8802_v27, %s5531_s28  ;;  %5370 = vmatprep.subr.msk.mxu0 %vm7650_vm1, %v3966_v38  ;;  %v8924_v2 = vpop.permute.xlu0 %4199 }
 0x999   : > { %5371 = vmatpush1.msk.msra.mxu0 %vm10277_vm6, %v3965_v5 }
 0x99a   : > { %v8928_v15 = vpop.permute.xlu1 %3629  ;;  %3701 = vrot.lane.b32.xlu0 %v8636_v39, %s5534_s23  ;;  %4295 = vmatprep.subr.mxu0 %v8529_v42 }
 0x99b   : > { %4296 = vmatpush1.msra.mxu0 %v8496_v22 }
 0x99c   : > { %3963 = vrot.lane.b32.xlu1 %v8802_v27, %s9939_s2  ;;  %4297 = vmatprep.subr.mxu0 %v8475_v55  ;;  %v8937_v19 = vpop.permute.xlu0 %3877 }
 0x99d   : > { %4298 = vmatpush1.msra.mxu0 %v8472_v16 }
 0x99e   : > { %v4120_v61 = vpop.permute.xlu1 %4119  ;;  %3705 = vrot.lane.b32.xlu0 %v8753_v54, %s5534_s23  ;;  %5372 = vmatprep.subr.msk.mxu0 %vm7622_vm9, %v3892_v56 }
 0x9a0   : > { %3703 = vrot.lane.b32.xlu1 %v8655_v36, %s5534_s23  ;;  %v8949_v22 = vpop.permute.xlu0 %3795 }
 0x9a2   : > { %v4038_v55 = vpop.permute.xlu1 %4037  ;;  %3635 = vrot.lane.b32.xlu0 %v8717_v51, %s5535_s24 }
 0x9a4   : > { %3633 = vrot.lane.b32.xlu1 %v8682_v28, %s5535_s24  ;;  %v8955_v16 = vpop.permute.xlu0 %3713 }
 0x9a6   : > { %v3956_v42 = vpop.permute.xlu1 %3955  ;;  %3619 = vrot.lane.b32.xlu0 %v8636_v39, %s5535_s24 }
 0x9a8   : > { %3637 = vrot.lane.b32.xlu1 %v8785_v44, %s5535_s24  ;;  %v8961_v20 = vpop.permute.xlu0 %3631 }
 0x9aa   : > { %v8963_v50 = vpop.permute.xlu1 %4201  ;;  %3623 = vrot.lane.b32.xlu0 %v8753_v54, %s5535_s24 }
 0x9ac   : > { %3621 = vrot.lane.b32.xlu1 %v8655_v36, %s5535_s24  ;;  %v3866_v38 = vpop.permute.xlu0 %3865 }
 0x9ad   : > { %v8971_v5 = vsel %vm10280_vm12, %v8804_v9, %v3866_v38  ;;  %vm10287_vm12 = vcmask 793600  }
 0x9ae   : > { %10281 = vst [vmem:[#allocation11_spill] sm:$0xff] %v8971_v5  ;;  %v4106_v56 = vpop.permute.xlu1 %4105  ;;  %4207 = vrot.lane.b32.xlu0 %v8785_v44, %s5532_s27 }
 0x9b0   : > { %4205 = vrot.lane.b32.xlu1 %v8717_v51, %s5532_s27  ;;  %v3784_v39 = vpop.permute.xlu0 %3783 }
 0x9b1   : > { %v8979_v28 = vsel %vm10282_vm10, %v8816_v47, %v3784_v39  ;;  %v4265_v47 = vld [vmem:[%s9715_s13] sm:$0xff]  ;;  %vm10290_vm10 = vcmask 1039360  }
 0x9b2   : > { %10283 = vst [vmem:[#allocation6_spill] sm:$0xff] %v8979_v28  ;;  %v4024_v21 = vpop.permute.xlu1 %4023  ;;  %4189 = vrot.lane.b32.xlu0 %v8655_v36, %s5532_s27 }
 0x9b4   : > { %4209 = vrot.lane.b32.xlu1 %v8802_v27, %s5532_s27  ;;  %v8985_v5 = vpop.permute.xlu0 %4107  ;;  %v4266_v27 = vld [vmem:[%s9715_s13 + $0x8] sm:$0xff] }
 0x9b5   : > { %v8989_v44 = vsel %vm10284_vm5, %v4106_v56, %v8985_v5  ;;  %vm10292_vm5 = vcmask 7168  }
 0x9b6   : > { %10285 = vst [vmem:[#allocation42_spill] sm:$0xff] %v8989_v44  ;;  %v3942_v33 = vpop.permute.xlu1 %3941  ;;  %4193 = vrot.lane.b32.xlu0 %v8772_v46, %s5532_s27  ;;  %v4626_v46 = vld [vmem:[%s9717_s15 + $0x8] sm:$0xff] }
 0x9b8   : > { %4191 = vrot.lane.b32.xlu1 %v8753_v54, %s5532_s27  ;;  %v8998_v28 = vpop.permute.xlu0 %4025 }
 0x9b9   : > { %10286 = vst [vmem:[#allocation37_spill] sm:$0xff] %v8998_v28  ;;  %v9002_v36 = vsel %vm10287_vm12, %v4024_v21, %v8998_v28  ;;  %vm10293_vm12 = vcmask 785408  }
 0x9ba   : > { %10288 = vst [vmem:[#allocation52_spill] sm:$0xff] %v9002_v36  ;;  %v9007_v51 = vpop.permute.xlu1 %4187  ;;  %4269 = vperm.xlu0 %5511, %v4265_v47   ;;  %v4625_v36 = vld [vmem:[%s9717_s15] sm:$0xff] }
 0x9bc   : > { %4274 = vperm.xlu1 %5512, %v4266_v27   ;;  %v9012_v25 = vpop.permute.xlu0 %3943 }
 0x9bd   : > { %10289 = vst [vmem:[#allocation53_spill] sm:$0xff] %v9012_v25  ;;  %v9016_v54 = vsel %vm10290_vm10, %v3942_v33, %v9012_v25  ;;  %vm10294_vm10 = vmmov %vm10293_vm12 }
 0x9be   : > { %10291 = vst [vmem:[#allocation54_spill] sm:$0xff] %v9016_v54  ;;  %v9021_v28 = vpop.permute.xlu1 %3867  ;;  %4634 = vperm.xlu0 %5511, %v4626_v46   ;;  %v4138_v54 = vsel %vm10294_vm10, %v8852_v53, %v4120_v61 }
 0x9bf   : > { %v9025_v47 = vsel %vm10292_vm5, %v3866_v38, %v9021_v28  ;;  %vm10296_vm5 = vmmov %vm10294_vm10 }
 0x9c0   : > { %4629 = vperm.xlu1 %5512, %v4625_v36   ;;  %v9027_v1 = vpop.permute.xlu0 %4121  ;;  %v4132_v46 = vsel %vm10296_vm5, %v8800_v12, %v4106_v56  ;;  %vm10297_vm3 = vmmov %vm10296_vm5 }
 0x9c1   : > { %v4139_v27 = vsel %vm10293_vm12, %v4120_v61, %v9027_v1  ;;  %v4131_v36 = vsel %vm10297_vm3, %v8768_v29, %v8800_v12  ;;  %vm10298_vm12 = vcmask 793600   ;;  %vm10303_vm3 = vnez %v10058_v18  ;;  %v9214_v18 = vld [vmem:[%s9714_s12] sm:$0xff] }
 0x9c2   : > { %v9033_v25 = vpop.permute.xlu1 %3785  ;;  %4360 = vmatprep.subr.mxu1 %v4139_v27  ;;  %vm10299_vm10 = vmmov %vm10298_vm12 }
 0x9c3   : > { %v9037_v44 = vsel %vm10295_vm8, %v3784_v39, %v9033_v25  ;;  %4361 = vmatpush1.msra.mxu1 %v4138_v54  ;;  %v4056_v61 = vsel %vm10299_vm10, %v8869_v48, %v4038_v55  ;;  %vm10300_vm8 = vnez %v10056_v34  ;;  %vm10301_vm5 = vmmov %vm10299_vm10  ;;  %v10336_v34 = vld [vmem:[#allocation21_spill] sm:$0xff] }
 0x9c4   : > { %4362 = vmatprep.subr.mxu1 %v4132_v46  ;;  %v9044_v38 = vpop.permute.xlu0 %4039  ;;  %v4050_v54 = vsel %vm10301_vm5, %v8810_v37, %v4024_v21 }
 0x9c5   : > { %v4057_v53 = vsel %vm10298_vm12, %v4038_v55, %v9044_v38  ;;  %4363 = vmatpush1.msra.mxu1 %v4131_v36  ;;  %vm10304_vm12 = vcmask 1039360  }
 0x9c6   : > { %v3880_v39 = vpop.permute.xlu1 %3879  ;;  %5392 = vmatprep.subr.msk.mxu1 %vm10300_vm8, %v4057_v53  ;;  %vm10305_vm10 = vmmov %vm10304_vm12  ;;  %v10324_v53 = vld [vmem:[#allocation30_spill] sm:$0xff] }
 0x9c7   : > { %v9056_v29 = vsel %vm10302_vm7, %v8937_v19, %v3880_v39  ;;  %5393 = vmatpush1.msk.msra.mxu1 %vm10303_vm3, %v4056_v61  ;;  %v3974_v21 = vsel %vm10305_vm10, %v8897_v57, %v3956_v42  ;;  %vm10306_vm7 = vnez %v10060_v58  ;;  %vm10307_vm5 = vmmov %vm10305_vm10  ;;  %vm10310_vm10 = vcmask 261120   ;;  %v9236_v58 = vld [vmem:[%s9714_s12 + $0x10] sm:$0xff] }
 0x9c8   : > { %5394 = vmatprep.subr.msk.mxu1 %vm10300_vm8, %v4050_v54  ;;  %v9062_v12 = vpop.permute.xlu0 %3957  ;;  %v3968_v55 = vsel %vm10307_vm5, %v8827_v45, %v3942_v33 }
 0x9c9   : > { %v3975_v48 = vsel %vm10304_vm12, %v3956_v42, %v9062_v12  ;;  %5395 = vmatpush1.msk.msra.mxu1 %vm10303_vm3, %v8814_v49  ;;  %vm10309_vm12 = vnez %v10062_v26  ;;  %v10340_v26 = vld [vmem:[#allocation47_spill] sm:$0xff] }
 0x9ca   : > { %v3798_v37 = vpop.permute.xlu1 %3797  ;;  %5396 = vmatprep.subr.msk.mxu1 %vm10306_vm7, %v3975_v48 }
 0x9cb   : > { %v9077_v56 = vsel %vm10308_vm2, %v8949_v22, %v3798_v37  ;;  %5397 = vmatpush1.msk.msra.mxu1 %vm10309_vm12, %v3974_v21  ;;  %vm10311_vm2 = vcmask 7168   ;;  %v10329_v21 = vld [vmem:[#allocation48_spill] sm:$0xff] }
 0x9cc   : > { %5398 = vmatprep.subr.msk.mxu1 %vm10306_vm7, %v3968_v55  ;;  %v9083_v49 = vpop.permute.xlu0 %4203  ;;  %v3894_v42 = vsel %vm10311_vm2, %v8857_v52, %v8937_v19  ;;  %vm10312_vm5 = vmmov %vm10311_vm2  ;;  %v10332_v55 = vld [vmem:[#allocation23_spill] sm:$0xff] }
 0x9cd   : > { %5399 = vmatpush1.msk.msra.mxu1 %vm10309_vm12, %v8831_v43  ;;  %vm10314_vm0 = vmmov %vm10311_vm2 }
 0x9ce   : > { %v3716_v57 = vpop.permute.xlu1 %3715  ;;  %4372 = vmatprep.subr.mxu1 %v8605_v32 }
 0x9cf   : > { %v9091_v45 = vsel %vm10310_vm10, %v8955_v16, %v3716_v57  ;;  %4373 = vmatpush1.msra.mxu1 %v8586_v4  ;;  %vm10313_vm10 = vmmov %vm10311_vm2 }
 0x9d0   : > { %4374 = vmatprep.subr.mxu1 %v8567_v63  ;;  %v9095_v33 = vpop.permute.xlu0 %3881  ;;  %v3893_v32 = vsel %vm10313_vm10, %v8721_v31, %v8857_v52  ;;  %v3887_v63 = vsel %vm10314_vm0, %v8766_v30, %v8804_v9  ;;  %vm10315_vm2 = vmmov %vm10314_vm0 }
 0x9d1   : > { %v9102_v43 = vsel %vm10312_vm5, %v3880_v39, %v9095_v33  ;;  %4375 = vmatpush1.msra.mxu1 %v8548_v0  ;;  %v3886_v0 = vsel %vm10315_vm2, %v8615_v17, %v8766_v30  ;;  %vm10316_vm5 = vcmask 252928  }
 0x9d2   : > { %v9108_v27 = vpop.permute.xlu1 %4123  ;;  %5400 = vmatprep.subr.msk.mxu1 %vm10300_vm8, %v3894_v42  ;;  %v3812_v52 = vsel %vm10316_vm5, %v8880_v41, %v8949_v22  ;;  %vm10317_vm10 = vmmov %vm10316_vm5 }
 0x9d3   : > { %5401 = vmatpush1.msk.msra.mxu1 %vm10303_vm3, %v3893_v32  ;;  %vm10318_vm0 = vmmov %vm10316_vm5  ;;  %vm10320_vm5 = vcmask 261120  }
 0x9d4   : > { %5402 = vmatprep.subr.msk.mxu1 %vm10300_vm8, %v3887_v63  ;;  %v9122_v4 = vpop.permute.xlu0 %3799  ;;  %v3811_v9 = vsel %vm10318_vm0, %v8729_v23, %v8880_v41  ;;  %vm10319_vm2 = vmmov %vm10318_vm0  ;;  %v3730_v41 = vsel %vm10320_vm5, %v8907_v6, %v8955_v16 }
 0x9d5   : > { %v9129_v31 = vsel %vm10317_vm10, %v3798_v37, %v9122_v4  ;;  %5403 = vmatpush1.msk.msra.mxu1 %vm10303_vm3, %v3886_v0  ;;  %v3804_v19 = vsel %vm10319_vm2, %v8623_v3, %v8776_v60  ;;  %vm10321_vm10 = vmmov %vm10320_vm5  ;;  %v10330_v37 = vld [vmem:[#allocation5_spill] sm:$0xff] }
 0x9d6   : > { %v9136_v30 = vpop.permute.xlu1 %4041  ;;  %5404 = vmatprep.subr.msk.mxu1 %vm10306_vm7, %v3812_v52  ;;  %vm10322_vm0 = vmmov %vm10320_vm5  ;;  %vm10326_vm5 = vcmask 269312   ;;  %v9223_v52 = vld [vmem:[%s9714_s12 + $0x18] sm:$0xff] }
 0x9d7   : > { %5405 = vmatpush1.msk.msra.mxu1 %vm10309_vm12, %v3811_v9  ;;  %v3729_v60 = vsel %vm10322_vm0, %v8738_v11, %v8907_v6  ;;  %vm10323_vm2 = vmmov %vm10322_vm0  ;;  %v3648_v39 = vsel %vm10326_vm5, %v8928_v15, %v8961_v20  ;;  %v10327_v6 = vld [vmem:[#allocation4_spill] sm:$0xff]  ;;  %v10338_v9 = vld [vmem:[#allocation19_spill] sm:$0xff] }
 0x9d8   : > { %5406 = vmatprep.subr.msk.mxu1 %vm10306_vm7, %v8823_v24  ;;  %v9148_v22 = vpop.permute.xlu0 %3717  ;;  %v3723_v24 = vsel %vm10323_vm2, %v8783_v7, %v8833_v62  ;;  %vm10325_vm14 = vmmov %vm10322_vm0  ;;  %vm10334_vm2 = vcmask 777216  }
 0x9d9   : > { %5407 = vmatpush1.msk.msra.mxu1 %vm10309_vm12, %v3804_v19  ;;  %v9157_v46 = vsel %vm10321_vm10, %v3716_v57, %v9148_v22  ;;  %v3722_v16 = vsel %vm10325_vm14, %v10324_v53, %v8783_v7  ;;  %vm10328_vm10 = vmmov %vm10326_vm5  ;;  %v4221_v42 = vsel %vm10334_vm2, %v8963_v50, %v9083_v49 }
 0x9da   : > { %v9162_v36 = vpop.permute.xlu1 %3959  ;;  %4384 = vmatprep.subr.mxu1 %v3730_v41  ;;  %v3647_v54 = vsel %vm10328_vm10, %v10327_v6, %v8928_v15  ;;  %vm10331_vm14 = vmmov %vm10326_vm5 }
 0x9db   : > { %4385 = vmatpush1.msra.mxu1 %v3729_v60  ;;  %v3641_v7 = vsel %vm10331_vm14, %v10330_v37, %v10329_v21  ;;  %vm10333_vm0 = vmmov %vm10326_vm5 }
 0x9dc   : > { %4386 = vmatprep.subr.mxu1 %v3723_v24  ;;  %v9170_v61 = vpop.permute.xlu0 %3869  ;;  %v3640_v57 = vsel %vm10333_vm0, %v10332_v55, %v10330_v37  ;;  %vm10335_vm5 = vmmov %vm10334_vm2  ;;  %vm10347_vm0 = vcmask 252928  }
 0x9dd   : > { %4387 = vmatpush1.msra.mxu1 %v3722_v16  ;;  %v4220_v32 = vsel %vm10335_vm5, %v8924_v2, %v8963_v50 }
 0x9de   : > { %v9178_v48 = vpop.permute.xlu1 %4109  ;;  %5408 = vmatprep.subr.msk.mxu1 %vm10300_vm8, %v3648_v39 }
 0x9df   : > { %5409 = vmatpush1.msk.msra.mxu1 %vm10303_vm3, %v3647_v54 }
 0x9e0   : > { %5410 = vmatprep.subr.msk.mxu1 %vm10300_vm8, %v3641_v7  ;;  %v9192_v15 = vpop.permute.xlu0 %3787  ;;  %vm10337_vm8 = vmmov %vm10334_vm2 }
 0x9e1   : > { %5411 = vmatpush1.msk.msra.mxu1 %vm10303_vm3, %v3640_v57  ;;  %v4214_v0 = vsel %vm10337_vm8, %v10336_v34, %v9007_v51  ;;  %vm10339_vm3 = vcmask 130048   ;;  %v10343_v57 = vld [vmem:[#allocation35_spill] sm:$0xff]  ;;  %vm10348_vm2 = vmmov %vm10347_vm0 }
 0x9e2   : > { %v9202_v63 = vpop.permute.xlu1 %4027  ;;  %5412 = vmatprep.subr.msk.mxu1 %vm10306_vm7, %v4221_v42  ;;  %vm10352_vm8 = vmmov %vm10347_vm0 }
 0x9e3   : > { %5413 = vmatpush2.msk.msra.mxu1 %vm10309_vm12, %v4220_v32 }
 0x9e4   : > { %5414 = vmatprep.subr.msk.mxu1 %vm10306_vm7, %v4214_v0  ;;  %v9218_v50 = vpop.permute.xlu0 %3851  ;;  %vm10341_vm7 = vmmov %vm10339_vm3 }
 0x9e5   : > { %5415 = vmatpush2.msk.msra.mxu1 %vm10309_vm12, %v10338_v9  ;;  %vm10342_vm12 = vcmask 7168   ;;  %v10349_v9 = vld [vmem:[#allocation50_spill] sm:$0xff] }
 0x9e6   : > { %v9228_v19 = vpop.permute.xlu1 %3945  ;;  %4425 = vmatmul.mubr.f32.vlgmr.msra.gmra.mxu1 %v9214_v18  ;;  %vm10344_vm10 = vmmov %vm10342_vm12  ;;  %vm10350_vm5 = vnez %v10349_v9 }
 0x9e7   : > { %5417 = vmatprep.mubr.msk.f32.mxu1 %vm10339_vm3, %v9223_v52  ;;  %v3885_v42 = vsel %vm10344_vm10, %v10343_v57, %v8615_v17  ;;  %vm10345_vm14 = vmmov %vm10344_vm10  ;;  %vm10355_vm3 = vcmask 261120  }
 0x9e8   : > { %v9238_v41 = vpop.permute.xlu0 %3769  ;;  %v3915_v32 = vsel %vm10345_vm14, %v9218_v50, %v10343_v57  ;;  %v10351_v57 = vld [vmem:[#allocation12_spill] sm:$0xff]  ;;  %vm10360_vm10 = vmmov %vm10355_vm3 }
 0x9e9   : > { %v3803_v13 = vsel %vm10352_vm8, %v10351_v57, %v8623_v3  ;;  %vm10361_vm14 = vmmov %vm10355_vm3 }
 0x9ea   : > { %v9240_v60 = vpop.permute.xlu1 %3883  ;;  %4431 = vmatmul.mubr.f32.gmra.mxu1 %v9236_v58 }
 0x9eb   : > { %5470 = vmatprep.mubr.msk.f32.mxu1 %vm10341_vm7, %v10340_v26  ;;  %vm10356_vm7 = vmmov %vm10355_vm3 }
 0x9ec   : > { %v9245_v24 = vpop.permute.xlu0 %3687 }
 0x9ee   : > { %v9247_v16 = vpop.permute.xlu1 %3801 }
 0x9f0   : > { %v9249_v39 = vpop.permute.xlu0 %3591 }
 0x9f2   : > { %v9251_v54 = vpop.permute.xlu1 %3853 }
 0x9f3   : > { %v3916_v37 = vsel %vm10342_vm12, %v9251_v54, %v8678_v8  ;;  %v10346_v8 = vld [vmem:[#allocation15_spill] sm:$0xff] }
 0x9f4   : > { %5373 = vmatpush1.msk.msra.mxu0 %vm7631_vm15, %v3916_v37  ;;  %v4112_v7 = vpop.permute.xlu0 %4111  ;;  %v3810_v0 = vsel %vm10347_vm0, %v10346_v8, %v8729_v23 }
 0x9f5   : > { %5374 = vmatprep.subr.msk.mxu0 %vm7622_vm9, %v3885_v42 }
 0x9f6   : > { %v9266_v34 = vpop.permute.xlu1 %3771  ;;  %5375 = vmatpush1.msk.msra.mxu0 %vm7631_vm15, %v3915_v32  ;;  %vm10353_vm15 = vmmov %vm10347_vm0  ;;  %v10354_v32 = vld [vmem:[#allocation43_spill] sm:$0xff] }
 0x9f7   : > { %v3834_v17 = vsel %vm10348_vm2, %v9266_v34, %v10346_v8  ;;  %5376 = vmatprep.subr.msk.mxu0 %vm7650_vm1, %v3810_v0  ;;  %v3833_v23 = vsel %vm10353_vm15, %v9238_v41, %v10351_v57  ;;  %v3728_v8 = vsel %vm10355_vm3, %v10354_v32, %v8738_v11  ;;  %v10357_v0 = vld [vmem:[#allocation2_spill] sm:$0xff]  ;;  %v10359_v57 = vld [vmem:[#allocation25_spill] sm:$0xff]  ;;  %vm10364_vm2 = vcmask 269312  }
 0x9f8   : > { %5377 = vmatpush1.msk.msra.mxu0 %vm10350_vm5, %v3834_v17  ;;  %v9280_v37 = vpop.permute.xlu0 %4029  ;;  %vm10358_vm12 = vcmp.ge.s32.totalorder %v10357_v0, 32  ;;  %v3751_v9 = vsel %vm10361_vm14, %v9245_v24, %v10359_v57  ;;  %vm10369_vm15 = vmmov %vm10364_vm2  ;;  %vm10380_vm14 = vcmask 785408  }
 0x9f9   : > { %5378 = vmatprep.subr.msk.mxu0 %vm7650_vm1, %v3803_v13  ;;  %v3721_v13 = vsel %vm10360_vm10, %v10359_v57, %v10324_v53  ;;  %vm10362_vm0 = vmmov %vm10358_vm12  ;;  %v10366_v53 = vld [vmem:[#allocation51_spill] sm:$0xff]  ;;  %v10368_v57 = vld [vmem:[#allocation36_spill] sm:$0xff] }
 0x9fa   : > { %v9290_v42 = vpop.permute.xlu1 %3689  ;;  %5379 = vmatpush1.msk.msra.mxu0 %vm10350_vm5, %v3833_v23  ;;  %v10363_v23 = vld [vmem:[#allocation38_spill] sm:$0xff]  ;;  %vm10365_vm5 = vmmov %vm10364_vm2  ;;  %vm10367_vm8 = vnez %v10366_v53  ;;  %v3639_v0 = vsel %vm10369_vm15, %v10368_v57, %v10332_v55 }
 0x9fb   : > { %v3752_v3 = vsel %vm10356_vm7, %v9290_v42, %v10354_v32  ;;  %4307 = vmatprep.subr.mxu0 %v3728_v8  ;;  %v3646_v32 = vsel %vm10364_vm2, %v10363_v23, %v10327_v6  ;;  %vm10370_vm3 = vmmov %vm10364_vm2  ;;  %v10371_v6 = vld [vmem:[#allocation45_spill] sm:$0xff]  ;;  %vm10372_vm7 = vcmask 777216  }
 0x9fc   : > { %5380 = vmatpush1.msk.msra.mxu0 %vm10358_vm12, %v3752_v3  ;;  %v9302_v17 = vpop.permute.xlu0 %3947  ;;  %vm10374_vm12 = vmmov %vm10372_vm7 }
 0x9fd   : > { %4309 = vmatprep.subr.mxu0 %v3721_v13  ;;  %v3669_v13 = vsel %vm10370_vm3, %v9249_v39, %v10368_v57  ;;  %v10376_v57 = vld [vmem:[#allocation3_spill] sm:$0xff]  ;;  %vm10377_vm10 = vmmov %vm10372_vm7  ;;  %vm10389_vm3 = vcmask 130048  }
 0x9fe   : > { %v9310_v11 = vpop.permute.xlu1 %3593  ;;  %5381 = vmatpush1.msk.msra.mxu0 %vm10362_vm0, %v3751_v9  ;;  %v4219_v9 = vsel %vm10372_vm7, %v10371_v6, %v8924_v2  ;;  %vm10381_vm0 = vmmov %vm10380_vm14 }
 0x9ff   : > { %v3670_v8 = vsel %vm10365_vm5, %v9310_v11, %v10363_v23  ;;  %5382 = vmatprep.subr.msk.mxu0 %vm7622_vm9, %v3646_v32  ;;  %v10373_v32 = vld [vmem:[#allocation41_spill] sm:$0xff]  ;;  %vm10382_vm2 = vmmov %vm10381_vm0 }
 0xa00   : > { %5383 = vmatpush1.msk.msra.mxu0 %vm10367_vm8, %v3670_v8  ;;  %v4126_v3 = vpop.permute.xlu0 %4125  ;;  %v4218_v55 = vsel %vm10374_vm12, %v10373_v32, %v10371_v6  ;;  %v10375_v8 = vld [vmem:[#allocation49_spill] sm:$0xff]  ;;  %vm10383_vm5 = vmmov %vm10381_vm0 }
 0xa01   : > { %5384 = vmatprep.subr.msk.mxu0 %vm7622_vm9, %v3639_v0  ;;  %v4212_v59 = vsel %vm10377_vm10, %v10376_v57, %v10375_v8  ;;  %v10378_v0 = vld [vmem:[#allocation13_spill] sm:$0xff]  ;;  %vm10379_vm9 = vmmov %vm10372_vm7  ;;  %v4141_v6 = vsel %vm10380_vm14, %v9108_v27, %v4126_v3  ;;  %vm10391_vm7 = vcmask 793600  }
 0xa02   : > { %v9335_v23 = vpop.permute.xlu1 %3719  ;;  %5385 = vmatpush1.msk.msra.mxu0 %vm10367_vm8, %v3669_v13  ;;  %v4211_v53 = vsel %vm10379_vm9, %v10378_v0, %v10376_v57  ;;  %vm10387_vm8 = vmmov %vm10381_vm0 }
 0xa03   : > { %5386 = vmatprep.subr.msk.mxu0 %vm7650_vm1, %v4219_v9  ;;  %v4140_v9 = vsel %vm10381_vm0, %v9027_v1, %v9108_v27  ;;  %v4135_v1 = vsel %vm10387_vm8, %v9178_v48, %v4112_v7  ;;  %vm10388_vm15 = vmmov %vm10381_vm0 }
 0xa04   : > { %5387 = vmatpush2.msk.msra.mxu0 %vm10277_vm6, %v4218_v55  ;;  %v4044_v2 = vpop.permute.xlu0 %4043  ;;  %vm10392_vm12 = vmmov %vm10391_vm7 }
 0xa05   : > { %5388 = vmatprep.subr.msk.mxu0 %vm7650_vm1, %v4212_v59  ;;  %vm10385_vm1 = vcmp.lt.s32.totalorder %v10384_v10, 992  ;;  %v4059_v59 = vsel %vm10391_vm7, %v9136_v30, %v4044_v2  ;;  %vm10394_vm10 = vmmov %vm10391_vm7  ;;  %v10405_v10 = vld [vmem:[#allocation29_spill] sm:$0xff] }
 0xa06   : > { %v4128_v13 = vpop.permute.xlu1 %4127  ;;  %5389 = vmatpush2.msk.msra.mxu0 %vm10277_vm6, %v4211_v53  ;;  %vm10386_vm6 = vmmov %vm10381_vm0 }
 0xa07   : > { %v4142_v55 = vsel %vm10382_vm2, %v4126_v3, %v4128_v13  ;;  %v4162_v8 = vsel %vm10383_vm5, %v4128_v13, %v8651_v14  ;;  %4348 = vmatmul.mubr.f32.vlgmr.msra.gmra.mxu0 %v9214_v18  ;;  %4437 = vmatprep.subr.mxu0 %v4141_v6  ;;  %v4134_v57 = vsel %vm10386_vm6, %v8985_v5, %v9178_v48  ;;  %v10390_v3 = vld [vmem:[#allocation42_spill] sm:$0xff]  ;;  %v10393_v5 = vld [vmem:[#allocation17_spill] sm:$0xff]  ;;  %vm10395_vm9 = vmmov %vm10385_vm1  ;;  %vm10407_vm6 = vcmask 1039360  }
 0xa08   : > { %4438 = vmatpush1.msra.mxu0 %v4140_v9  ;;  %5444 = vmatprep.subr.msk.mxu1 %vm10385_vm1, %v4162_v8  ;;  %v3962_v35 = vpop.permute.xlu0 %3961  ;;  %v4161_v14 = vsel %vm10388_vm15, %v4112_v7, %v8613_v40  ;;  %vm10396_vm14 = vmmov %vm10391_vm7  ;;  %vm10406_vm1 = vnez %v10405_v10 }
 0xa09   : > { %4439 = vmatprep.subr.mxu0 %v4134_v57  ;;  %4515 = vmatpush1.msra.mxu1 %v4142_v55  ;;  %v4058_v40 = vsel %vm10396_vm14, %v9044_v38, %v9136_v30  ;;  %vm10399_vm0 = vmmov %vm10391_vm7  ;;  %v10403_v30 = vld [vmem:[#allocation22_spill] sm:$0xff] }
 0xa0a   : > { %v4046_v27 = vpop.permute.xlu1 %4045  ;;  %5391 = vmatprep.mubr.msk.f32.mxu0 %vm10389_vm3, %v9223_v52  ;;  %4440 = vmatpush1.msra.mxu0 %v10390_v3  ;;  %vm10402_vm2 = vmmov %vm10399_vm0 }
 0xa0b   : > { %v4060_v53 = vsel %vm10392_vm12, %v4044_v2, %v4046_v27  ;;  %v4080_v13 = vsel %vm10394_vm10, %v4046_v27, %v10393_v5  ;;  %5445 = vmatprep.subr.msk.mxu1 %vm10395_vm9, %v4161_v14  ;;  %4354 = vmatmul.mubr.f32.gmra.mxu0 %v9236_v58  ;;  %v10398_v2 = vld [vmem:[#allocation37_spill] sm:$0xff]  ;;  %v4053_v38 = vsel %vm10402_vm2, %v9202_v63, %v9280_v37  ;;  %vm10404_vm5 = vmmov %vm10399_vm0  ;;  %v10409_v27 = vld [vmem:[#allocation14_spill] sm:$0xff]  ;;  %vm10434_vm2 = vcmask 7168  }
 0xa0c   : > { %5418 = vmatprep.subr.msk.mxu0 %vm8075_vm11, %v4059_v59  ;;  %4517 = vmatpush1.msra.mxu1 %v4135_v1  ;;  %v9390_v7 = vpop.permute.xlu0 %3701  ;;  %v4052_v6 = vsel %vm10399_vm0, %v10398_v2, %v9202_v63  ;;  %v4079_v8 = vsel %vm10404_vm5, %v9280_v37, %v10403_v30  ;;  %v3977_v1 = vsel %vm10407_vm6, %v9162_v36, %v3962_v35  ;;  %vm10408_vm8 = vmmov %vm10407_vm6  ;;  %v10411_v63 = vld [vmem:[#allocation52_spill] sm:$0xff]  ;;  %v10413_v59 = vld [vmem:[#allocation27_spill] sm:$0xff] }
 0xa0d   : > { %5419 = vmatpush1.msk.msra.mxu0 %vm8084_vm13, %v4058_v40  ;;  %5446 = vmatprep.subr.msk.mxu1 %vm8246_vm4, %v4080_v13  ;;  %vm10410_vm15 = vmmov %vm10407_vm6  ;;  %vm10414_vm7 = vnez %v10413_v59  ;;  %v10417_v13 = vld [vmem:[#allocation31_spill] sm:$0xff]  ;;  %v10419_v40 = vld [vmem:[#allocation26_spill] sm:$0xff] }
 0xa0e   : > { %5420 = vmatprep.subr.msk.mxu0 %vm8075_vm11, %v4052_v6  ;;  %5447 = vmatpush1.msk.msra.mxu1 %vm10406_vm1, %v4060_v53  ;;  %v3964_v57 = vpop.permute.xlu1 %3963  ;;  %vm10412_vm3 = vmmov %vm10407_vm6  ;;  %v10415_v53 = vld [vmem:[#allocation53_spill] sm:$0xff]  ;;  %vm10418_vm10 = vnez %v10417_v13  ;;  %v10421_v2 = vld [vmem:[#allocation10_spill] sm:$0xff] }
 0xa0f   : > { %v3978_v14 = vsel %vm10408_vm8, %v3962_v35, %v3964_v57  ;;  %v3998_v3 = vsel %vm10410_vm15, %v3964_v57, %v10409_v27  ;;  %5421 = vmatpush1.msk.msra.mxu0 %vm8084_vm13, %v10411_v63  ;;  %5448 = vmatprep.subr.msk.mxu1 %vm8246_vm4, %v4079_v8  ;;  %v3976_v37 = vsel %vm10412_vm3, %v9062_v12, %v9162_v36  ;;  %vm10416_vm12 = vmmov %vm10412_vm3  ;;  %v10423_v36 = vld [vmem:[#allocation33_spill] sm:$0xff]  ;;  %v10427_v30 = vld [vmem:[#allocation16_spill] sm:$0xff] }
 0xa10   : > { %5422 = vmatprep.subr.msk.mxu0 %vm10414_vm7, %v3977_v1  ;;  %5449 = vmatpush1.msk.msra.mxu1 %vm10406_vm1, %v4053_v38  ;;  %v9426_v35 = vpop.permute.xlu0 %3705  ;;  %v3970_v5 = vsel %vm10416_vm12, %v10415_v53, %v9228_v19  ;;  %vm10420_vm4 = vnez %v10419_v40  ;;  %vm10422_vm9 = vmmov %vm10412_vm3  ;;  %vm10424_vm14 = vnez %v10423_v36  ;;  %v10426_v38 = vld [vmem:[#allocation54_spill] sm:$0xff]  ;;  %v10428_v57 = vld [vmem:[#allocation8_spill] sm:$0xff]  ;;  %v3898_v63 = vsel %vm10434_vm2, %v9240_v60, %v9251_v54 }
 0xa11   : > { %5423 = vmatpush1.msk.msra.mxu0 %vm10418_vm10, %v3976_v37  ;;  %5450 = vmatprep.subr.msk.mxu1 %vm10420_vm4, %v3998_v3  ;;  %v3997_v12 = vsel %vm10422_vm9, %v9302_v17, %v10421_v2  ;;  %vm10425_vm0 = vmmov %vm10412_vm3  ;;  %v10429_v1 = vld [vmem:[#allocation40_spill] sm:$0xff]  ;;  %v10433_v3 = vld [vmem:[#allocation18_spill] sm:$0xff]  ;;  %vm10442_vm3 = vcmask 252928  }
 0xa12   : > { %5424 = vmatprep.subr.msk.mxu0 %vm10414_vm7, %v3970_v5  ;;  %5451 = vmatpush1.msk.msra.mxu1 %vm10424_vm14, %v3978_v14  ;;  %v3704_v6 = vpop.permute.xlu1 %3703  ;;  %v3971_v55 = vsel %vm10425_vm0, %v9228_v19, %v9302_v17  ;;  %v10430_v14 = vld [vmem:[#allocation34_spill] sm:$0xff]  ;;  %v10431_v19 = vld [vmem:[#allocation24_spill] sm:$0xff]  ;;  %v10435_v37 = vld [vmem:[#allocation39_spill] sm:$0xff] }
 0xa13   : > { %5425 = vmatpush1.msk.msra.mxu0 %vm10418_vm10, %v10426_v38  ;;  %5452 = vmatprep.subr.msk.mxu1 %vm10420_vm4, %v3997_v12  ;;  %v10432_v27 = vld [vmem:[#allocation28_spill] sm:$0xff]  ;;  %vm10436_vm5 = vmmov %vm10434_vm2 }
 0xa14   : > { %4449 = vmatprep.subr.mxu0 %v10427_v30  ;;  %5453 = vmatpush1.msk.msra.mxu1 %vm10424_vm14, %v3971_v55  ;;  %v3636_v8 = vpop.permute.xlu0 %3635  ;;  %v3897_v5 = vsel %vm10436_vm5, %v9095_v33, %v9240_v60  ;;  %v10437_v2 = vld [vmem:[#allocation20_spill] sm:$0xff]  ;;  %vm10439_vm8 = vmmov %vm10434_vm2 }
 0xa15   : > { %4450 = vmatpush1.msra.mxu0 %v10428_v57  ;;  %4526 = vmatprep.subr.mxu1 %v10429_v1  ;;  %vm10438_vm6 = vnez %v10437_v2  ;;  %v3891_v54 = vsel %vm10439_vm8, %v9170_v61, %v9218_v50  ;;  %vm10440_vm15 = vmmov %vm10434_vm2  ;;  %v3816_v50 = vsel %vm10442_vm3, %v9247_v16, %v9266_v34  ;;  %vm10447_vm2 = vcmask 261120  }
 0xa16   : > { %4451 = vmatprep.subr.mxu0 %v10430_v14  ;;  %4527 = vmatpush1.msra.mxu1 %v10431_v19  ;;  %v3634_v17 = vpop.permute.xlu1 %3633  ;;  %v3890_v33 = vsel %vm10440_vm15, %v9021_v28, %v9170_v61  ;;  %vm10443_vm12 = vmmov %vm10442_vm3  ;;  %v9629_v19 = vld [vmem:[%s9716_s14] sm:$0xff] }
 0xa17   : > { %4452 = vmatpush1.msra.mxu0 %v10432_v27  ;;  %4528 = vmatprep.subr.mxu1 %v10433_v3  ;;  %v3815_v28 = vsel %vm10443_vm12, %v9122_v4, %v9247_v16  ;;  %vm10444_vm9 = vmmov %vm10442_vm3  ;;  %vm10453_vm12 = vcmask 269312  }
 0xa18   : > { %5426 = vmatprep.subr.msk.mxu0 %vm8075_vm11, %v9102_v43  ;;  %4529 = vmatpush1.msra.mxu1 %v10435_v37  ;;  %v3620_v53 = vpop.permute.xlu0 %3619  ;;  %v3809_v61 = vsel %vm10444_vm9, %v9192_v15, %v9238_v41  ;;  %vm10445_vm0 = vmmov %vm10442_vm3 }
 0xa19   : > { %5427 = vmatpush1.msk.msra.mxu0 %vm8084_vm13, %v9056_v29  ;;  %5454 = vmatprep.subr.msk.mxu1 %vm10438_vm6, %v3898_v63  ;;  %v10441_v29 = vld [vmem:[#allocation11_spill] sm:$0xff]  ;;  %v3808_v4 = vsel %vm10445_vm0, %v9033_v25, %v9192_v15  ;;  %vm10448_vm5 = vmmov %vm10447_vm2 }
 0xa1a   : > { %5428 = vmatprep.subr.msk.mxu0 %vm8075_vm11, %v9025_v47  ;;  %5455 = vmatpush1.msk.msra.mxu1 %vm10406_vm1, %v3897_v5  ;;  %v3638_v43 = vpop.permute.xlu1 %3637  ;;  %v3733_v25 = vsel %vm10448_vm5, %v9148_v22, %v9335_v23  ;;  %vm10449_vm8 = vmmov %vm10447_vm2 }
 0xa1b   : > { %5429 = vmatpush1.msk.msra.mxu0 %vm8084_vm13, %v10441_v29  ;;  %5456 = vmatprep.subr.msk.mxu1 %vm10438_vm6, %v3891_v54  ;;  %v3725_v15 = vsel %vm10449_vm8, %v9390_v7, %v3704_v6  ;;  %vm10451_vm15 = vmmov %vm10447_vm2 }
 0xa1c   : > { %5430 = vmatprep.subr.msk.mxu0 %vm10414_vm7, %v9129_v31  ;;  %5457 = vmatpush1.msk.msra.mxu1 %vm10406_vm1, %v3890_v33  ;;  %v3624_v47 = vpop.permute.xlu0 %3623  ;;  %v3727_v16 = vsel %vm10451_vm15, %v9426_v35, %v9245_v24  ;;  %vm10452_vm3 = vmmov %vm10447_vm2 }
 0xa1d   : > { %5431 = vmatpush1.msk.msra.mxu0 %vm10418_vm10, %v9077_v56  ;;  %5458 = vmatprep.subr.msk.mxu1 %vm10420_vm4, %v3816_v50  ;;  %v10446_v56 = vld [vmem:[#allocation6_spill] sm:$0xff]  ;;  %v3726_v22 = vsel %vm10452_vm3, %v3704_v6, %v9426_v35  ;;  %vm10454_vm9 = vmmov %vm10453_vm12  ;;  %vm10461_vm3 = vcmask 777216  }
 0xa1e   : > { %5432 = vmatprep.subr.msk.mxu0 %vm10414_vm7, %v9037_v44  ;;  %5459 = vmatpush1.msk.msra.mxu1 %vm10424_vm14, %v3815_v28  ;;  %v3622_v31 = vpop.permute.xlu1 %3621  ;;  %v3734_v44 = vsel %vm10447_vm2, %v9335_v23, %v9290_v42  ;;  %v3649_v34 = vsel %vm10454_vm9, %v8961_v20, %v3634_v17  ;;  %vm10455_vm0 = vmmov %vm10454_vm9 }
 0xa1f   : > { %5433 = vmatpush1.msk.msra.mxu0 %vm10418_vm10, %v10446_v56  ;;  %5460 = vmatprep.subr.msk.mxu1 %vm10420_vm4, %v3809_v61  ;;  %vm10450_vm4 = vmmov %vm10447_vm2 }
 0xa20   : > { %4461 = vmatprep.subr.mxu0 %v9157_v46  ;;  %5461 = vmatpush1.msk.msra.mxu1 %vm10424_vm14, %v3808_v4  ;;  %v4208_v41 = vpop.permute.xlu0 %4207  ;;  %v3724_v46 = vsel %vm10450_vm4, %v8833_v62, %v9390_v7  ;;  %v3652_v62 = vsel %vm10455_vm0, %v3638_v43, %v9310_v11  ;;  %vm10456_vm2 = vmmov %vm10455_vm0 }
 0xa21   : > { %4462 = vmatpush1.msra.mxu0 %v9091_v45  ;;  %4538 = vmatprep.subr.mxu1 %v3734_v44  ;;  %v3650_v45 = vsel %vm10453_vm12, %v3634_v17, %v3636_v8  ;;  %v3651_v24 = vsel %vm10456_vm2, %v3636_v8, %v3638_v43  ;;  %vm10457_vm5 = vmmov %vm10455_vm0  ;;  %v9637_v17 = vld [vmem:[%s9716_s14 + $0x8] sm:$0xff] }
 0xa22   : > { %4463 = vmatprep.subr.mxu0 %v3725_v15  ;;  %4539 = vmatpush1.msra.mxu1 %v3733_v25  ;;  %v4206_v60 = vpop.permute.xlu1 %4205  ;;  %v3643_v23 = vsel %vm10457_vm5, %v3620_v53, %v3622_v31  ;;  %vm10458_vm8 = vmmov %vm10455_vm0 }
 0xa23   : > { %4464 = vmatpush1.msra.mxu0 %v3724_v46  ;;  %4540 = vmatprep.subr.mxu1 %v3727_v16  ;;  %v3642_v20 = vsel %vm10458_vm8, %v10329_v21, %v3620_v53  ;;  %vm10459_vm4 = vmmov %vm10455_vm0  ;;  %v4223_v40 = vsel %vm10461_vm3, %v4206_v60, %v4208_v41 }
 0xa24   : > { %5434 = vmatprep.subr.msk.mxu0 %vm8075_vm11, %v3650_v45  ;;  %4541 = vmatpush1.msra.mxu1 %v3726_v22  ;;  %v4190_v42 = vpop.permute.xlu0 %4189  ;;  %v3645_v11 = vsel %vm10459_vm4, %v3624_v47, %v9249_v39  ;;  %vm10460_vm15 = vmmov %vm10455_vm0 }
 0xa25   : > { %5435 = vmatpush1.msk.msra.mxu0 %vm8084_vm13, %v3649_v34  ;;  %5462 = vmatprep.subr.msk.mxu1 %vm10438_vm6, %v3652_v62  ;;  %v3644_v7 = vsel %vm10460_vm15, %v3622_v31, %v3624_v47  ;;  %vm10462_vm12 = vmmov %vm10461_vm3 }
 0xa26   : > { %5436 = vmatprep.subr.msk.mxu0 %vm8075_vm11, %v3643_v23  ;;  %5463 = vmatpush1.msk.msra.mxu1 %vm10406_vm1, %v3651_v24  ;;  %v4210_v35 = vpop.permute.xlu1 %4209  ;;  %vm10463_vm9 = vmmov %vm10461_vm3 }
 0xa27   : > { %v4224_v12 = vsel %vm10462_vm12, %v4208_v41, %v4210_v35  ;;  %v4244_v6 = vsel %vm10463_vm9, %v4210_v35, %v10373_v32  ;;  %5437 = vmatpush1.msk.msra.mxu0 %vm8084_vm13, %v3642_v20  ;;  %5464 = vmatprep.subr.msk.mxu1 %vm10438_vm6, %v3645_v11  ;;  %vm10464_vm0 = vmmov %vm10461_vm3  ;;  %v10465_v32 = vld [vmem:[#allocation46_spill] sm:$0xff]  ;;  %vm10468_vm6 = vcmask 130048  }
 0xa28   : > { %v4222_v21 = vsel %vm10464_vm0, %v9083_v49, %v4206_v60  ;;  %5438 = vmatprep.subr.msk.mxu0 %vm10414_vm7, %v4223_v40  ;;  %5465 = vmatpush1.msk.msra.mxu1 %vm10406_vm1, %v3644_v7  ;;  %v4194_v39 = vpop.permute.xlu0 %4193  ;;  %vm10466_vm11 = vnez %v10465_v32  ;;  %vm10467_vm13 = vmmov %vm10464_vm0 }
 0xa29   : > { %5439 = vmatpush2.msk.msra.mxu0 %vm10418_vm10, %v4222_v21  ;;  %5466 = vmatprep.subr.msk.mxu1 %vm10466_vm11, %v4244_v6  ;;  %v4243_v48 = vsel %vm10467_vm13, %v4194_v39, %v10378_v0  ;;  %vm10469_vm2 = vmmov %vm10464_vm0 }
 0xa2a   : > { %5467 = vmatpush2.msk.msra.mxu1 %vm10424_vm14, %v4224_v12  ;;  %v4192_v49 = vpop.permute.xlu1 %4191  ;;  %5442 = vmatprep.mubr.msk.f32.mxu0 %vm10468_vm6, %v10340_v26  ;;  %vm10470_vm1 = vmmov %vm10464_vm0 }
 0xa2b   : > { %v4216_v9 = vsel %vm10469_vm2, %v4190_v42, %v4192_v49  ;;  %v4217_v10 = vsel %vm10470_vm1, %v4192_v49, %v4194_v39  ;;  %5468 = vmatprep.subr.msk.mxu1 %vm10466_vm11, %v4243_v48  ;;  %vm10471_vm5 = vmmov %vm10464_vm0 }
 0xa2c   : > { %v4215_v55 = vsel %vm10471_vm5, %v9007_v51, %v4190_v42  ;;  %5440 = vmatprep.subr.msk.mxu0 %vm10414_vm7, %v4216_v9  ;;  %5469 = vmatpush2.msk.msra.mxu1 %vm10424_vm14, %v4217_v10  ;;  %vm10472_vm8 = vmmov %vm10468_vm6  ;;  %v5536_v51 = vmov 0.0  }
 0xa2d   : > { %5441 = vmatpush2.msk.msra.mxu0 %vm10418_vm10, %v4215_v55  ;;  %4579 = vmatmul.mubr.f32.vlgmr.msra.gmra.mxu1 %v9214_v18  ;;  %vm10473_vm4 = vmmov %vm10468_vm6 }
 0xa2e   : > { %4502 = vmatmul.mubr.f32.vlgmr.msra.gmra.mxu0 %v9214_v18  ;;  %5471 = vmatprep.mubr.msk.f32.mxu1 %vm10472_vm8, %v9223_v52  ;;  %vm10474_vm7 = vmmov %vm10473_vm4 }
 0xa2f   : > { %5443 = vmatprep.mubr.msk.f32.mxu0 %vm10473_vm4, %v9223_v52  ;;  %vm10475_vm10 = vmmov %vm10473_vm4 }
 0xa30   : > { %vm10476_vm14 = vmmov %vm10473_vm4 }
 0xa31   : > { %4585 = vmatmul.mubr.f32.gmra.mxu1 %v9236_v58  ;;  %vm10477_vm15 = vmmov %vm10473_vm4 }
 0xa32   : > { %4508 = vmatmul.mubr.f32.gmra.mxu0 %v9236_v58  ;;  %4784 = vmatprep.mubr.f32.mxu1 %v5536_v51  ;;  %vm10478_vm3 = vmmov %vm10473_vm4 }
 0xa33   : > { %4707 = vmatprep.mubr.f32.mxu0 %v5536_v51  ;;  %vm10479_vm12 = vmmov %vm10478_vm3 }
 0xa34   : > { %vm10480_vm9 = vmmov %vm10478_vm3 }
 0xa35   : > { %v4270_v26 = vpop.permute.xlu0 %4269  ;;  %vm10481_vm0 = vmmov %vm10478_vm3 }
 0xa37   : > { %v9618_v13 = vpop.permute.xlu1 %4274 }
 0xa39   : > { %v4635_v32 = vpop.permute.xlu0 %4634 }
 0xa3b   : > { %v4630_v40 = vpop.permute.xlu1 %4629 }
 0xaa6   : > { %v4426_v0 = vpop.f32.mrf.mxu1 }
 0xaa7   : > { %v4427_v59 = vadd.f32 %v4426_v0, %v4270_v26 }
 0xaa8   : > { %v4428_v18 = vpop.f32.mrf.mxu1 }
 0xaa9   : > { %v4593_v52 = vmax.f32 %v4427_v59, 0.0  ;;  %v4429_v58 = vadd.f32 %v4428_v18, %v4270_v26 }
 0xaaa   : > { %v4432_v36 = vpop.f32.mrf.mxu1 }
 0xaab   : > { %4609 = vst [vmem:[%s9616_s1 + $0x10] sm:$0xff] %v4593_v52  ;;  %v4594_v38 = vmax.f32 %v4429_v58, 0.0  ;;  %v4433_v30 = vadd.f32 %v4432_v36, %v9618_v13 }
 0xaac   : > { %v4434_v8 = vpop.f32.mrf.mxu1 }
 0xaad   : > { %4610 = vst [vmem:[%s9616_s1 + $0x18] sm:$0xff] %v4594_v38  ;;  %v4601_v57 = vmax.f32 %v4433_v30, 0.0  ;;  %v4435_v1 = vadd.f32 %v4434_v8, %v9618_v13 }
 0xaaf   : > { %4617 = vst [vmem:[%s9616_s1 + $0x50] sm:$0xff] %v4601_v57  ;;  %v4602_v14 = vmax.f32 %v4435_v1, 0.0 }
 0xab1   : > { %4618 = vst [vmem:[%s9616_s1 + $0x58] sm:$0xff] %v4602_v14  ;;  %4748 = vmatprep.subr.mxu1 %v4602_v14 }
 0xab2   : > { %4749 = vmatpush1.msra.mxu1 %v4601_v57 }
 0xab3   : > { %4750 = vmatprep.subr.mxu1 %v4594_v38 }
 0xab4   : > { %4751 = vmatpush1.msra.mxu1 %v4593_v52 }
 0xab5   : > { %5474 = vmatmul.mubr.msk.f32.vlgmr.msra.gmra.mxu1 %vm10474_vm7, %v9629_v19 }
 0xab6   : > { %4790 = vmatprep.mubr.f32.mxu1 %v5536_v51 }
 0xab9   : > { %5475 = vmatmul.mubr.msk.f32.gmra.mxu1 %vm10475_vm10, %v9637_v17 }
 0xaba   : > { %4938 = vmatprep.mubr.f32.mxu1 %v5536_v51 }
 0xac7   : > { %v4349_v27 = vpop.f32.mrf.mxu0 }
 0xac8   : > { %v4350_v3 = vadd.f32 %v4349_v27, %v4270_v26 }
 0xac9   : > { %v4351_v63 = vpop.f32.mrf.mxu0 }
 0xaca   : > { %v4591_v37 = vmax.f32 %v4350_v3, 0.0  ;;  %v4352_v53 = vadd.f32 %v4351_v63, %v4270_v26 }
 0xacb   : > { %v4355_v5 = vpop.f32.mrf.mxu0 }
 0xacc   : > { %4607 = vst [vmem:[%s9616_s1] sm:$0xff] %v4591_v37  ;;  %v4592_v2 = vmax.f32 %v4352_v53, 0.0  ;;  %v4356_v54 = vadd.f32 %v4355_v5, %v9618_v13 }
 0xacd   : > { %v4357_v43 = vpop.f32.mrf.mxu0 }
 0xace   : > { %4608 = vst [vmem:[%s9616_s1 + $0x8] sm:$0xff] %v4592_v2  ;;  %v4599_v33 = vmax.f32 %v4356_v54, 0.0  ;;  %v4358_v29 = vadd.f32 %v4357_v43, %v9618_v13 }
 0xad0   : > { %4615 = vst [vmem:[%s9616_s1 + $0x40] sm:$0xff] %v4599_v33  ;;  %v4600_v50 = vmax.f32 %v4358_v29, 0.0 }
 0xad2   : > { %4616 = vst [vmem:[%s9616_s1 + $0x48] sm:$0xff] %v4600_v50  ;;  %4671 = vmatprep.subr.mxu0 %v4600_v50 }
 0xad3   : > { %4672 = vmatpush1.msra.mxu0 %v4599_v33 }
 0xad4   : > { %4673 = vmatprep.subr.mxu0 %v4592_v2 }
 0xad5   : > { %4674 = vmatpush1.msra.mxu0 %v4591_v37 }
 0xad6   : > { %5472 = vmatmul.mubr.msk.f32.vlgmr.msra.gmra.mxu0 %vm10476_vm14, %v9629_v19 }
 0xad7   : > { %4713 = vmatprep.mubr.f32.mxu0 %v5536_v51 }
 0xada   : > { %5473 = vmatmul.mubr.msk.f32.gmra.mxu0 %vm10477_vm15, %v9637_v17 }
 0xadb   : > { %4861 = vmatprep.mubr.f32.mxu0 %v5536_v51 }
 0xaed   : > { %v4580_v47 = vpop.f32.mrf.mxu1 }
 0xaee   : > { %v4581_v28 = vadd.f32 %v4580_v47, %v4270_v26  ;;  %v4503_v61 = vpop.f32.mrf.mxu0 }
 0xaef   : > { %v4504_v31 = vadd.f32 %v4503_v61, %v4270_v26  ;;  %v4582_v4 = vpop.f32.mrf.mxu1 }
 0xaf0   : > { %v4597_v56 = vmax.f32 %v4581_v28, 0.0  ;;  %v4583_v44 = vadd.f32 %v4582_v4, %v4270_v26  ;;  %v4505_v41 = vpop.f32.mrf.mxu0 }
 0xaf1   : > { %v4595_v25 = vmax.f32 %v4504_v31, 0.0  ;;  %v4506_v15 = vadd.f32 %v4505_v41, %v4270_v26  ;;  %v4586_v46 = vpop.f32.mrf.mxu1 }
 0xaf2   : > { %4613 = vst [vmem:[%s9616_s1 + $0x30] sm:$0xff] %v4597_v56  ;;  %v4598_v60 = vmax.f32 %v4583_v44, 0.0  ;;  %v4587_v16 = vadd.f32 %v4586_v46, %v9618_v13  ;;  %v4509_v22 = vpop.f32.mrf.mxu0 }
 0xaf3   : > { %4611 = vst [vmem:[%s9616_s1 + $0x20] sm:$0xff] %v4595_v25  ;;  %v4596_v45 = vmax.f32 %v4506_v15, 0.0  ;;  %v4510_v34 = vadd.f32 %v4509_v22, %v9618_v13  ;;  %v4588_v62 = vpop.f32.mrf.mxu1 }
 0xaf4   : > { %4614 = vst [vmem:[%s9616_s1 + $0x38] sm:$0xff] %v4598_v60  ;;  %v4605_v42 = vmax.f32 %v4587_v16, 0.0  ;;  %v4589_v24 = vadd.f32 %v4588_v62, %v9618_v13  ;;  %v4511_v23 = vpop.f32.mrf.mxu0 }
 0xaf5   : > { %4612 = vst [vmem:[%s9616_s1 + $0x28] sm:$0xff] %v4596_v45  ;;  %v4603_v20 = vmax.f32 %v4510_v34, 0.0  ;;  %v4512_v11 = vadd.f32 %v4511_v23, %v9618_v13 }
 0xaf6   : > { %4621 = vst [vmem:[%s9616_s1 + $0x70] sm:$0xff] %v4605_v42  ;;  %v4606_v7 = vmax.f32 %v4589_v24, 0.0 }
 0xaf7   : > { %4619 = vst [vmem:[%s9616_s1 + $0x60] sm:$0xff] %v4603_v20  ;;  %v4604_v35 = vmax.f32 %v4512_v11, 0.0 }
 0xaf8   : > { %4622 = vst [vmem:[%s9616_s1 + $0x78] sm:$0xff] %v4606_v7  ;;  %4902 = vmatprep.subr.mxu1 %v4606_v7 }
 0xaf9   : > { %4620 = vst [vmem:[%s9616_s1 + $0x68] sm:$0xff] %v4604_v35  ;;  %4825 = vmatprep.subr.mxu0 %v4604_v35  ;;  %4903 = vmatpush1.msra.mxu1 %v4605_v42 }
 0xafa   : > { %4826 = vmatpush1.msra.mxu0 %v4603_v20  ;;  %4904 = vmatprep.subr.mxu1 %v4598_v60 }
 0xafb   : > { %4827 = vmatprep.subr.mxu0 %v4596_v45  ;;  %4905 = vmatpush1.msra.mxu1 %v4597_v56 }
 0xafc   : > { %4828 = vmatpush1.msra.mxu0 %v4595_v25  ;;  %5478 = vmatmul.mubr.msk.f32.vlgmr.msra.gmra.mxu1 %vm10478_vm3, %v9629_v19 }
 0xafd   : > { %5476 = vmatmul.mubr.msk.f32.vlgmr.msra.gmra.mxu0 %vm10479_vm12, %v9629_v19  ;;  %4944 = vmatprep.mubr.f32.mxu1 %v5536_v51 }
 0xafe   : > { %4867 = vmatprep.mubr.f32.mxu0 %v5536_v51 }
 0xb00   : > { %5479 = vmatmul.mubr.msk.f32.gmra.mxu1 %vm10480_vm9, %v9637_v17 }
 0xb01   : > { %5477 = vmatmul.mubr.msk.f32.gmra.mxu0 %vm10481_vm0, %v9637_v17 }
 0xb75   : > { %v4786_v12 = vpop.f32.mrf.mxu1 }
 0xb76   : > { %v4787_v6 = vadd.f32 %v4786_v12, %v4630_v40 }
 0xb77   : > { %v4788_v21 = vpop.f32.mrf.mxu1 }
 0xb78   : > { %4953 = vst [vmem:[%s9681_s6 + $0x10] sm:$0xff] %v4787_v6  ;;  %v4789_v39 = vadd.f32 %v4788_v21, %v4630_v40 }
 0xb79   : > { %v4792_v48 = vpop.f32.mrf.mxu1 }
 0xb7a   : > { %4954 = vst [vmem:[%s9681_s6 + $0x18] sm:$0xff] %v4789_v39  ;;  %v4793_v49 = vadd.f32 %v4792_v48, %v4635_v32 }
 0xb7b   : > { %v4794_v9 = vpop.f32.mrf.mxu1 }
 0xb7c   : > { %4961 = vst [vmem:[%s9681_s6 + $0x50] sm:$0xff] %v4793_v49  ;;  %v4795_v10 = vadd.f32 %v4794_v9, %v4635_v32 }
 0xb7e   : > { %4962 = vst [vmem:[%s9681_s6 + $0x58] sm:$0xff] %v4795_v10 }
 0xb96   : > { %v4709_v55 = vpop.f32.mrf.mxu0 }
 0xb97   : > { %v4710_v51 = vadd.f32 %v4709_v55, %v4630_v40 }
 0xb98   : > { %v4711_v26 = vpop.f32.mrf.mxu0 }
 0xb99   : > { %4951 = vst [vmem:[%s9681_s6] sm:$0xff] %v4710_v51  ;;  %v4712_v0 = vadd.f32 %v4711_v26, %v4630_v40 }
 0xb9a   : > { %v4715_v59 = vpop.f32.mrf.mxu0 }
 0xb9b   : > { %4952 = vst [vmem:[%s9681_s6 + $0x8] sm:$0xff] %v4712_v0  ;;  %v4716_v18 = vadd.f32 %v4715_v59, %v4635_v32 }
 0xb9c   : > { %v4717_v52 = vpop.f32.mrf.mxu0 }
 0xb9d   : > { %4959 = vst [vmem:[%s9681_s6 + $0x40] sm:$0xff] %v4716_v18  ;;  %v4718_v58 = vadd.f32 %v4717_v52, %v4635_v32 }
 0xb9f   : > { %4960 = vst [vmem:[%s9681_s6 + $0x48] sm:$0xff] %v4718_v58 }
 0xbbc   : > { %v4940_v13 = vpop.f32.mrf.mxu1 }
 0xbbd   : > { %v4941_v36 = vadd.f32 %v4940_v13, %v4630_v40  ;;  %v4863_v38 = vpop.f32.mrf.mxu0 }
 0xbbe   : > { %v4864_v30 = vadd.f32 %v4863_v38, %v4630_v40  ;;  %v4942_v8 = vpop.f32.mrf.mxu1 }
 0xbbf   : > { %4957 = vst [vmem:[%s9681_s6 + $0x30] sm:$0xff] %v4941_v36  ;;  %v4943_v57 = vadd.f32 %v4942_v8, %v4630_v40  ;;  %v4865_v1 = vpop.f32.mrf.mxu0 }
 0xbc0   : > { %4955 = vst [vmem:[%s9681_s6 + $0x20] sm:$0xff] %v4864_v30  ;;  %v4866_v14 = vadd.f32 %v4865_v1, %v4630_v40  ;;  %v4946_v19 = vpop.f32.mrf.mxu1 }
 0xbc1   : > { %4958 = vst [vmem:[%s9681_s6 + $0x38] sm:$0xff] %v4943_v57  ;;  %v4947_v17 = vadd.f32 %v4946_v19, %v4635_v32  ;;  %v4869_v27 = vpop.f32.mrf.mxu0 }
 0xbc2   : > { %4956 = vst [vmem:[%s9681_s6 + $0x28] sm:$0xff] %v4866_v14  ;;  %v4870_v3 = vadd.f32 %v4869_v27, %v4635_v32  ;;  %v4948_v63 = vpop.f32.mrf.mxu1 }
 0xbc3   : > { %4965 = vst [vmem:[%s9681_s6 + $0x70] sm:$0xff] %v4947_v17  ;;  %v4949_v37 = vadd.f32 %v4948_v63, %v4635_v32  ;;  %v4871_v53 = vpop.f32.mrf.mxu0 }
 0xbc4   : > { %4963 = vst [vmem:[%s9681_s6 + $0x60] sm:$0xff] %v4870_v3  ;;  %v4872_v5 = vadd.f32 %v4871_v53, %v4635_v32 }
 0xbc5   : > { %4966 = vst [vmem:[%s9681_s6 + $0x78] sm:$0xff] %v4949_v37 }
 0xbc6   : > { %4964 = vst [vmem:[%s9681_s6 + $0x68] sm:$0xff] %v4872_v5 }
 0xbc7 PF: > { %s30_s0 = sadd.s32 1, %s5519_s0  }
 0xbc8   : > { %p27_p4 = scmp.ge.s32.totalorder %s30_s0, 4  }
 0xbca   :  { %29 = sbr.rel (!%p27_p4) target bundleno = 8 (0x8), region = 150 }

</bundles_post_ra>
